<compile_context>
chip_gen: v7x
topology: tpu7x:2x2x1
jax: 0.10.0
libtpu: 0.0.40
codegen_flags: <defaults>
</compile_context>

<pallas_src>
import math
import numpy as np
import jax
import jax.numpy as jnp
from jax import lax
from jax.experimental import pallas as pl
from jax.experimental.pallas import tpu as pltpu

D_MODEL = 64
N_HEAD = 4
N_LAYERS = 2
FF_DIM = 128
HEAD_DIM = D_MODEL // N_HEAD
HEAD_HID = 32
N_ACTIONS = 4
EPS = 1e-5
NEG_INF = -1e30

# ---- packed parameter slab row layout (single (rows, 4*D_MODEL) f32 slab) -------------
ROW_WIH = 0                           # rows [0,64):  LSTM w_ih   (i/f/o cols pre-scaled by 0.5)
ROW_WHH = D_MODEL                     # rows [64,128): LSTM w_hh  (i/f/o cols pre-scaled by 0.5)
ROW_EMBW = 2 * D_MODEL                # row 128: emb_w0 @ cols[0:64], emb_w1 @ cols[128:192]
ROW_BALL = ROW_EMBW + 1               # row 129: b_ih + b_hh      (i/f/o cols pre-scaled by 0.5)
ROW_EMBB = ROW_EMBW + 2               # row 130: emb_b @ cols[0:64], out1_b @ cols[128:160]
ROW_OUT2B = ROW_EMBW + 3              # row 131: out2_b @ cols[0:4]
ROW_LYRB = 136                        # rows [136,136+8L): per-layer biases, 8 rows / layer
ROW_HEADW = ROW_LYRB + 8 * N_LAYERS   # rows [152,216): out1_w @ cols[0:32]; out2_w rows[152:184] @ cols[128:132]
ROW_MASK = ROW_HEADW + D_MODEL        # rows [216,216+N): additive batch-block attention mask


def _layernorm(x, g, b):
    mu = jnp.mean(x, axis=-1, keepdims=True)
    var = jnp.mean(jnp.square(x - mu), axis=-1, keepdims=True)
    return (x - mu) * lax.rsqrt(var + EPS) * g + b


def _softmax_rows(x, approx):
    m = jnp.max(x, axis=-1, keepdims=True)
    e = jnp.exp(x - m)
    return e * pl.reciprocal(jnp.sum(e, axis=-1, keepdims=True), approx=approx)


def maze_kernel(x_ref, par_ref, lyr_w_ref, o_ref):
    # x_ref: (N, 2) time-major rows (row r = t*B + b); o_ref: (B, 4)
    N = x_ref.shape[0]
    B = o_ref.shape[0]
    S = N // B
    D = D_MODEL
    dh = HEAD_DIM

    # ---- unpack the consolidated parameter slab (static, 128-aligned lane offsets) ----
    w_ih = par_ref[ROW_WIH:ROW_WIH + D, :]                             # (D, 4D)
    w_hh = par_ref[ROW_WHH:ROW_WHH + D, :]                             # (D, 4D)
    emb_w0 = par_ref[ROW_EMBW:ROW_EMBW + 1, 0:D]                       # (1, D)
    emb_w1 = par_ref[ROW_EMBW:ROW_EMBW + 1, 2 * D:3 * D]               # (1, D)
    emb_b = par_ref[ROW_EMBB:ROW_EMBB + 1, 0:D]                        # (1, D)
    b_all = par_ref[ROW_BALL:ROW_BALL + 1, :]                          # (1, 4D)
    out1_b = par_ref[ROW_EMBB:ROW_EMBB + 1, 2 * D:2 * D + HEAD_HID]    # (1, 32)
    out2_b = par_ref[ROW_OUT2B:ROW_OUT2B + 1, 0:N_ACTIONS]             # (1, 4)
    out1_w = par_ref[ROW_HEADW:ROW_HEADW + D, 0:HEAD_HID]              # (64, 32)
    out2_w = par_ref[ROW_HEADW:ROW_HEADW + HEAD_HID, 2 * D:2 * D + N_ACTIONS]  # (32, 4)
    mask_add = par_ref[ROW_MASK:ROW_MASK + N, 0:N]                     # (N, N)

    # ---- embedding Linear(2, D): two VPU broadcast FMAs (skip MXU for K=2) ----
    x = x_ref[...]                                                     # (N, 2)
    emb = x[:, 0:1] * emb_w0 + x[:, 1:2] * emb_w1 + emb_b              # (N, D)

    # ---- LSTM (1 layer), input projection hoisted out of the recurrence ----
    gates_x = jnp.dot(emb, w_ih, preferred_element_type=jnp.float32) + b_all   # (N, 4D)

    h_t = jnp.zeros((B, D), jnp.float32)
    c_t = jnp.zeros((B, D), jnp.float32)
    hs = []
    for t in range(S):                           # static trip count, fully unrolled
        gates = gates_x[t * B:(t + 1) * B, :] + jnp.dot(
            h_t, w_hh, preferred_element_type=jnp.float32)             # (B, 4D)
        # one full-vreg tanh per step; sigmoid(z) = 0.5*tanh(z/2)+0.5 via pack-time 0.5 scale
        tg = jnp.tanh(gates)
        i_g = 0.5 * tg[:, 0:D] + 0.5
        f_g = 0.5 * tg[:, D:2 * D] + 0.5
        g_g = tg[:, 2 * D:3 * D]
        o_g = 0.5 * tg[:, 3 * D:4 * D] + 0.5
        c_t = f_g * c_t + i_g * g_g
        h_t = o_g * jnp.tanh(c_t)
        hs.append(h_t)
    seq = jnp.concatenate(hs, axis=0)            # (N, D) time-major, stays in vregs

    # ---- TransformerEncoder: post-norm layers, ReLU FFN, dropout == identity ----
    for l in range(N_LAYERS):
        qkv_w = lyr_w_ref[l, 0:D, 0:3 * D]                   # (D, 3D), q cols pre-scaled
        ow = lyr_w_ref[l, D:2 * D, 0:D]                      # (D, D)
        f1w = lyr_w_ref[l, D:2 * D, 2 * D:2 * D + FF_DIM]    # (D, FF)
        f2wT = lyr_w_ref[l, 2 * D:3 * D, 0:FF_DIM]           # (D, FF) = f2w transposed
        base = ROW_LYRB + 8 * l
        qkv_b = par_ref[base:base + 1, 0:3 * D]
        ob = par_ref[base + 1:base + 2, 0:D]
        f1b = par_ref[base + 2:base + 3, 0:FF_DIM]
        f2b = par_ref[base + 3:base + 4, 0:D]
        g1 = par_ref[base + 4:base + 5, 0:D]
        b1 = par_ref[base + 5:base + 6, 0:D]
        g2 = par_ref[base + 6:base + 7, 0:D]
        b2 = par_ref[base + 7:base + 8, 0:D]

        qkv = jnp.dot(seq, qkv_w, preferred_element_type=jnp.float32) + qkv_b   # (N, 3D)
        q = qkv[:, 0:D]                      # 1/sqrt(dh) folded into weights/bias
        k = qkv[:, D:2 * D]
        v = qkv[:, 2 * D:3 * D]

        # Head-batched attention: 2 batched MXU issues + one fused softmax per layer.
        # Batch separation comes from the additive block mask (zero weight across batches).
        q3 = jnp.stack([q[:, h * dh:(h + 1) * dh] for h in range(N_HEAD)], axis=0)  # (H,N,dh)
        k3 = jnp.stack([k[:, h * dh:(h + 1) * dh] for h in range(N_HEAD)], axis=0)
        v3 = jnp.stack([v[:, h * dh:(h + 1) * dh] for h in range(N_HEAD)], axis=0)
        sc = jnp.einsum('hqd,hkd->hqk', q3, k3,
                        preferred_element_type=jnp.float32)              # (H, N, N)
        a = _softmax_rows(sc + mask_add[None, :, :], approx=True)
        ctx3 = jnp.einsum('hqk,hkd->hqd', a, v3,
                          preferred_element_type=jnp.float32)            # (H, N, dh)
        ctx = jnp.concatenate([ctx3[h] for h in range(N_HEAD)], axis=-1)  # (N, D)

        attn_out = jnp.dot(ctx, ow, preferred_element_type=jnp.float32) + ob
        y = _layernorm(seq + attn_out, g1, b1)               # norm1(x + attn)
        ff_h = jnp.maximum(
            jnp.dot(y, f1w, preferred_element_type=jnp.float32) + f1b, 0.0)
        ff = lax.dot_general(ff_h, f2wT, (((1,), (1,)), ((), ())),
                             preferred_element_type=jnp.float32) + f2b
        seq = _layernorm(y + ff, g2, b2)                     # norm2(x + ff)

    # ---- output head on last token (last B rows in time-major layout) ----
    last = seq[N - B:N, :]                                    # (B, D)
    h1 = jnp.maximum(jnp.dot(last, out1_w, preferred_element_type=jnp.float32) + out1_b, 0.0)
    logits = jnp.dot(h1, out2_w, preferred_element_type=jnp.float32) + out2_b
    o_ref[...] = _softmax_rows(logits, approx=False)          # exact rcp for final softmax


# ---------------- parameter construction (deterministic, logical layout) ----------------
def make_params(key):
    def nrm(k, shape, scale=0.05):
        return scale * jax.random.normal(k, shape, jnp.float32)

    keys = iter(jax.random.split(key, 64))
    p = []
    # embedding Linear(2, 64): stored transposed (in, out)
    p += [nrm(next(keys), (2, D_MODEL)), nrm(next(keys), (1, D_MODEL))]
    # LSTM(64, 64): w_ih (in, 4H), w_hh (hid, 4H), biases (1, 4H); gate order i,f,g,o
    p += [nrm(next(keys), (D_MODEL, 4 * D_MODEL)),
          nrm(next(keys), (D_MODEL, 4 * D_MODEL)),
          nrm(next(keys), (1, 4 * D_MODEL)),
          nrm(next(keys), (1, 4 * D_MODEL))]
    # transformer layers
    for _ in range(N_LAYERS):
        p += [nrm(next(keys), (D_MODEL, 3 * D_MODEL)),   # in_proj (q|k|v), transposed
              nrm(next(keys), (1, 3 * D_MODEL)),
              nrm(next(keys), (D_MODEL, D_MODEL)),       # out_proj
              nrm(next(keys), (1, D_MODEL)),
              jnp.ones((1, D_MODEL), jnp.float32),       # ln1 gamma
              jnp.zeros((1, D_MODEL), jnp.float32),      # ln1 beta
              nrm(next(keys), (D_MODEL, FF_DIM)),        # linear1
              nrm(next(keys), (1, FF_DIM)),
              nrm(next(keys), (FF_DIM, D_MODEL)),        # linear2
              nrm(next(keys), (1, D_MODEL)),
              jnp.ones((1, D_MODEL), jnp.float32),       # ln2 gamma
              jnp.zeros((1, D_MODEL), jnp.float32)]      # ln2 beta
    # output head: Linear(64, 32) -> ReLU -> Linear(32, 4) -> Softmax
    p += [nrm(next(keys), (D_MODEL, HEAD_HID)), nrm(next(keys), (1, HEAD_HID)),
          nrm(next(keys), (HEAD_HID, N_ACTIONS)), nrm(next(keys), (1, N_ACTIONS))]
    return p


# ---------------- pack logical params into two dense VMEM slabs ----------------
def pack_params(params, B, S):
    D = D_MODEL
    N = S * B
    f = lambda a: np.asarray(a, np.float32)

    emb_w, emb_b, w_ih, w_hh, b_ih, b_hh = params[0:6]
    lps = [params[6 + 12 * l: 6 + 12 * (l + 1)] for l in range(N_LAYERS)]
    out1_w, out1_b, out2_w, out2_b = params[6 + 12 * N_LAYERS: 6 + 12 * N_LAYERS + 4]

    # sigmoid(z) = 0.5*tanh(z/2) + 0.5  ->  fold 0.5 into i/f/o gate columns (NOT g)
    gate_scale = np.ones((4 * D,), np.float32)
    gate_scale[0:2 * D] = 0.5        # i, f
    gate_scale[3 * D:4 * D] = 0.5    # o

    par = np.zeros((ROW_MASK + N, 4 * D), np.float32)
    par[ROW_WIH:ROW_WIH + D, :] = f(w_ih) * gate_scale
    par[ROW_WHH:ROW_WHH + D, :] = f(w_hh) * gate_scale
    par[ROW_EMBW, 0:D] = f(emb_w)[0]
    par[ROW_EMBW, 2 * D:3 * D] = f(emb_w)[1]
    par[ROW_BALL, :] = (f(b_ih)[0] + f(b_hh)[0]) * gate_scale
    par[ROW_EMBB, 0:D] = f(emb_b)[0]
    par[ROW_EMBB, 2 * D:2 * D + HEAD_HID] = f(out1_b)[0]
    par[ROW_OUT2B, 0:N_ACTIONS] = f(out2_b)[0]
    par[ROW_HEADW:ROW_HEADW + D, 0:HEAD_HID] = f(out1_w)
    par[ROW_HEADW:ROW_HEADW + HEAD_HID, 2 * D:2 * D + N_ACTIONS] = f(out2_w)

    # additive batch-block attention mask (time-major rows: r = t*B + b)
    r = np.arange(N)
    same = (r[:, None] % B) == (r[None, :] % B)
    par[ROW_MASK:ROW_MASK + N, 0:N] = np.where(same, 0.0, NEG_INF).astype(np.float32)

    # dense per-layer weight slab (3D rows x 4D cols), 128-aligned lane offsets
    attn_scale = 1.0 / math.sqrt(HEAD_DIM)
    layers_w = np.zeros((N_LAYERS, 3 * D, 4 * D), np.float32)
    for l, (qkv_w, qkv_b, ow, ob, g1, b1, f1w, f1b, f2w, f2b, g2, b2) in enumerate(lps):
        qw = f(qkv_w).copy()
        qb = f(qkv_b)[0].copy()
        qw[:, 0:D] *= attn_scale          # fold 1/sqrt(dh) into q projection
        qb[0:D] *= attn_scale
        layers_w[l, 0:D, 0:3 * D] = qw
        layers_w[l, D:2 * D, 0:D] = f(ow)
        layers_w[l, D:2 * D, 2 * D:2 * D + FF_DIM] = f(f1w)
        layers_w[l, 2 * D:3 * D, 0:FF_DIM] = f(f2w).T        # stored transposed (D, FF)
        base = ROW_LYRB + 8 * l
        par[base, 0:3 * D] = qb
        par[base + 1, 0:D] = f(ob)[0]
        par[base + 2, 0:FF_DIM] = f(f1b)[0]
        par[base + 3, 0:D] = f(f2b)[0]
        par[base + 4, 0:D] = f(g1)[0]
        par[base + 5, 0:D] = f(b1)[0]
        par[base + 6, 0:D] = f(g2)[0]
        par[base + 7, 0:D] = f(b2)[0]

    return jnp.asarray(par), jnp.asarray(layers_w)


def maze_transformer_lstm(x, packed):
    B, S, din = x.shape
    # layout plumbing only: present the input time-major so the kernel stays fully 2-D
    x_tm = jnp.transpose(x, (1, 0, 2)).reshape(S * B, din)
    par, layers_w = packed
    return pl.pallas_call(
        maze_kernel,
        out_shape=jax.ShapeDtypeStruct((B, N_ACTIONS), jnp.float32),
        in_specs=[pl.BlockSpec(memory_space=pltpu.MemorySpace.VMEM)] * 3,
        out_specs=pl.BlockSpec(memory_space=pltpu.MemorySpace.VMEM),
    )(x_tm, par, layers_w)


# ---------------- pure-JAX reference (same math, unpacked params) ----------------
def reference(x, params):
    B, S, DIN = x.shape
    D, H, dh = D_MODEL, N_HEAD, HEAD_DIM
    emb_w, emb_b, w_ih, w_hh, b_ih, b_hh = params[0:6]
    lps = [params[6 + 12 * l: 6 + 12 * (l + 1)] for l in range(N_LAYERS)]
    out1_w, out1_b, out2_w, out2_b = params[6 + 12 * N_LAYERS:6 + 12 * N_LAYERS + 4]

    emb = (x.reshape(B * S, DIN) @ emb_w + emb_b).reshape(B, S, D)
    h_t = jnp.zeros((B, D)); c_t = jnp.zeros((B, D)); outs = []
    for t in range(S):
        g = emb[:, t, :] @ w_ih + b_ih + h_t @ w_hh + b_hh
        i_g = jax.nn.sigmoid(g[:, :D]); f_g = jax.nn.sigmoid(g[:, D:2 * D])
        g_g = jnp.tanh(g[:, 2 * D:3 * D]); o_g = jax.nn.sigmoid(g[:, 3 * D:])
        c_t = f_g * c_t + i_g * g_g; h_t = o_g * jnp.tanh(c_t); outs.append(h_t)
    seq = jnp.stack(outs, axis=1)

    def ln(xx, g, b):
        mu = xx.mean(-1, keepdims=True); var = ((xx - mu) ** 2).mean(-1, keepdims=True)
        return (xx - mu) / jnp.sqrt(var + EPS) * g + b

    for (qkv_w, qkv_b, ow, ob, g1, b1, f1w, f1b, f2w, f2b, g2, b2) in lps:
        x2 = seq.reshape(B * S, D)
        qkv = x2 @ qkv_w + qkv_b
        q = qkv[:, :D].reshape(B, S, H, dh); k = qkv[:, D:2 * D].reshape(B, S, H, dh)
        v = qkv[:, 2 * D:].reshape(B, S, H, dh)
        sc = jnp.einsum('bqhd,bkhd->bhqk', q, k) / math.sqrt(dh)
        a = jax.nn.softmax(sc, axis=-1)
        ctx = jnp.einsum('bhqk,bkhd->bqhd', a, v).reshape(B * S, D)
        y = ln(x2 + ctx @ ow + ob, g1, b1)
        ff = jnp.maximum(y @ f1w + f1b, 0.0) @ f2w + f2b
        seq = ln(y + ff, g2, b2).reshape(B, S, D)

    last = seq[:, -1, :]
    h1 = jnp.maximum(last @ out1_w + out1_b, 0.0)
    return jax.nn.softmax(h1 @ out2_w + out2_b, axis=-1)


if __name__ == "__main__":
    key = jax.random.PRNGKey(0)
    k_x, k_p = jax.random.split(key)
    B, S = 2, 8
    x = jax.random.uniform(k_x, (B, S, 2), jnp.float32)   # maze_state: (batch, seq, 2)
    params = make_params(k_p)
    packed = pack_params(params, B, S)

    out = maze_transformer_lstm(x, packed)
    out = jax.block_until_ready(out)

    ref = reference(x, params)
    assert out.shape == (B, 4)
    assert bool(jnp.all(jnp.isfinite(out)))
    assert bool(jnp.allclose(out, ref, rtol=1e-3, atol=1e-4)), (out, ref)
    print("KERNEL_OK")
</pallas_src>

<mosaic_0001>
module attributes {stable_mosaic.version = 11 : i64} {
  func.func @maze_kernel(%arg0: memref<16x2xf32, #tpu.memory_space<vmem>>, %arg1: memref<232x256xf32, #tpu.memory_space<vmem>>, %arg2: memref<2x192x256xf32, #tpu.memory_space<vmem>>, %arg3: memref<2x4xf32, #tpu.memory_space<vmem>>) attributes {dimension_semantics = [], scalar_prefetch = 0 : i64, scratch_operands = 0 : i64, tpu.core_type = #tpu.core_type<tc>} {
    %c0 = arith.constant 0 : index
    %c0_0 = arith.constant 0 : index
    %0 = vector.load %arg1[%c0, %c0_0] : memref<232x256xf32, #tpu.memory_space<vmem>>, vector<64x256xf32>
    %c64 = arith.constant 64 : index
    %c0_1 = arith.constant 0 : index
    %1 = vector.load %arg1[%c64, %c0_1] : memref<232x256xf32, #tpu.memory_space<vmem>>, vector<64x256xf32>
    %c128 = arith.constant 128 : index
    %c0_2 = arith.constant 0 : index
    %2 = vector.load %arg1[%c128, %c0_2] : memref<232x256xf32, #tpu.memory_space<vmem>>, vector<1x64xf32>
    %c128_3 = arith.constant 128 : index
    %c128_4 = arith.constant 128 : index
    %3 = vector.load %arg1[%c128_3, %c128_4] : memref<232x256xf32, #tpu.memory_space<vmem>>, vector<1x64xf32>
    %c130 = arith.constant 130 : index
    %c0_5 = arith.constant 0 : index
    %4 = vector.load %arg1[%c130, %c0_5] : memref<232x256xf32, #tpu.memory_space<vmem>>, vector<1x64xf32>
    %c129 = arith.constant 129 : index
    %c0_6 = arith.constant 0 : index
    %5 = vector.load %arg1[%c129, %c0_6] : memref<232x256xf32, #tpu.memory_space<vmem>>, vector<1x256xf32>
    %c130_7 = arith.constant 130 : index
    %c128_8 = arith.constant 128 : index
    %6 = vector.load %arg1[%c130_7, %c128_8] : memref<232x256xf32, #tpu.memory_space<vmem>>, vector<1x32xf32>
    %c131 = arith.constant 131 : index
    %c0_9 = arith.constant 0 : index
    %7 = vector.load %arg1[%c131, %c0_9] : memref<232x256xf32, #tpu.memory_space<vmem>>, vector<1x4xf32>
    %c152 = arith.constant 152 : index
    %c0_10 = arith.constant 0 : index
    %8 = vector.load %arg1[%c152, %c0_10] : memref<232x256xf32, #tpu.memory_space<vmem>>, vector<64x32xf32>
    %c152_11 = arith.constant 152 : index
    %c128_12 = arith.constant 128 : index
    %9 = vector.load %arg1[%c152_11, %c128_12] : memref<232x256xf32, #tpu.memory_space<vmem>>, vector<32x4xf32>
    %c216 = arith.constant 216 : index
    %c0_13 = arith.constant 0 : index
    %10 = vector.load %arg1[%c216, %c0_13] : memref<232x256xf32, #tpu.memory_space<vmem>>, vector<16x16xf32>
    %c0_14 = arith.constant 0 : index
    %c0_15 = arith.constant 0 : index
    %11 = vector.load %arg0[%c0_14, %c0_15] : memref<16x2xf32, #tpu.memory_space<vmem>>, vector<16x2xf32>
    %12 = vector.extract_strided_slice %11 {offsets = [0, 0], sizes = [16, 1], strides = [1, 1]} : vector<16x2xf32> to vector<16x1xf32>
    %13 = vector.broadcast %12 : vector<16x1xf32> to vector<16x64xf32>
    %14 = vector.broadcast %2 : vector<1x64xf32> to vector<16x64xf32>
    %15 = arith.mulf %13, %14 : vector<16x64xf32>
    %16 = vector.extract_strided_slice %11 {offsets = [0, 1], sizes = [16, 1], strides = [1, 1]} : vector<16x2xf32> to vector<16x1xf32>
    %17 = vector.broadcast %16 : vector<16x1xf32> to vector<16x64xf32>
    %18 = vector.broadcast %3 : vector<1x64xf32> to vector<16x64xf32>
    %19 = arith.mulf %17, %18 : vector<16x64xf32>
    %20 = arith.addf %15, %19 : vector<16x64xf32>
    %21 = vector.broadcast %4 : vector<1x64xf32> to vector<16x64xf32>
    %22 = arith.addf %20, %21 : vector<16x64xf32>
    %cst = arith.constant dense<0.000000e+00> : vector<16x256xf32>
    %23 = tpu.matmul %22, %0, %cst {dimension_numbers = #tpu.dot_dimension_numbers<[1], [0], [0], [1], [0, 0, 1, 1], [], []>} : vector<16x64xf32>, vector<64x256xf32>, vector<16x256xf32> -> vector<16x256xf32>
    %24 = vector.broadcast %5 : vector<1x256xf32> to vector<16x256xf32>
    %25 = arith.addf %23, %24 : vector<16x256xf32>
    %cst_16 = arith.constant 0.000000e+00 : f32
    %26 = vector.broadcast %cst_16 : f32 to vector<2x64xf32>
    %cst_17 = arith.constant 0.000000e+00 : f32
    %27 = vector.broadcast %cst_17 : f32 to vector<2x64xf32>
    %28 = vector.extract_strided_slice %25 {offsets = [0, 0], sizes = [2, 256], strides = [1, 1]} : vector<16x256xf32> to vector<2x256xf32>
    %cst_18 = arith.constant dense<0.000000e+00> : vector<2x256xf32>
    %29 = tpu.matmul %26, %1, %cst_18 {dimension_numbers = #tpu.dot_dimension_numbers<[1], [0], [0], [1], [0, 0, 1, 1], [], []>} : vector<2x64xf32>, vector<64x256xf32>, vector<2x256xf32> -> vector<2x256xf32>
    %30 = arith.addf %28, %29 : vector<2x256xf32>
    %31 = math.tanh %30 : vector<2x256xf32>
    %32 = vector.extract_strided_slice %31 {offsets = [0, 0], sizes = [2, 64], strides = [1, 1]} : vector<2x256xf32> to vector<2x64xf32>
    %cst_19 = arith.constant 5.000000e-01 : f32
    %33 = vector.broadcast %cst_19 : f32 to vector<2x64xf32>
    %34 = arith.mulf %33, %32 : vector<2x64xf32>
    %cst_20 = arith.constant 5.000000e-01 : f32
    %35 = vector.broadcast %cst_20 : f32 to vector<2x64xf32>
    %36 = arith.addf %34, %35 : vector<2x64xf32>
    %37 = vector.extract_strided_slice %31 {offsets = [0, 64], sizes = [2, 64], strides = [1, 1]} : vector<2x256xf32> to vector<2x64xf32>
    %cst_21 = arith.constant 5.000000e-01 : f32
    %38 = vector.broadcast %cst_21 : f32 to vector<2x64xf32>
    %39 = arith.mulf %38, %37 : vector<2x64xf32>
    %cst_22 = arith.constant 5.000000e-01 : f32
    %40 = vector.broadcast %cst_22 : f32 to vector<2x64xf32>
    %41 = arith.addf %39, %40 : vector<2x64xf32>
    %42 = vector.extract_strided_slice %31 {offsets = [0, 128], sizes = [2, 64], strides = [1, 1]} : vector<2x256xf32> to vector<2x64xf32>
    %43 = vector.extract_strided_slice %31 {offsets = [0, 192], sizes = [2, 64], strides = [1, 1]} : vector<2x256xf32> to vector<2x64xf32>
    %cst_23 = arith.constant 5.000000e-01 : f32
    %44 = vector.broadcast %cst_23 : f32 to vector<2x64xf32>
    %45 = arith.mulf %44, %43 : vector<2x64xf32>
    %cst_24 = arith.constant 5.000000e-01 : f32
    %46 = vector.broadcast %cst_24 : f32 to vector<2x64xf32>
    %47 = arith.addf %45, %46 : vector<2x64xf32>
    %48 = arith.mulf %41, %27 : vector<2x64xf32>
    %49 = arith.mulf %36, %42 : vector<2x64xf32>
    %50 = arith.addf %48, %49 : vector<2x64xf32>
    %51 = math.tanh %50 : vector<2x64xf32>
    %52 = arith.mulf %47, %51 : vector<2x64xf32>
    %53 = vector.extract_strided_slice %25 {offsets = [2, 0], sizes = [2, 256], strides = [1, 1]} : vector<16x256xf32> to vector<2x256xf32>
    %cst_25 = arith.constant dense<0.000000e+00> : vector<2x256xf32>
    %54 = tpu.matmul %52, %1, %cst_25 {dimension_numbers = #tpu.dot_dimension_numbers<[1], [0], [0], [1], [0, 0, 1, 1], [], []>} : vector<2x64xf32>, vector<64x256xf32>, vector<2x256xf32> -> vector<2x256xf32>
    %55 = arith.addf %53, %54 : vector<2x256xf32>
    %56 = math.tanh %55 : vector<2x256xf32>
    %57 = vector.extract_strided_slice %56 {offsets = [0, 0], sizes = [2, 64], strides = [1, 1]} : vector<2x256xf32> to vector<2x64xf32>
    %cst_26 = arith.constant 5.000000e-01 : f32
    %58 = vector.broadcast %cst_26 : f32 to vector<2x64xf32>
    %59 = arith.mulf %58, %57 : vector<2x64xf32>
    %cst_27 = arith.constant 5.000000e-01 : f32
    %60 = vector.broadcast %cst_27 : f32 to vector<2x64xf32>
    %61 = arith.addf %59, %60 : vector<2x64xf32>
    %62 = vector.extract_strided_slice %56 {offsets = [0, 64], sizes = [2, 64], strides = [1, 1]} : vector<2x256xf32> to vector<2x64xf32>
    %cst_28 = arith.constant 5.000000e-01 : f32
    %63 = vector.broadcast %cst_28 : f32 to vector<2x64xf32>
    %64 = arith.mulf %63, %62 : vector<2x64xf32>
    %cst_29 = arith.constant 5.000000e-01 : f32
    %65 = vector.broadcast %cst_29 : f32 to vector<2x64xf32>
    %66 = arith.addf %64, %65 : vector<2x64xf32>
    %67 = vector.extract_strided_slice %56 {offsets = [0, 128], sizes = [2, 64], strides = [1, 1]} : vector<2x256xf32> to vector<2x64xf32>
    %68 = vector.extract_strided_slice %56 {offsets = [0, 192], sizes = [2, 64], strides = [1, 1]} : vector<2x256xf32> to vector<2x64xf32>
    %cst_30 = arith.constant 5.000000e-01 : f32
    %69 = vector.broadcast %cst_30 : f32 to vector<2x64xf32>
    %70 = arith.mulf %69, %68 : vector<2x64xf32>
    %cst_31 = arith.constant 5.000000e-01 : f32
    %71 = vector.broadcast %cst_31 : f32 to vector<2x64xf32>
    %72 = arith.addf %70, %71 : vector<2x64xf32>
    %73 = arith.mulf %66, %50 : vector<2x64xf32>
    %74 = arith.mulf %61, %67 : vector<2x64xf32>
    %75 = arith.addf %73, %74 : vector<2x64xf32>
    %76 = math.tanh %75 : vector<2x64xf32>
    %77 = arith.mulf %72, %76 : vector<2x64xf32>
    %78 = vector.extract_strided_slice %25 {offsets = [4, 0], sizes = [2, 256], strides = [1, 1]} : vector<16x256xf32> to vector<2x256xf32>
    %cst_32 = arith.constant dense<0.000000e+00> : vector<2x256xf32>
    %79 = tpu.matmul %77, %1, %cst_32 {dimension_numbers = #tpu.dot_dimension_numbers<[1], [0], [0], [1], [0, 0, 1, 1], [], []>} : vector<2x64xf32>, vector<64x256xf32>, vector<2x256xf32> -> vector<2x256xf32>
    %80 = arith.addf %78, %79 : vector<2x256xf32>
    %81 = math.tanh %80 : vector<2x256xf32>
    %82 = vector.extract_strided_slice %81 {offsets = [0, 0], sizes = [2, 64], strides = [1, 1]} : vector<2x256xf32> to vector<2x64xf32>
    %cst_33 = arith.constant 5.000000e-01 : f32
    %83 = vector.broadcast %cst_33 : f32 to vector<2x64xf32>
    %84 = arith.mulf %83, %82 : vector<2x64xf32>
    %cst_34 = arith.constant 5.000000e-01 : f32
    %85 = vector.broadcast %cst_34 : f32 to vector<2x64xf32>
    %86 = arith.addf %84, %85 : vector<2x64xf32>
    %87 = vector.extract_strided_slice %81 {offsets = [0, 64], sizes = [2, 64], strides = [1, 1]} : vector<2x256xf32> to vector<2x64xf32>
    %cst_35 = arith.constant 5.000000e-01 : f32
    %88 = vector.broadcast %cst_35 : f32 to vector<2x64xf32>
    %89 = arith.mulf %88, %87 : vector<2x64xf32>
    %cst_36 = arith.constant 5.000000e-01 : f32
    %90 = vector.broadcast %cst_36 : f32 to vector<2x64xf32>
    %91 = arith.addf %89, %90 : vector<2x64xf32>
    %92 = vector.extract_strided_slice %81 {offsets = [0, 128], sizes = [2, 64], strides = [1, 1]} : vector<2x256xf32> to vector<2x64xf32>
    %93 = vector.extract_strided_slice %81 {offsets = [0, 192], sizes = [2, 64], strides = [1, 1]} : vector<2x256xf32> to vector<2x64xf32>
    %cst_37 = arith.constant 5.000000e-01 : f32
    %94 = vector.broadcast %cst_37 : f32 to vector<2x64xf32>
    %95 = arith.mulf %94, %93 : vector<2x64xf32>
    %cst_38 = arith.constant 5.000000e-01 : f32
    %96 = vector.broadcast %cst_38 : f32 to vector<2x64xf32>
    %97 = arith.addf %95, %96 : vector<2x64xf32>
    %98 = arith.mulf %91, %75 : vector<2x64xf32>
    %99 = arith.mulf %86, %92 : vector<2x64xf32>
    %100 = arith.addf %98, %99 : vector<2x64xf32>
    %101 = math.tanh %100 : vector<2x64xf32>
    %102 = arith.mulf %97, %101 : vector<2x64xf32>
    %103 = vector.extract_strided_slice %25 {offsets = [6, 0], sizes = [2, 256], strides = [1, 1]} : vector<16x256xf32> to vector<2x256xf32>
    %cst_39 = arith.constant dense<0.000000e+00> : vector<2x256xf32>
    %104 = tpu.matmul %102, %1, %cst_39 {dimension_numbers = #tpu.dot_dimension_numbers<[1], [0], [0], [1], [0, 0, 1, 1], [], []>} : vector<2x64xf32>, vector<64x256xf32>, vector<2x256xf32> -> vector<2x256xf32>
    %105 = arith.addf %103, %104 : vector<2x256xf32>
    %106 = math.tanh %105 : vector<2x256xf32>
    %107 = vector.extract_strided_slice %106 {offsets = [0, 0], sizes = [2, 64], strides = [1, 1]} : vector<2x256xf32> to vector<2x64xf32>
    %cst_40 = arith.constant 5.000000e-01 : f32
    %108 = vector.broadcast %cst_40 : f32 to vector<2x64xf32>
    %109 = arith.mulf %108, %107 : vector<2x64xf32>
    %cst_41 = arith.constant 5.000000e-01 : f32
    %110 = vector.broadcast %cst_41 : f32 to vector<2x64xf32>
    %111 = arith.addf %109, %110 : vector<2x64xf32>
    %112 = vector.extract_strided_slice %106 {offsets = [0, 64], sizes = [2, 64], strides = [1, 1]} : vector<2x256xf32> to vector<2x64xf32>
    %cst_42 = arith.constant 5.000000e-01 : f32
    %113 = vector.broadcast %cst_42 : f32 to vector<2x64xf32>
    %114 = arith.mulf %113, %112 : vector<2x64xf32>
    %cst_43 = arith.constant 5.000000e-01 : f32
    %115 = vector.broadcast %cst_43 : f32 to vector<2x64xf32>
    %116 = arith.addf %114, %115 : vector<2x64xf32>
    %117 = vector.extract_strided_slice %106 {offsets = [0, 128], sizes = [2, 64], strides = [1, 1]} : vector<2x256xf32> to vector<2x64xf32>
    %118 = vector.extract_strided_slice %106 {offsets = [0, 192], sizes = [2, 64], strides = [1, 1]} : vector<2x256xf32> to vector<2x64xf32>
    %cst_44 = arith.constant 5.000000e-01 : f32
    %119 = vector.broadcast %cst_44 : f32 to vector<2x64xf32>
    %120 = arith.mulf %119, %118 : vector<2x64xf32>
    %cst_45 = arith.constant 5.000000e-01 : f32
    %121 = vector.broadcast %cst_45 : f32 to vector<2x64xf32>
    %122 = arith.addf %120, %121 : vector<2x64xf32>
    %123 = arith.mulf %116, %100 : vector<2x64xf32>
    %124 = arith.mulf %111, %117 : vector<2x64xf32>
    %125 = arith.addf %123, %124 : vector<2x64xf32>
    %126 = math.tanh %125 : vector<2x64xf32>
    %127 = arith.mulf %122, %126 : vector<2x64xf32>
    %128 = vector.extract_strided_slice %25 {offsets = [8, 0], sizes = [2, 256], strides = [1, 1]} : vector<16x256xf32> to vector<2x256xf32>
    %cst_46 = arith.constant dense<0.000000e+00> : vector<2x256xf32>
    %129 = tpu.matmul %127, %1, %cst_46 {dimension_numbers = #tpu.dot_dimension_numbers<[1], [0], [0], [1], [0, 0, 1, 1], [], []>} : vector<2x64xf32>, vector<64x256xf32>, vector<2x256xf32> -> vector<2x256xf32>
    %130 = arith.addf %128, %129 : vector<2x256xf32>
    %131 = math.tanh %130 : vector<2x256xf32>
    %132 = vector.extract_strided_slice %131 {offsets = [0, 0], sizes = [2, 64], strides = [1, 1]} : vector<2x256xf32> to vector<2x64xf32>
    %cst_47 = arith.constant 5.000000e-01 : f32
    %133 = vector.broadcast %cst_47 : f32 to vector<2x64xf32>
    %134 = arith.mulf %133, %132 : vector<2x64xf32>
    %cst_48 = arith.constant 5.000000e-01 : f32
    %135 = vector.broadcast %cst_48 : f32 to vector<2x64xf32>
    %136 = arith.addf %134, %135 : vector<2x64xf32>
    %137 = vector.extract_strided_slice %131 {offsets = [0, 64], sizes = [2, 64], strides = [1, 1]} : vector<2x256xf32> to vector<2x64xf32>
    %cst_49 = arith.constant 5.000000e-01 : f32
    %138 = vector.broadcast %cst_49 : f32 to vector<2x64xf32>
    %139 = arith.mulf %138, %137 : vector<2x64xf32>
    %cst_50 = arith.constant 5.000000e-01 : f32
    %140 = vector.broadcast %cst_50 : f32 to vector<2x64xf32>
    %141 = arith.addf %139, %140 : vector<2x64xf32>
    %142 = vector.extract_strided_slice %131 {offsets = [0, 128], sizes = [2, 64], strides = [1, 1]} : vector<2x256xf32> to vector<2x64xf32>
    %143 = vector.extract_strided_slice %131 {offsets = [0, 192], sizes = [2, 64], strides = [1, 1]} : vector<2x256xf32> to vector<2x64xf32>
    %cst_51 = arith.constant 5.000000e-01 : f32
    %144 = vector.broadcast %cst_51 : f32 to vector<2x64xf32>
    %145 = arith.mulf %144, %143 : vector<2x64xf32>
    %cst_52 = arith.constant 5.000000e-01 : f32
    %146 = vector.broadcast %cst_52 : f32 to vector<2x64xf32>
    %147 = arith.addf %145, %146 : vector<2x64xf32>
    %148 = arith.mulf %141, %125 : vector<2x64xf32>
    %149 = arith.mulf %136, %142 : vector<2x64xf32>
    %150 = arith.addf %148, %149 : vector<2x64xf32>
    %151 = math.tanh %150 : vector<2x64xf32>
    %152 = arith.mulf %147, %151 : vector<2x64xf32>
    %153 = vector.extract_strided_slice %25 {offsets = [10, 0], sizes = [2, 256], strides = [1, 1]} : vector<16x256xf32> to vector<2x256xf32>
    %cst_53 = arith.constant dense<0.000000e+00> : vector<2x256xf32>
    %154 = tpu.matmul %152, %1, %cst_53 {dimension_numbers = #tpu.dot_dimension_numbers<[1], [0], [0], [1], [0, 0, 1, 1], [], []>} : vector<2x64xf32>, vector<64x256xf32>, vector<2x256xf32> -> vector<2x256xf32>
    %155 = arith.addf %153, %154 : vector<2x256xf32>
    %156 = math.tanh %155 : vector<2x256xf32>
    %157 = vector.extract_strided_slice %156 {offsets = [0, 0], sizes = [2, 64], strides = [1, 1]} : vector<2x256xf32> to vector<2x64xf32>
    %cst_54 = arith.constant 5.000000e-01 : f32
    %158 = vector.broadcast %cst_54 : f32 to vector<2x64xf32>
    %159 = arith.mulf %158, %157 : vector<2x64xf32>
    %cst_55 = arith.constant 5.000000e-01 : f32
    %160 = vector.broadcast %cst_55 : f32 to vector<2x64xf32>
    %161 = arith.addf %159, %160 : vector<2x64xf32>
    %162 = vector.extract_strided_slice %156 {offsets = [0, 64], sizes = [2, 64], strides = [1, 1]} : vector<2x256xf32> to vector<2x64xf32>
    %cst_56 = arith.constant 5.000000e-01 : f32
    %163 = vector.broadcast %cst_56 : f32 to vector<2x64xf32>
    %164 = arith.mulf %163, %162 : vector<2x64xf32>
    %cst_57 = arith.constant 5.000000e-01 : f32
    %165 = vector.broadcast %cst_57 : f32 to vector<2x64xf32>
    %166 = arith.addf %164, %165 : vector<2x64xf32>
    %167 = vector.extract_strided_slice %156 {offsets = [0, 128], sizes = [2, 64], strides = [1, 1]} : vector<2x256xf32> to vector<2x64xf32>
    %168 = vector.extract_strided_slice %156 {offsets = [0, 192], sizes = [2, 64], strides = [1, 1]} : vector<2x256xf32> to vector<2x64xf32>
    %cst_58 = arith.constant 5.000000e-01 : f32
    %169 = vector.broadcast %cst_58 : f32 to vector<2x64xf32>
    %170 = arith.mulf %169, %168 : vector<2x64xf32>
    %cst_59 = arith.constant 5.000000e-01 : f32
    %171 = vector.broadcast %cst_59 : f32 to vector<2x64xf32>
    %172 = arith.addf %170, %171 : vector<2x64xf32>
    %173 = arith.mulf %166, %150 : vector<2x64xf32>
    %174 = arith.mulf %161, %167 : vector<2x64xf32>
    %175 = arith.addf %173, %174 : vector<2x64xf32>
    %176 = math.tanh %175 : vector<2x64xf32>
    %177 = arith.mulf %172, %176 : vector<2x64xf32>
    %178 = vector.extract_strided_slice %25 {offsets = [12, 0], sizes = [2, 256], strides = [1, 1]} : vector<16x256xf32> to vector<2x256xf32>
    %cst_60 = arith.constant dense<0.000000e+00> : vector<2x256xf32>
    %179 = tpu.matmul %177, %1, %cst_60 {dimension_numbers = #tpu.dot_dimension_numbers<[1], [0], [0], [1], [0, 0, 1, 1], [], []>} : vector<2x64xf32>, vector<64x256xf32>, vector<2x256xf32> -> vector<2x256xf32>
    %180 = arith.addf %178, %179 : vector<2x256xf32>
    %181 = math.tanh %180 : vector<2x256xf32>
    %182 = vector.extract_strided_slice %181 {offsets = [0, 0], sizes = [2, 64], strides = [1, 1]} : vector<2x256xf32> to vector<2x64xf32>
    %cst_61 = arith.constant 5.000000e-01 : f32
    %183 = vector.broadcast %cst_61 : f32 to vector<2x64xf32>
    %184 = arith.mulf %183, %182 : vector<2x64xf32>
    %cst_62 = arith.constant 5.000000e-01 : f32
    %185 = vector.broadcast %cst_62 : f32 to vector<2x64xf32>
    %186 = arith.addf %184, %185 : vector<2x64xf32>
    %187 = vector.extract_strided_slice %181 {offsets = [0, 64], sizes = [2, 64], strides = [1, 1]} : vector<2x256xf32> to vector<2x64xf32>
    %cst_63 = arith.constant 5.000000e-01 : f32
    %188 = vector.broadcast %cst_63 : f32 to vector<2x64xf32>
    %189 = arith.mulf %188, %187 : vector<2x64xf32>
    %cst_64 = arith.constant 5.000000e-01 : f32
    %190 = vector.broadcast %cst_64 : f32 to vector<2x64xf32>
    %191 = arith.addf %189, %190 : vector<2x64xf32>
    %192 = vector.extract_strided_slice %181 {offsets = [0, 128], sizes = [2, 64], strides = [1, 1]} : vector<2x256xf32> to vector<2x64xf32>
    %193 = vector.extract_strided_slice %181 {offsets = [0, 192], sizes = [2, 64], strides = [1, 1]} : vector<2x256xf32> to vector<2x64xf32>
    %cst_65 = arith.constant 5.000000e-01 : f32
    %194 = vector.broadcast %cst_65 : f32 to vector<2x64xf32>
    %195 = arith.mulf %194, %193 : vector<2x64xf32>
    %cst_66 = arith.constant 5.000000e-01 : f32
    %196 = vector.broadcast %cst_66 : f32 to vector<2x64xf32>
    %197 = arith.addf %195, %196 : vector<2x64xf32>
    %198 = arith.mulf %191, %175 : vector<2x64xf32>
    %199 = arith.mulf %186, %192 : vector<2x64xf32>
    %200 = arith.addf %198, %199 : vector<2x64xf32>
    %201 = math.tanh %200 : vector<2x64xf32>
    %202 = arith.mulf %197, %201 : vector<2x64xf32>
    %203 = vector.extract_strided_slice %25 {offsets = [14, 0], sizes = [2, 256], strides = [1, 1]} : vector<16x256xf32> to vector<2x256xf32>
    %cst_67 = arith.constant dense<0.000000e+00> : vector<2x256xf32>
    %204 = tpu.matmul %202, %1, %cst_67 {dimension_numbers = #tpu.dot_dimension_numbers<[1], [0], [0], [1], [0, 0, 1, 1], [], []>} : vector<2x64xf32>, vector<64x256xf32>, vector<2x256xf32> -> vector<2x256xf32>
    %205 = arith.addf %203, %204 : vector<2x256xf32>
    %206 = math.tanh %205 : vector<2x256xf32>
    %207 = vector.extract_strided_slice %206 {offsets = [0, 0], sizes = [2, 64], strides = [1, 1]} : vector<2x256xf32> to vector<2x64xf32>
    %cst_68 = arith.constant 5.000000e-01 : f32
    %208 = vector.broadcast %cst_68 : f32 to vector<2x64xf32>
    %209 = arith.mulf %208, %207 : vector<2x64xf32>
    %cst_69 = arith.constant 5.000000e-01 : f32
    %210 = vector.broadcast %cst_69 : f32 to vector<2x64xf32>
    %211 = arith.addf %209, %210 : vector<2x64xf32>
    %212 = vector.extract_strided_slice %206 {offsets = [0, 64], sizes = [2, 64], strides = [1, 1]} : vector<2x256xf32> to vector<2x64xf32>
    %cst_70 = arith.constant 5.000000e-01 : f32
    %213 = vector.broadcast %cst_70 : f32 to vector<2x64xf32>
    %214 = arith.mulf %213, %212 : vector<2x64xf32>
    %cst_71 = arith.constant 5.000000e-01 : f32
    %215 = vector.broadcast %cst_71 : f32 to vector<2x64xf32>
    %216 = arith.addf %214, %215 : vector<2x64xf32>
    %217 = vector.extract_strided_slice %206 {offsets = [0, 128], sizes = [2, 64], strides = [1, 1]} : vector<2x256xf32> to vector<2x64xf32>
    %218 = vector.extract_strided_slice %206 {offsets = [0, 192], sizes = [2, 64], strides = [1, 1]} : vector<2x256xf32> to vector<2x64xf32>
    %cst_72 = arith.constant 5.000000e-01 : f32
    %219 = vector.broadcast %cst_72 : f32 to vector<2x64xf32>
    %220 = arith.mulf %219, %218 : vector<2x64xf32>
    %cst_73 = arith.constant 5.000000e-01 : f32
    %221 = vector.broadcast %cst_73 : f32 to vector<2x64xf32>
    %222 = arith.addf %220, %221 : vector<2x64xf32>
    %223 = arith.mulf %216, %200 : vector<2x64xf32>
    %224 = arith.mulf %211, %217 : vector<2x64xf32>
    %225 = arith.addf %223, %224 : vector<2x64xf32>
    %226 = math.tanh %225 : vector<2x64xf32>
    %227 = arith.mulf %222, %226 : vector<2x64xf32>
    %228 = tpu.concatenate %52, %77, %102, %127, %152, %177, %202, %227 in 0 : vector<2x64xf32>, vector<2x64xf32>, vector<2x64xf32>, vector<2x64xf32>, vector<2x64xf32>, vector<2x64xf32>, vector<2x64xf32>, vector<2x64xf32> -> vector<16x64xf32>
    %c0_74 = arith.constant 0 : index
    %c0_75 = arith.constant 0 : index
    %c0_76 = arith.constant 0 : index
    %229 = vector.load %arg2[%c0_74, %c0_75, %c0_76] : memref<2x192x256xf32, #tpu.memory_space<vmem>>, vector<1x64x192xf32>
    %230 = vector.shape_cast %229 : vector<1x64x192xf32> to vector<64x192xf32>
    %c0_77 = arith.constant 0 : index
    %c64_78 = arith.constant 64 : index
    %c0_79 = arith.constant 0 : index
    %231 = vector.load %arg2[%c0_77, %c64_78, %c0_79] : memref<2x192x256xf32, #tpu.memory_space<vmem>>, vector<1x64x64xf32>
    %232 = vector.shape_cast %231 : vector<1x64x64xf32> to vector<64x64xf32>
    %c0_80 = arith.constant 0 : index
    %c64_81 = arith.constant 64 : index
    %c128_82 = arith.constant 128 : index
    %233 = vector.load %arg2[%c0_80, %c64_81, %c128_82] : memref<2x192x256xf32, #tpu.memory_space<vmem>>, vector<1x64x128xf32>
    %234 = vector.shape_cast %233 : vector<1x64x128xf32> to vector<64x128xf32>
    %c0_83 = arith.constant 0 : index
    %c128_84 = arith.constant 128 : index
    %c0_85 = arith.constant 0 : index
    %235 = vector.load %arg2[%c0_83, %c128_84, %c0_85] : memref<2x192x256xf32, #tpu.memory_space<vmem>>, vector<1x64x128xf32>
    %236 = vector.shape_cast %235 : vector<1x64x128xf32> to vector<64x128xf32>
    %c136 = arith.constant 136 : index
    %c0_86 = arith.constant 0 : index
    %237 = vector.load %arg1[%c136, %c0_86] : memref<232x256xf32, #tpu.memory_space<vmem>>, vector<1x192xf32>
    %c137 = arith.constant 137 : index
    %c0_87 = arith.constant 0 : index
    %238 = vector.load %arg1[%c137, %c0_87] : memref<232x256xf32, #tpu.memory_space<vmem>>, vector<1x64xf32>
    %c138 = arith.constant 138 : index
    %c0_88 = arith.constant 0 : index
    %239 = vector.load %arg1[%c138, %c0_88] : memref<232x256xf32, #tpu.memory_space<vmem>>, vector<1x128xf32>
    %c139 = arith.constant 139 : index
    %c0_89 = arith.constant 0 : index
    %240 = vector.load %arg1[%c139, %c0_89] : memref<232x256xf32, #tpu.memory_space<vmem>>, vector<1x64xf32>
    %c140 = arith.constant 140 : index
    %c0_90 = arith.constant 0 : index
    %241 = vector.load %arg1[%c140, %c0_90] : memref<232x256xf32, #tpu.memory_space<vmem>>, vector<1x64xf32>
    %c141 = arith.constant 141 : index
    %c0_91 = arith.constant 0 : index
    %242 = vector.load %arg1[%c141, %c0_91] : memref<232x256xf32, #tpu.memory_space<vmem>>, vector<1x64xf32>
    %c142 = arith.constant 142 : index
    %c0_92 = arith.constant 0 : index
    %243 = vector.load %arg1[%c142, %c0_92] : memref<232x256xf32, #tpu.memory_space<vmem>>, vector<1x64xf32>
    %c143 = arith.constant 143 : index
    %c0_93 = arith.constant 0 : index
    %244 = vector.load %arg1[%c143, %c0_93] : memref<232x256xf32, #tpu.memory_space<vmem>>, vector<1x64xf32>
    %cst_94 = arith.constant dense<0.000000e+00> : vector<16x192xf32>
    %245 = tpu.matmul %228, %230, %cst_94 {dimension_numbers = #tpu.dot_dimension_numbers<[1], [0], [0], [1], [0, 0, 1, 1], [], []>} : vector<16x64xf32>, vector<64x192xf32>, vector<16x192xf32> -> vector<16x192xf32>
    %246 = vector.broadcast %237 : vector<1x192xf32> to vector<16x192xf32>
    %247 = arith.addf %245, %246 : vector<16x192xf32>
    %248 = vector.extract_strided_slice %247 {offsets = [0, 0], sizes = [16, 64], strides = [1, 1]} : vector<16x192xf32> to vector<16x64xf32>
    %249 = vector.extract_strided_slice %247 {offsets = [0, 64], sizes = [16, 64], strides = [1, 1]} : vector<16x192xf32> to vector<16x64xf32>
    %250 = vector.extract_strided_slice %247 {offsets = [0, 128], sizes = [16, 64], strides = [1, 1]} : vector<16x192xf32> to vector<16x64xf32>
    %251 = vector.extract_strided_slice %248 {offsets = [0, 0], sizes = [16, 16], strides = [1, 1]} : vector<16x64xf32> to vector<16x16xf32>
    %252 = vector.extract_strided_slice %248 {offsets = [0, 16], sizes = [16, 16], strides = [1, 1]} : vector<16x64xf32> to vector<16x16xf32>
    %253 = vector.extract_strided_slice %248 {offsets = [0, 32], sizes = [16, 16], strides = [1, 1]} : vector<16x64xf32> to vector<16x16xf32>
    %254 = vector.extract_strided_slice %248 {offsets = [0, 48], sizes = [16, 16], strides = [1, 1]} : vector<16x64xf32> to vector<16x16xf32>
    %255 = vector.shape_cast %251 : vector<16x16xf32> to vector<1x16x16xf32>
    %256 = vector.shape_cast %252 : vector<16x16xf32> to vector<1x16x16xf32>
    %257 = vector.shape_cast %253 : vector<16x16xf32> to vector<1x16x16xf32>
    %258 = vector.shape_cast %254 : vector<16x16xf32> to vector<1x16x16xf32>
    %259 = tpu.concatenate %255, %256, %257, %258 in 0 : vector<1x16x16xf32>, vector<1x16x16xf32>, vector<1x16x16xf32>, vector<1x16x16xf32> -> vector<4x16x16xf32>
    %260 = vector.extract_strided_slice %249 {offsets = [0, 0], sizes = [16, 16], strides = [1, 1]} : vector<16x64xf32> to vector<16x16xf32>
    %261 = vector.extract_strided_slice %249 {offsets = [0, 16], sizes = [16, 16], strides = [1, 1]} : vector<16x64xf32> to vector<16x16xf32>
    %262 = vector.extract_strided_slice %249 {offsets = [0, 32], sizes = [16, 16], strides = [1, 1]} : vector<16x64xf32> to vector<16x16xf32>
    %263 = vector.extract_strided_slice %249 {offsets = [0, 48], sizes = [16, 16], strides = [1, 1]} : vector<16x64xf32> to vector<16x16xf32>
    %264 = vector.shape_cast %260 : vector<16x16xf32> to vector<1x16x16xf32>
    %265 = vector.shape_cast %261 : vector<16x16xf32> to vector<1x16x16xf32>
    %266 = vector.shape_cast %262 : vector<16x16xf32> to vector<1x16x16xf32>
    %267 = vector.shape_cast %263 : vector<16x16xf32> to vector<1x16x16xf32>
    %268 = tpu.concatenate %264, %265, %266, %267 in 0 : vector<1x16x16xf32>, vector<1x16x16xf32>, vector<1x16x16xf32>, vector<1x16x16xf32> -> vector<4x16x16xf32>
    %269 = vector.extract_strided_slice %250 {offsets = [0, 0], sizes = [16, 16], strides = [1, 1]} : vector<16x64xf32> to vector<16x16xf32>
    %270 = vector.extract_strided_slice %250 {offsets = [0, 16], sizes = [16, 16], strides = [1, 1]} : vector<16x64xf32> to vector<16x16xf32>
    %271 = vector.extract_strided_slice %250 {offsets = [0, 32], sizes = [16, 16], strides = [1, 1]} : vector<16x64xf32> to vector<16x16xf32>
    %272 = vector.extract_strided_slice %250 {offsets = [0, 48], sizes = [16, 16], strides = [1, 1]} : vector<16x64xf32> to vector<16x16xf32>
    %273 = vector.shape_cast %269 : vector<16x16xf32> to vector<1x16x16xf32>
    %274 = vector.shape_cast %270 : vector<16x16xf32> to vector<1x16x16xf32>
    %275 = vector.shape_cast %271 : vector<16x16xf32> to vector<1x16x16xf32>
    %276 = vector.shape_cast %272 : vector<16x16xf32> to vector<1x16x16xf32>
    %277 = tpu.concatenate %273, %274, %275, %276 in 0 : vector<1x16x16xf32>, vector<1x16x16xf32>, vector<1x16x16xf32>, vector<1x16x16xf32> -> vector<4x16x16xf32>
    "tpu.trace_start"() <{level = 10 : i32, message = "hqd,hkd->hqk"}> : () -> ()
    %cst_95 = arith.constant dense<0.000000e+00> : vector<4x16x16xf32>
    %278 = tpu.matmul %259, %268, %cst_95 {dimension_numbers = #tpu.dot_dimension_numbers<[2], [2], [1], [1], [0, 0, 0, 1, 1, 1], [0], [0]>} : vector<4x16x16xf32>, vector<4x16x16xf32>, vector<4x16x16xf32> -> vector<4x16x16xf32>
    "tpu.trace_stop"() : () -> ()
    %279 = vector.shape_cast %10 : vector<16x16xf32> to vector<1x16x16xf32>
    %280 = vector.broadcast %279 : vector<1x16x16xf32> to vector<4x16x16xf32>
    %281 = arith.addf %278, %280 : vector<4x16x16xf32>
    %cst_96 = arith.constant dense<0xFF800000> : vector<4x16xf32>
    %282 = vector.multi_reduction <maximumf>, %281, %cst_96 [2] : vector<4x16x16xf32> to vector<4x16xf32>
    %283 = vector.shape_cast %282 : vector<4x16xf32> to vector<4x16x1xf32>
    %284 = vector.broadcast %283 : vector<4x16x1xf32> to vector<4x16x16xf32>
    %285 = arith.subf %281, %284 : vector<4x16x16xf32>
    %286 = math.exp %285 : vector<4x16x16xf32>
    %cst_97 = arith.constant dense<0.000000e+00> : vector<4x16xf32>
    %287 = vector.multi_reduction <add>, %286, %cst_97 [2] : vector<4x16x16xf32> to vector<4x16xf32>
    %288 = vector.shape_cast %287 : vector<4x16xf32> to vector<4x16x1xf32>
    %289 = tpu.reciprocal %288 {approx = true} : vector<4x16x1xf32> -> vector<4x16x1xf32>
    %290 = vector.broadcast %289 : vector<4x16x1xf32> to vector<4x16x16xf32>
    %291 = arith.mulf %286, %290 : vector<4x16x16xf32>
    "tpu.trace_start"() <{level = 10 : i32, message = "hqk,hkd->hqd"}> : () -> ()
    %cst_98 = arith.constant dense<0.000000e+00> : vector<4x16x16xf32>
    %292 = tpu.matmul %291, %277, %cst_98 {dimension_numbers = #tpu.dot_dimension_numbers<[2], [1], [1], [2], [0, 0, 0, 1, 1, 2], [0], [0]>} : vector<4x16x16xf32>, vector<4x16x16xf32>, vector<4x16x16xf32> -> vector<4x16x16xf32>
    "tpu.trace_stop"() : () -> ()
    %293 = vector.extract_strided_slice %292 {offsets = [0, 0, 0], sizes = [1, 16, 16], strides = [1, 1, 1]} : vector<4x16x16xf32> to vector<1x16x16xf32>
    %294 = vector.shape_cast %293 : vector<1x16x16xf32> to vector<16x16xf32>
    %295 = vector.extract_strided_slice %292 {offsets = [1, 0, 0], sizes = [1, 16, 16], strides = [1, 1, 1]} : vector<4x16x16xf32> to vector<1x16x16xf32>
    %296 = vector.shape_cast %295 : vector<1x16x16xf32> to vector<16x16xf32>
    %297 = vector.extract_strided_slice %292 {offsets = [2, 0, 0], sizes = [1, 16, 16], strides = [1, 1, 1]} : vector<4x16x16xf32> to vector<1x16x16xf32>
    %298 = vector.shape_cast %297 : vector<1x16x16xf32> to vector<16x16xf32>
    %299 = vector.extract_strided_slice %292 {offsets = [3, 0, 0], sizes = [1, 16, 16], strides = [1, 1, 1]} : vector<4x16x16xf32> to vector<1x16x16xf32>
    %300 = vector.shape_cast %299 : vector<1x16x16xf32> to vector<16x16xf32>
    %301 = tpu.concatenate %294, %296, %298, %300 in 1 : vector<16x16xf32>, vector<16x16xf32>, vector<16x16xf32>, vector<16x16xf32> -> vector<16x64xf32>
    %cst_99 = arith.constant dense<0.000000e+00> : vector<16x64xf32>
    %302 = tpu.matmul %301, %232, %cst_99 {dimension_numbers = #tpu.dot_dimension_numbers<[1], [0], [0], [1], [0, 0, 1, 1], [], []>} : vector<16x64xf32>, vector<64x64xf32>, vector<16x64xf32> -> vector<16x64xf32>
    %303 = vector.broadcast %238 : vector<1x64xf32> to vector<16x64xf32>
    %304 = arith.addf %302, %303 : vector<16x64xf32>
    %305 = arith.addf %228, %304 : vector<16x64xf32>
    %cst_100 = arith.constant dense<0.000000e+00> : vector<16xf32>
    %306 = vector.multi_reduction <add>, %305, %cst_100 [1] : vector<16x64xf32> to vector<16xf32>
    %307 = vector.shape_cast %306 : vector<16xf32> to vector<16x1xf32>
    %cst_101 = arith.constant 6.400000e+01 : f32
    %308 = vector.broadcast %cst_101 : f32 to vector<16x1xf32>
    %309 = arith.divf %307, %308 : vector<16x1xf32>
    %310 = vector.broadcast %309 : vector<16x1xf32> to vector<16x64xf32>
    %311 = arith.subf %305, %310 : vector<16x64xf32>
    %312 = arith.mulf %311, %311 : vector<16x64xf32>
    %cst_102 = arith.constant dense<0.000000e+00> : vector<16xf32>
    %313 = vector.multi_reduction <add>, %312, %cst_102 [1] : vector<16x64xf32> to vector<16xf32>
    %314 = vector.shape_cast %313 : vector<16xf32> to vector<16x1xf32>
    %cst_103 = arith.constant 6.400000e+01 : f32
    %315 = vector.broadcast %cst_103 : f32 to vector<16x1xf32>
    %316 = arith.divf %314, %315 : vector<16x1xf32>
    %317 = vector.broadcast %309 : vector<16x1xf32> to vector<16x64xf32>
    %318 = arith.subf %305, %317 : vector<16x64xf32>
    %cst_104 = arith.constant 9.99999974E-6 : f32
    %319 = vector.broadcast %cst_104 : f32 to vector<16x1xf32>
    %320 = arith.addf %316, %319 : vector<16x1xf32>
    %321 = math.rsqrt %320 : vector<16x1xf32>
    %322 = vector.broadcast %321 : vector<16x1xf32> to vector<16x64xf32>
    %323 = arith.mulf %318, %322 : vector<16x64xf32>
    %324 = vector.broadcast %241 : vector<1x64xf32> to vector<16x64xf32>
    %325 = arith.mulf %323, %324 : vector<16x64xf32>
    %326 = vector.broadcast %242 : vector<1x64xf32> to vector<16x64xf32>
    %327 = arith.addf %325, %326 : vector<16x64xf32>
    %cst_105 = arith.constant dense<0.000000e+00> : vector<16x128xf32>
    %328 = tpu.matmul %327, %234, %cst_105 {dimension_numbers = #tpu.dot_dimension_numbers<[1], [0], [0], [1], [0, 0, 1, 1], [], []>} : vector<16x64xf32>, vector<64x128xf32>, vector<16x128xf32> -> vector<16x128xf32>
    %329 = vector.broadcast %239 : vector<1x128xf32> to vector<16x128xf32>
    %330 = arith.addf %328, %329 : vector<16x128xf32>
    %cst_106 = arith.constant 0.000000e+00 : f32
    %331 = vector.broadcast %cst_106 : f32 to vector<16x128xf32>
    %332 = arith.maximumf %330, %331 : vector<16x128xf32>
    %cst_107 = arith.constant dense<0.000000e+00> : vector<16x64xf32>
    %333 = tpu.matmul %332, %236, %cst_107 {dimension_numbers = #tpu.dot_dimension_numbers<[1], [1], [0], [0], [0, 0, 1, 0], [], []>} : vector<16x128xf32>, vector<64x128xf32>, vector<16x64xf32> -> vector<16x64xf32>
    %334 = vector.broadcast %240 : vector<1x64xf32> to vector<16x64xf32>
    %335 = arith.addf %333, %334 : vector<16x64xf32>
    %336 = arith.addf %327, %335 : vector<16x64xf32>
    %cst_108 = arith.constant dense<0.000000e+00> : vector<16xf32>
    %337 = vector.multi_reduction <add>, %336, %cst_108 [1] : vector<16x64xf32> to vector<16xf32>
    %338 = vector.shape_cast %337 : vector<16xf32> to vector<16x1xf32>
    %cst_109 = arith.constant 6.400000e+01 : f32
    %339 = vector.broadcast %cst_109 : f32 to vector<16x1xf32>
    %340 = arith.divf %338, %339 : vector<16x1xf32>
    %341 = vector.broadcast %340 : vector<16x1xf32> to vector<16x64xf32>
    %342 = arith.subf %336, %341 : vector<16x64xf32>
    %343 = arith.mulf %342, %342 : vector<16x64xf32>
    %cst_110 = arith.constant dense<0.000000e+00> : vector<16xf32>
    %344 = vector.multi_reduction <add>, %343, %cst_110 [1] : vector<16x64xf32> to vector<16xf32>
    %345 = vector.shape_cast %344 : vector<16xf32> to vector<16x1xf32>
    %cst_111 = arith.constant 6.400000e+01 : f32
    %346 = vector.broadcast %cst_111 : f32 to vector<16x1xf32>
    %347 = arith.divf %345, %346 : vector<16x1xf32>
    %348 = vector.broadcast %340 : vector<16x1xf32> to vector<16x64xf32>
    %349 = arith.subf %336, %348 : vector<16x64xf32>
    %cst_112 = arith.constant 9.99999974E-6 : f32
    %350 = vector.broadcast %cst_112 : f32 to vector<16x1xf32>
    %351 = arith.addf %347, %350 : vector<16x1xf32>
    %352 = math.rsqrt %351 : vector<16x1xf32>
    %353 = vector.broadcast %352 : vector<16x1xf32> to vector<16x64xf32>
    %354 = arith.mulf %349, %353 : vector<16x64xf32>
    %355 = vector.broadcast %243 : vector<1x64xf32> to vector<16x64xf32>
    %356 = arith.mulf %354, %355 : vector<16x64xf32>
    %357 = vector.broadcast %244 : vector<1x64xf32> to vector<16x64xf32>
    %358 = arith.addf %356, %357 : vector<16x64xf32>
    %c1 = arith.constant 1 : index
    %c0_113 = arith.constant 0 : index
    %c0_114 = arith.constant 0 : index
    %359 = vector.load %arg2[%c1, %c0_113, %c0_114] : memref<2x192x256xf32, #tpu.memory_space<vmem>>, vector<1x64x192xf32>
    %360 = vector.shape_cast %359 : vector<1x64x192xf32> to vector<64x192xf32>
    %c1_115 = arith.constant 1 : index
    %c64_116 = arith.constant 64 : index
    %c0_117 = arith.constant 0 : index
    %361 = vector.load %arg2[%c1_115, %c64_116, %c0_117] : memref<2x192x256xf32, #tpu.memory_space<vmem>>, vector<1x64x64xf32>
    %362 = vector.shape_cast %361 : vector<1x64x64xf32> to vector<64x64xf32>
    %c1_118 = arith.constant 1 : index
    %c64_119 = arith.constant 64 : index
    %c128_120 = arith.constant 128 : index
    %363 = vector.load %arg2[%c1_118, %c64_119, %c128_120] : memref<2x192x256xf32, #tpu.memory_space<vmem>>, vector<1x64x128xf32>
    %364 = vector.shape_cast %363 : vector<1x64x128xf32> to vector<64x128xf32>
    %c1_121 = arith.constant 1 : index
    %c128_122 = arith.constant 128 : index
    %c0_123 = arith.constant 0 : index
    %365 = vector.load %arg2[%c1_121, %c128_122, %c0_123] : memref<2x192x256xf32, #tpu.memory_space<vmem>>, vector<1x64x128xf32>
    %366 = vector.shape_cast %365 : vector<1x64x128xf32> to vector<64x128xf32>
    %c144 = arith.constant 144 : index
    %c0_124 = arith.constant 0 : index
    %367 = vector.load %arg1[%c144, %c0_124] : memref<232x256xf32, #tpu.memory_space<vmem>>, vector<1x192xf32>
    %c145 = arith.constant 145 : index
    %c0_125 = arith.constant 0 : index
    %368 = vector.load %arg1[%c145, %c0_125] : memref<232x256xf32, #tpu.memory_space<vmem>>, vector<1x64xf32>
    %c146 = arith.constant 146 : index
    %c0_126 = arith.constant 0 : index
    %369 = vector.load %arg1[%c146, %c0_126] : memref<232x256xf32, #tpu.memory_space<vmem>>, vector<1x128xf32>
    %c147 = arith.constant 147 : index
    %c0_127 = arith.constant 0 : index
    %370 = vector.load %arg1[%c147, %c0_127] : memref<232x256xf32, #tpu.memory_space<vmem>>, vector<1x64xf32>
    %c148 = arith.constant 148 : index
    %c0_128 = arith.constant 0 : index
    %371 = vector.load %arg1[%c148, %c0_128] : memref<232x256xf32, #tpu.memory_space<vmem>>, vector<1x64xf32>
    %c149 = arith.constant 149 : index
    %c0_129 = arith.constant 0 : index
    %372 = vector.load %arg1[%c149, %c0_129] : memref<232x256xf32, #tpu.memory_space<vmem>>, vector<1x64xf32>
    %c150 = arith.constant 150 : index
    %c0_130 = arith.constant 0 : index
    %373 = vector.load %arg1[%c150, %c0_130] : memref<232x256xf32, #tpu.memory_space<vmem>>, vector<1x64xf32>
    %c151 = arith.constant 151 : index
    %c0_131 = arith.constant 0 : index
    %374 = vector.load %arg1[%c151, %c0_131] : memref<232x256xf32, #tpu.memory_space<vmem>>, vector<1x64xf32>
    %cst_132 = arith.constant dense<0.000000e+00> : vector<16x192xf32>
    %375 = tpu.matmul %358, %360, %cst_132 {dimension_numbers = #tpu.dot_dimension_numbers<[1], [0], [0], [1], [0, 0, 1, 1], [], []>} : vector<16x64xf32>, vector<64x192xf32>, vector<16x192xf32> -> vector<16x192xf32>
    %376 = vector.broadcast %367 : vector<1x192xf32> to vector<16x192xf32>
    %377 = arith.addf %375, %376 : vector<16x192xf32>
    %378 = vector.extract_strided_slice %377 {offsets = [0, 0], sizes = [16, 64], strides = [1, 1]} : vector<16x192xf32> to vector<16x64xf32>
    %379 = vector.extract_strided_slice %377 {offsets = [0, 64], sizes = [16, 64], strides = [1, 1]} : vector<16x192xf32> to vector<16x64xf32>
    %380 = vector.extract_strided_slice %377 {offsets = [0, 128], sizes = [16, 64], strides = [1, 1]} : vector<16x192xf32> to vector<16x64xf32>
    %381 = vector.extract_strided_slice %378 {offsets = [0, 0], sizes = [16, 16], strides = [1, 1]} : vector<16x64xf32> to vector<16x16xf32>
    %382 = vector.extract_strided_slice %378 {offsets = [0, 16], sizes = [16, 16], strides = [1, 1]} : vector<16x64xf32> to vector<16x16xf32>
    %383 = vector.extract_strided_slice %378 {offsets = [0, 32], sizes = [16, 16], strides = [1, 1]} : vector<16x64xf32> to vector<16x16xf32>
    %384 = vector.extract_strided_slice %378 {offsets = [0, 48], sizes = [16, 16], strides = [1, 1]} : vector<16x64xf32> to vector<16x16xf32>
    %385 = vector.shape_cast %381 : vector<16x16xf32> to vector<1x16x16xf32>
    %386 = vector.shape_cast %382 : vector<16x16xf32> to vector<1x16x16xf32>
    %387 = vector.shape_cast %383 : vector<16x16xf32> to vector<1x16x16xf32>
    %388 = vector.shape_cast %384 : vector<16x16xf32> to vector<1x16x16xf32>
    %389 = tpu.concatenate %385, %386, %387, %388 in 0 : vector<1x16x16xf32>, vector<1x16x16xf32>, vector<1x16x16xf32>, vector<1x16x16xf32> -> vector<4x16x16xf32>
    %390 = vector.extract_strided_slice %379 {offsets = [0, 0], sizes = [16, 16], strides = [1, 1]} : vector<16x64xf32> to vector<16x16xf32>
    %391 = vector.extract_strided_slice %379 {offsets = [0, 16], sizes = [16, 16], strides = [1, 1]} : vector<16x64xf32> to vector<16x16xf32>
    %392 = vector.extract_strided_slice %379 {offsets = [0, 32], sizes = [16, 16], strides = [1, 1]} : vector<16x64xf32> to vector<16x16xf32>
    %393 = vector.extract_strided_slice %379 {offsets = [0, 48], sizes = [16, 16], strides = [1, 1]} : vector<16x64xf32> to vector<16x16xf32>
    %394 = vector.shape_cast %390 : vector<16x16xf32> to vector<1x16x16xf32>
    %395 = vector.shape_cast %391 : vector<16x16xf32> to vector<1x16x16xf32>
    %396 = vector.shape_cast %392 : vector<16x16xf32> to vector<1x16x16xf32>
    %397 = vector.shape_cast %393 : vector<16x16xf32> to vector<1x16x16xf32>
    %398 = tpu.concatenate %394, %395, %396, %397 in 0 : vector<1x16x16xf32>, vector<1x16x16xf32>, vector<1x16x16xf32>, vector<1x16x16xf32> -> vector<4x16x16xf32>
    %399 = vector.extract_strided_slice %380 {offsets = [0, 0], sizes = [16, 16], strides = [1, 1]} : vector<16x64xf32> to vector<16x16xf32>
    %400 = vector.extract_strided_slice %380 {offsets = [0, 16], sizes = [16, 16], strides = [1, 1]} : vector<16x64xf32> to vector<16x16xf32>
    %401 = vector.extract_strided_slice %380 {offsets = [0, 32], sizes = [16, 16], strides = [1, 1]} : vector<16x64xf32> to vector<16x16xf32>
    %402 = vector.extract_strided_slice %380 {offsets = [0, 48], sizes = [16, 16], strides = [1, 1]} : vector<16x64xf32> to vector<16x16xf32>
    %403 = vector.shape_cast %399 : vector<16x16xf32> to vector<1x16x16xf32>
    %404 = vector.shape_cast %400 : vector<16x16xf32> to vector<1x16x16xf32>
    %405 = vector.shape_cast %401 : vector<16x16xf32> to vector<1x16x16xf32>
    %406 = vector.shape_cast %402 : vector<16x16xf32> to vector<1x16x16xf32>
    %407 = tpu.concatenate %403, %404, %405, %406 in 0 : vector<1x16x16xf32>, vector<1x16x16xf32>, vector<1x16x16xf32>, vector<1x16x16xf32> -> vector<4x16x16xf32>
    "tpu.trace_start"() <{level = 10 : i32, message = "hqd,hkd->hqk"}> : () -> ()
    %cst_133 = arith.constant dense<0.000000e+00> : vector<4x16x16xf32>
    %408 = tpu.matmul %389, %398, %cst_133 {dimension_numbers = #tpu.dot_dimension_numbers<[2], [2], [1], [1], [0, 0, 0, 1, 1, 1], [0], [0]>} : vector<4x16x16xf32>, vector<4x16x16xf32>, vector<4x16x16xf32> -> vector<4x16x16xf32>
    "tpu.trace_stop"() : () -> ()
    %409 = vector.shape_cast %10 : vector<16x16xf32> to vector<1x16x16xf32>
    %410 = vector.broadcast %409 : vector<1x16x16xf32> to vector<4x16x16xf32>
    %411 = arith.addf %408, %410 : vector<4x16x16xf32>
    %cst_134 = arith.constant dense<0xFF800000> : vector<4x16xf32>
    %412 = vector.multi_reduction <maximumf>, %411, %cst_134 [2] : vector<4x16x16xf32> to vector<4x16xf32>
    %413 = vector.shape_cast %412 : vector<4x16xf32> to vector<4x16x1xf32>
    %414 = vector.broadcast %413 : vector<4x16x1xf32> to vector<4x16x16xf32>
    %415 = arith.subf %411, %414 : vector<4x16x16xf32>
    %416 = math.exp %415 : vector<4x16x16xf32>
    %cst_135 = arith.constant dense<0.000000e+00> : vector<4x16xf32>
    %417 = vector.multi_reduction <add>, %416, %cst_135 [2] : vector<4x16x16xf32> to vector<4x16xf32>
    %418 = vector.shape_cast %417 : vector<4x16xf32> to vector<4x16x1xf32>
    %419 = tpu.reciprocal %418 {approx = true} : vector<4x16x1xf32> -> vector<4x16x1xf32>
    %420 = vector.broadcast %419 : vector<4x16x1xf32> to vector<4x16x16xf32>
    %421 = arith.mulf %416, %420 : vector<4x16x16xf32>
    "tpu.trace_start"() <{level = 10 : i32, message = "hqk,hkd->hqd"}> : () -> ()
    %cst_136 = arith.constant dense<0.000000e+00> : vector<4x16x16xf32>
    %422 = tpu.matmul %421, %407, %cst_136 {dimension_numbers = #tpu.dot_dimension_numbers<[2], [1], [1], [2], [0, 0, 0, 1, 1, 2], [0], [0]>} : vector<4x16x16xf32>, vector<4x16x16xf32>, vector<4x16x16xf32> -> vector<4x16x16xf32>
    "tpu.trace_stop"() : () -> ()
    %423 = vector.extract_strided_slice %422 {offsets = [0, 0, 0], sizes = [1, 16, 16], strides = [1, 1, 1]} : vector<4x16x16xf32> to vector<1x16x16xf32>
    %424 = vector.shape_cast %423 : vector<1x16x16xf32> to vector<16x16xf32>
    %425 = vector.extract_strided_slice %422 {offsets = [1, 0, 0], sizes = [1, 16, 16], strides = [1, 1, 1]} : vector<4x16x16xf32> to vector<1x16x16xf32>
    %426 = vector.shape_cast %425 : vector<1x16x16xf32> to vector<16x16xf32>
    %427 = vector.extract_strided_slice %422 {offsets = [2, 0, 0], sizes = [1, 16, 16], strides = [1, 1, 1]} : vector<4x16x16xf32> to vector<1x16x16xf32>
    %428 = vector.shape_cast %427 : vector<1x16x16xf32> to vector<16x16xf32>
    %429 = vector.extract_strided_slice %422 {offsets = [3, 0, 0], sizes = [1, 16, 16], strides = [1, 1, 1]} : vector<4x16x16xf32> to vector<1x16x16xf32>
    %430 = vector.shape_cast %429 : vector<1x16x16xf32> to vector<16x16xf32>
    %431 = tpu.concatenate %424, %426, %428, %430 in 1 : vector<16x16xf32>, vector<16x16xf32>, vector<16x16xf32>, vector<16x16xf32> -> vector<16x64xf32>
    %cst_137 = arith.constant dense<0.000000e+00> : vector<16x64xf32>
    %432 = tpu.matmul %431, %362, %cst_137 {dimension_numbers = #tpu.dot_dimension_numbers<[1], [0], [0], [1], [0, 0, 1, 1], [], []>} : vector<16x64xf32>, vector<64x64xf32>, vector<16x64xf32> -> vector<16x64xf32>
    %433 = vector.broadcast %368 : vector<1x64xf32> to vector<16x64xf32>
    %434 = arith.addf %432, %433 : vector<16x64xf32>
    %435 = arith.addf %358, %434 : vector<16x64xf32>
    %cst_138 = arith.constant dense<0.000000e+00> : vector<16xf32>
    %436 = vector.multi_reduction <add>, %435, %cst_138 [1] : vector<16x64xf32> to vector<16xf32>
    %437 = vector.shape_cast %436 : vector<16xf32> to vector<16x1xf32>
    %cst_139 = arith.constant 6.400000e+01 : f32
    %438 = vector.broadcast %cst_139 : f32 to vector<16x1xf32>
    %439 = arith.divf %437, %438 : vector<16x1xf32>
    %440 = vector.broadcast %439 : vector<16x1xf32> to vector<16x64xf32>
    %441 = arith.subf %435, %440 : vector<16x64xf32>
    %442 = arith.mulf %441, %441 : vector<16x64xf32>
    %cst_140 = arith.constant dense<0.000000e+00> : vector<16xf32>
    %443 = vector.multi_reduction <add>, %442, %cst_140 [1] : vector<16x64xf32> to vector<16xf32>
    %444 = vector.shape_cast %443 : vector<16xf32> to vector<16x1xf32>
    %cst_141 = arith.constant 6.400000e+01 : f32
    %445 = vector.broadcast %cst_141 : f32 to vector<16x1xf32>
    %446 = arith.divf %444, %445 : vector<16x1xf32>
    %447 = vector.broadcast %439 : vector<16x1xf32> to vector<16x64xf32>
    %448 = arith.subf %435, %447 : vector<16x64xf32>
    %cst_142 = arith.constant 9.99999974E-6 : f32
    %449 = vector.broadcast %cst_142 : f32 to vector<16x1xf32>
    %450 = arith.addf %446, %449 : vector<16x1xf32>
    %451 = math.rsqrt %450 : vector<16x1xf32>
    %452 = vector.broadcast %451 : vector<16x1xf32> to vector<16x64xf32>
    %453 = arith.mulf %448, %452 : vector<16x64xf32>
    %454 = vector.broadcast %371 : vector<1x64xf32> to vector<16x64xf32>
    %455 = arith.mulf %453, %454 : vector<16x64xf32>
    %456 = vector.broadcast %372 : vector<1x64xf32> to vector<16x64xf32>
    %457 = arith.addf %455, %456 : vector<16x64xf32>
    %cst_143 = arith.constant dense<0.000000e+00> : vector<16x128xf32>
    %458 = tpu.matmul %457, %364, %cst_143 {dimension_numbers = #tpu.dot_dimension_numbers<[1], [0], [0], [1], [0, 0, 1, 1], [], []>} : vector<16x64xf32>, vector<64x128xf32>, vector<16x128xf32> -> vector<16x128xf32>
    %459 = vector.broadcast %369 : vector<1x128xf32> to vector<16x128xf32>
    %460 = arith.addf %458, %459 : vector<16x128xf32>
    %cst_144 = arith.constant 0.000000e+00 : f32
    %461 = vector.broadcast %cst_144 : f32 to vector<16x128xf32>
    %462 = arith.maximumf %460, %461 : vector<16x128xf32>
    %cst_145 = arith.constant dense<0.000000e+00> : vector<16x64xf32>
    %463 = tpu.matmul %462, %366, %cst_145 {dimension_numbers = #tpu.dot_dimension_numbers<[1], [1], [0], [0], [0, 0, 1, 0], [], []>} : vector<16x128xf32>, vector<64x128xf32>, vector<16x64xf32> -> vector<16x64xf32>
    %464 = vector.broadcast %370 : vector<1x64xf32> to vector<16x64xf32>
    %465 = arith.addf %463, %464 : vector<16x64xf32>
    %466 = arith.addf %457, %465 : vector<16x64xf32>
    %cst_146 = arith.constant dense<0.000000e+00> : vector<16xf32>
    %467 = vector.multi_reduction <add>, %466, %cst_146 [1] : vector<16x64xf32> to vector<16xf32>
    %468 = vector.shape_cast %467 : vector<16xf32> to vector<16x1xf32>
    %cst_147 = arith.constant 6.400000e+01 : f32
    %469 = vector.broadcast %cst_147 : f32 to vector<16x1xf32>
    %470 = arith.divf %468, %469 : vector<16x1xf32>
    %471 = vector.broadcast %470 : vector<16x1xf32> to vector<16x64xf32>
    %472 = arith.subf %466, %471 : vector<16x64xf32>
    %473 = arith.mulf %472, %472 : vector<16x64xf32>
    %cst_148 = arith.constant dense<0.000000e+00> : vector<16xf32>
    %474 = vector.multi_reduction <add>, %473, %cst_148 [1] : vector<16x64xf32> to vector<16xf32>
    %475 = vector.shape_cast %474 : vector<16xf32> to vector<16x1xf32>
    %cst_149 = arith.constant 6.400000e+01 : f32
    %476 = vector.broadcast %cst_149 : f32 to vector<16x1xf32>
    %477 = arith.divf %475, %476 : vector<16x1xf32>
    %478 = vector.broadcast %470 : vector<16x1xf32> to vector<16x64xf32>
    %479 = arith.subf %466, %478 : vector<16x64xf32>
    %cst_150 = arith.constant 9.99999974E-6 : f32
    %480 = vector.broadcast %cst_150 : f32 to vector<16x1xf32>
    %481 = arith.addf %477, %480 : vector<16x1xf32>
    %482 = math.rsqrt %481 : vector<16x1xf32>
    %483 = vector.broadcast %482 : vector<16x1xf32> to vector<16x64xf32>
    %484 = arith.mulf %479, %483 : vector<16x64xf32>
    %485 = vector.broadcast %373 : vector<1x64xf32> to vector<16x64xf32>
    %486 = arith.mulf %484, %485 : vector<16x64xf32>
    %487 = vector.broadcast %374 : vector<1x64xf32> to vector<16x64xf32>
    %488 = arith.addf %486, %487 : vector<16x64xf32>
    %489 = vector.extract_strided_slice %488 {offsets = [14, 0], sizes = [2, 64], strides = [1, 1]} : vector<16x64xf32> to vector<2x64xf32>
    %cst_151 = arith.constant dense<0.000000e+00> : vector<2x32xf32>
    %490 = tpu.matmul %489, %8, %cst_151 {dimension_numbers = #tpu.dot_dimension_numbers<[1], [0], [0], [1], [0, 0, 1, 1], [], []>} : vector<2x64xf32>, vector<64x32xf32>, vector<2x32xf32> -> vector<2x32xf32>
    %491 = vector.broadcast %6 : vector<1x32xf32> to vector<2x32xf32>
    %492 = arith.addf %490, %491 : vector<2x32xf32>
    %cst_152 = arith.constant 0.000000e+00 : f32
    %493 = vector.broadcast %cst_152 : f32 to vector<2x32xf32>
    %494 = arith.maximumf %492, %493 : vector<2x32xf32>
    %cst_153 = arith.constant dense<0.000000e+00> : vector<2x4xf32>
    %495 = tpu.matmul %494, %9, %cst_153 {dimension_numbers = #tpu.dot_dimension_numbers<[1], [0], [0], [1], [0, 0, 1, 1], [], []>} : vector<2x32xf32>, vector<32x4xf32>, vector<2x4xf32> -> vector<2x4xf32>
    %496 = vector.broadcast %7 : vector<1x4xf32> to vector<2x4xf32>
    %497 = arith.addf %495, %496 : vector<2x4xf32>
    %cst_154 = arith.constant dense<0xFF800000> : vector<2xf32>
    %498 = vector.multi_reduction <maximumf>, %497, %cst_154 [1] : vector<2x4xf32> to vector<2xf32>
    %499 = vector.shape_cast %498 : vector<2xf32> to vector<2x1xf32>
    %500 = vector.broadcast %499 : vector<2x1xf32> to vector<2x4xf32>
    %501 = arith.subf %497, %500 : vector<2x4xf32>
    %502 = math.exp %501 : vector<2x4xf32>
    %cst_155 = arith.constant dense<0.000000e+00> : vector<2xf32>
    %503 = vector.multi_reduction <add>, %502, %cst_155 [1] : vector<2x4xf32> to vector<2xf32>
    %504 = vector.shape_cast %503 : vector<2xf32> to vector<2x1xf32>
    %505 = tpu.reciprocal %504 : vector<2x1xf32> -> vector<2x1xf32>
    %506 = vector.broadcast %505 : vector<2x1xf32> to vector<2x4xf32>
    %507 = arith.mulf %502, %506 : vector<2x4xf32>
    %c0_156 = arith.constant 0 : index
    %c0_157 = arith.constant 0 : index
    %508 = vector.load %arg3[%c0_156, %c0_157] : memref<2x4xf32, #tpu.memory_space<vmem>>, vector<2x4xf32>
    tpu.vector_store %arg3[%c0_156, %c0_157], %507 {strides = array<i32>} : memref<2x4xf32, #tpu.memory_space<vmem>>, vector<2x4xf32>,
    return
  }
}

</mosaic_0001>

<bundles_post_ra>
// kernel: tpu_custom_call.1
= control target key start
LH: loop header
LB: loop body
LE: loop exit
PB: predicated region body
PF: predicated region fallthrough
CT: control target
= control target key end

     0   :  { %8 = vsyncpa [#allocation3], 0  ;;  %s5544_s0 = inlined_call_operand.vmem [shape: f32[16,2], index: 0, kind: input, shape index: {}]   ;;  %s5545_s1 = inlined_call_operand.hbm [shape: f32[232,256], index: 1, kind: input, shape index: {}]   ;;  %s5546_s2 = inlined_call_operand.hbm [shape: f32[2,192,256], index: 2, kind: input, shape index: {}]   ;;  %s5547_s3 = inlined_call_operand.hbm [shape: f32[2,4], index: 3, kind: output, shape index: {}]  }
   0x1   :  { %9 = vsyncpa [#allocation6], 0 }
   0x2   :  { %10 = vsyncpa [#allocation4], 0  ;;  %s4998_s12 = smov [#allocation2]   ;;  %s4926_s16 = scalar_lea.hbm %s5545_s1, 7424 }
   0x3   :  { %s18_s13 = sshll.u32 %s4998_s12, 4  ;;  %p4927_p0 = scmp.ne.s32.totalorder %s5545_s1, %s4926_s16  ;;  %s19_s13 = int_to_ptr.vmem [resolvable:$true] %s18_s13 }
   0x4   :  { %p4930_p1 = scmp.lt.u32.totalorder %s4926_s16, %s5545_s1 }
   0x6   :  { %p4932_p2 = pnand %p4930_p1, %p4927_p0 }
   0x8   :  { %4935 = shalt.err (!%p4932_p2)
}
   0x9   :  { %s4936_s21 = scalar_lea.vmem %s19_s13, 7424  ;;  %p4941_p4 = scmp.lt.s32.totalorder %s19_s13, %s19_s13 }
   0xa   :  { %p4937_p3 = scmp.ne.s32.totalorder %s19_s13, %s4936_s21  ;;  %p4942_p5 = scmp.lt.s32.totalorder %s4936_s21, %s4936_s21 }
   0xc   :  { %p4943_p6 = por %p4942_p5, %p4941_p4 }
   0xe   :  { %p4944_p7 = pnand %p4943_p6, %p4937_p3 }
  0x10   :  { %4947 = shalt.err (!%p4944_p7)
}
  0x11   :  { %s4999_s22 = smov 256   ;;  %s5000_s23 = smov 16  }
  0x12   :  { %24 = dma.hbm_to_vmem [thread:$0]  %s5545_s1, 7424, %s19_s13, [#allocation3], %s4999_s22, %s4999_s22, %s5000_s23  }
  0x13   :  { %s5001_s26 = smov [#allocation5]   ;;  %s4948_s30 = scalar_lea.hbm %s5546_s2, 12288 }
  0x14   :  { %s30_s27 = sshll.u32 %s5001_s26, 4  ;;  %p4949_p8 = scmp.ne.s32.totalorder %s5546_s2, %s4948_s30  ;;  %s31_s27 = int_to_ptr.vmem [resolvable:$true] %s30_s27 }
  0x15   :  { %p4952_p9 = scmp.lt.u32.totalorder %s4948_s30, %s5546_s2 }
  0x17   :  { %p4954_p10 = pnand %p4952_p9, %p4949_p8 }
  0x19   :  { %4957 = shalt.err (!%p4954_p10)
}
  0x1a   :  { %s4958_s8 = scalar_lea.vmem %s31_s27, 12288  ;;  %p4963_p12 = scmp.lt.s32.totalorder %s31_s27, %s31_s27 }
  0x1b   :  { %p4959_p11 = scmp.ne.s32.totalorder %s31_s27, %s4958_s8  ;;  %p4964_p13 = scmp.lt.s32.totalorder %s4958_s8, %s4958_s8 }
  0x1d   :  { %p4965_p0 = por %p4964_p13, %p4963_p12 }
  0x1f   :  { %p4966_p1 = pnand %p4965_p0, %p4959_p11 }
  0x21   :  { %4969 = shalt.err (!%p4966_p1)
}
  0x22   :  { %36 = dma.hbm_to_vmem [thread:$0]  %s5546_s2, 12288, %s31_s27, [#allocation6], %s4999_s22, %s4999_s22, %s5000_s23  }
  0x23   :  { %4992 = dma.done.wait [#allocation3], 7424  }
  0x24   :  { %4993 = vsyncadd [#allocation3], 4294959872 }
  0x25   :  { %4994 = dma.done.wait [#allocation6], 12288  }
  0x26   :  { %4995 = vsyncadd [#allocation6], 4294955008  ;;  %v5002_v0 = vmov 0   ;;  %v96_v1 = vld [vmem:[%s5544_s0] sm:$0xff]  ;;  %v44_v2 = vld [vmem:[#allocation2 + $0x8] sm:$0xff]  ;;  %v5003_v20 = vmov 1   ;;  %v125_v63 = vlaneseq }
  0x27   :  { %4722 = vset.pattern.permute.xlu0 %v5002_v0  ;;  %4724 = vset.pattern.permute.xlu1 %v5002_v0  ;;  %v46_v3 = vld [vmem:[#allocation2 + $0x18] sm:$0xff]  ;;  %v43_v5 = vld [vmem:[#allocation2] sm:$0xff]  ;;  %v45_v6 = vld [vmem:[#allocation2 + $0x10] sm:$0xff]  ;;  %v5004_v48 = vmov 0.0   ;;  %vm135_vm0 = vcmask 523264   ;;  %s5005_s2 = smov 64  }
  0x28   :  { %100 = vperm.xlu0 %4722, %v96_v1   ;;  %v4336_v4 = vpack.c.bf16 %v46_v3, %v44_v2  ;;  %v60_v7 = vld [vmem:[#allocation2 + $0x88] sm:$0xff]  ;;  %v4338_v8 = vpack.c.bf16 %v45_v6, %v43_v5  ;;  %v62_v9 = vld [vmem:[#allocation2 + $0x98] sm:$0xff]  ;;  %v59_v10 = vld [vmem:[#allocation2 + $0x80] sm:$0xff]  ;;  %206 = vmatprep.mubr.f32.mxu0 %v5004_v48  ;;  %v126_v0 = vshrl.u32 %v125_v63, 7  ;;  %vm1023_vm1 = vcmask 1041408   ;;  %s5007_s14 = smov 96  }
  0x29   :  { %v61_v11 = vld [vmem:[#allocation2 + $0x90] sm:$0xff]  ;;  %v5063_v12 = vpack.c.bf16 %v62_v9, %v60_v7  ;;  %v48_v14 = vld [vmem:[#allocation2 + $0x28] sm:$0xff]  ;;  %v50_v15 = vld [vmem:[#allocation2 + $0x38] sm:$0xff]  ;;  %286 = vmatprep.mubr.f32.mxu1 %v5004_v48  ;;  %vm1025_vm2 = vcmask 1043456   ;;  %vm1027_vm3 = vcmask 1045504   ;;  %vm1217_vm4 = vcmask 130048  }
  0x2a   :  { %4337 = vmatprep.subr.bf16.mxu0 %v4336_v4  ;;  %v5065_v13 = vpack.c.bf16 %v61_v11, %v59_v10  ;;  %v4340_v16 = vpack.c.bf16 %v50_v15, %v48_v14  ;;  %v47_v17 = vld [vmem:[#allocation2 + $0x20] sm:$0xff]  ;;  %v49_v18 = vld [vmem:[#allocation2 + $0x30] sm:$0xff]  ;;  %v64_v19 = vld [vmem:[#allocation2 + $0xa8] sm:$0xff]  ;;  %v5114_v3 = vsub.s32 1, %v126_v0  ;;  %s5008_s15 = smov 80   ;;  %s5009_s16 = smov 32  }
  0x2b   :  { %4339 = vmatpush1.bf16.msra.mxu0 %v4338_v8  ;;  %4353 = vmatprep.subr.bf16.mxu1 %v5063_v12  ;;  %v4342_v21 = vpack.c.bf16 %v49_v18, %v47_v17  ;;  %v66_v22 = vld [vmem:[#allocation2 + $0xb8] sm:$0xff]  ;;  %v63_v23 = vld [vmem:[#allocation2 + $0xa0] sm:$0xff]  ;;  %v65_v24 = vld [vmem:[#allocation2 + $0xb0] sm:$0xff]  ;;  %s5010_s17 = smov 48   ;;  %vm2000_vm6 = vcmask 261120   ;;  %vm2003_vm7 = vcmask 392192  }
  0x2c   :  { %4723 = vset.pattern.permute.xlu0 %v5003_v20  ;;  %4355 = vmatpush1.bf16.msra.mxu1 %v5065_v13  ;;  %v5070_v25 = vpack.c.bf16 %v66_v22, %v64_v19  ;;  %v5072_v26 = vpack.c.bf16 %v65_v24, %v63_v23  ;;  %v52_v27 = vld [vmem:[#allocation2 + $0x48] sm:$0xff]  ;;  %v54_v28 = vld [vmem:[#allocation2 + $0x58] sm:$0xff]  ;;  %v51_v30 = vld [vmem:[#allocation2 + $0x40] sm:$0xff]  ;;  %vm5012_vm8 = vmmov 0   ;;  %vm3842_vm9 = vcmask 25600   ;;  %s5013_s18 = smov [#allocation7]  }
  0x2d   :  { %111 = vperm.xlu0 %4723, %v96_v1   ;;  %4341 = vmatprep.subr.bf16.mxu0 %v4340_v16  ;;  %v4344_v29 = vpack.c.bf16 %v54_v28, %v52_v27  ;;  %v53_v31 = vld [vmem:[#allocation2 + $0x50] sm:$0xff]  ;;  %v68_v33 = vld [vmem:[#allocation2 + $0xc8] sm:$0xff]  ;;  %v70_v34 = vld [vmem:[#allocation2 + $0xd8] sm:$0xff]  ;;  %v5112_v1 = vsub.s32 0, %v126_v0  ;;  %s3861_s19 = sshll.u32 %s5013_s18, 4  ;;  %s3862_s19 = int_to_ptr.vmem [resolvable:$true] %s3861_s19 }
  0x2e   :  { %4357 = vmatprep.subr.bf16.mxu1 %v5070_v25  ;;  %v4346_v32 = vpack.c.bf16 %v53_v31, %v51_v30  ;;  %v67_v35 = vld [vmem:[#allocation2 + $0xc0] sm:$0xff]  ;;  %v5075_v36 = vpack.c.bf16 %v70_v34, %v68_v33  ;;  %v69_v37 = vld [vmem:[#allocation2 + $0xd0] sm:$0xff]  ;;  %v56_v38 = vld [vmem:[#allocation2 + $0x68] sm:$0xff]  ;;  %s4970_s20 = scalar_lea.vmem %s3862_s19, 32  ;;  %p4975_p3 = scmp.lt.s32.totalorder %s3862_s19, %s3862_s19 }
  0x2f   :  { %4343 = vmatpush1.bf16.msra.mxu0 %v4342_v21  ;;  %v58_v39 = vld [vmem:[#allocation2 + $0x78] sm:$0xff]  ;;  %v5078_v40 = vpack.c.bf16 %v69_v37, %v67_v35  ;;  %v55_v42 = vld [vmem:[#allocation2 + $0x60] sm:$0xff]  ;;  %v57_v43 = vld [vmem:[#allocation2 + $0x70] sm:$0xff]  ;;  %p4971_p2 = scmp.ne.s32.totalorder %s3862_s19, %s4970_s20  ;;  %p4976_p4 = scmp.lt.s32.totalorder %s4970_s20, %s4970_s20 }
  0x30   :  { %4345 = vmatprep.subr.bf16.mxu0 %v4344_v29  ;;  %4359 = vmatpush1.bf16.msra.mxu1 %v5072_v26  ;;  %v4348_v41 = vpack.c.bf16 %v58_v39, %v56_v38  ;;  %v72_v44 = vld [vmem:[#allocation2 + $0xe8] sm:$0xff]  ;;  %v74_v45 = vld [vmem:[#allocation2 + $0xf8] sm:$0xff]  ;;  %v71_v46 = vld [vmem:[#allocation2 + $0xe0] sm:$0xff]  ;;  %v4350_v49 = vpack.c.bf16 %v57_v43, %v55_v42 }
  0x31   :  { %4361 = vmatprep.subr.bf16.mxu1 %v5075_v36  ;;  %v73_v47 = vld [vmem:[#allocation2 + $0xf0] sm:$0xff]  ;;  %v5082_v50 = vpack.c.bf16 %v74_v45, %v72_v44  ;;  %v75_v53 = vld [vmem:[#allocation2 + $0x100] ss:$0 sm:$0xff]  ;;  %v76_v54 = vld [vmem:[#allocation2 + $0x108] ss:$0 sm:$0xff]  ;;  %p4977_p5 = por %p4976_p4, %p4975_p3 }
  0x32   :  { %v5086_v51 = vpack.c.bf16 %v73_v47, %v71_v46  ;;  %v77_v58 = vld [vmem:[#allocation2 + $0x102] ss:$0 sm:$0xff]  ;;  %v79_v2 = vld [vmem:[#allocation2 + $0x101] ss:$8 sm:$0x3]  ;;  %v97_v19 = vld [vmem:[%s5544_s0 + $0x8] sm:$0xff] }
  0x33   :  { %4347 = vmatpush1.bf16.msra.mxu0 %v4346_v32  ;;  %v5117_v4 = vrot.slane %v79_v2, %v5112_v1  ;;  %v5120_v5 = vrot.slane %v79_v2, %v5114_v3  ;;  %s5006_s0 = smov 112   ;;  %vm5269_vm5 = vmpackc.low %vm1217_vm4, %vm1217_vm4  ;;  %p4978_p6 = pnand %p4977_p5, %p4971_p2 }
  0x34   :  { %4349 = vmatprep.subr.bf16.mxu0 %v4348_v41  ;;  %4363 = vmatpush1.bf16.msra.mxu1 %v5078_v40 }
  0x35   :  { %4365 = vmatprep.subr.bf16.mxu1 %v5082_v50 }
  0x37   :  { %4351 = vmatpush1.bf16.msra.mxu0 %v4350_v49 }
  0x38   :  { %4369 = vmatprep.subr.bf16.mxu0 %v5063_v12  ;;  %4367 = vmatpush1.bf16.msra.mxu1 %v5086_v51 }
  0x39   :  { %4385 = vmatprep.subr.bf16.mxu1 %v5063_v12 }
  0x3b   :  { %287 = vmatmul.mubr.f32.vlgmr.msra.gmra.mrb[0].mxu1 %v5004_v48 }
  0x3c   :  { %4387 = vmatpush1.bf16.msra.mxu1 %v5065_v13  ;;  %482 = vmatprep.mubr.f32.mxu1 %v5004_v48 }
  0x3d   :  { %4389 = vmatprep.subr.bf16.mxu1 %v5070_v25 }
  0x40   :  { %4391 = vmatpush1.bf16.msra.mxu1 %v5072_v26 }
  0x41   :  { %4393 = vmatprep.subr.bf16.mxu1 %v5075_v36 }
  0x44   :  { %4395 = vmatpush1.bf16.msra.mxu1 %v5078_v40 }
  0x45   :  { %4397 = vmatprep.subr.bf16.mxu1 %v5082_v50 }
  0x48   :  { %4399 = vmatpush1.bf16.msra.mxu1 %v5086_v51 }
  0x49   :  { %4417 = vmatprep.subr.bf16.mxu1 %v5063_v12 }
  0xa7   :  { %v101_v52 = vpop.permute.xlu0 %100 }
  0xa8   :  { %v108_v56 = vmul.f32 %v101_v52, %v75_v53 }
  0xac   :  { %v112_v55 = vpop.permute.xlu0 %111 }
  0xad   :  { %v118_v57 = vmul.f32 %v112_v55, %v76_v54 }
  0xaf   :  { %v120_v59 = vadd.f32 %v118_v57, %v108_v56 }
  0xb1   :  { %v122_v60 = vadd.f32 %v120_v59, %v77_v58 }
  0xb3   :  { %3871 = vmatmul.mubr.msk.f32.vlgmr.msra.gmra.mrb[0].mxu0 %vm135_vm0, %v122_v60 }
  0xb4   :  { %4371 = vmatpush1.bf16.msra.mxu0 %v5065_v13  ;;  %212 = vmatprep.mubr.f32.mxu0 %v5004_v48 }
  0xb5   :  { %4373 = vmatprep.subr.bf16.mxu0 %v5070_v25 }
  0xb8   :  { %4375 = vmatpush1.bf16.msra.mxu0 %v5072_v26 }
  0xb9   :  { %4377 = vmatprep.subr.bf16.mxu0 %v5075_v36 }
  0xbc   :  { %4379 = vmatpush1.bf16.msra.mxu0 %v5078_v40 }
  0xbd   :  { %4381 = vmatprep.subr.bf16.mxu0 %v5082_v50 }
  0xc0   :  { %4383 = vmatpush1.bf16.msra.mxu0 %v5086_v51 }
  0xc1   :  { %4401 = vmatprep.subr.bf16.mxu0 %v5063_v12 }
 0x10e   :  { %v288_v61 = vpop.f32.mrb[0].mxu1 }
 0x10f   :  { %v290_v62 = vpop.f32.mrb[1].mxu1 }
 0x186   :  { %v208_v6 = vpop.f32.mrb[0].mxu0 }
 0x187   :  { %v5123_v7 = vadd.f32 %v208_v6, %v5117_v4  ;;  %v210_v8 = vpop.f32.mrb[1].mxu0 }
 0x188   :  { %v5126_v9 = vadd.f32 %v210_v8, %v5120_v5 }
 0x189   :  { %v293_v10 = vadd.f32 %v288_v61, %v5123_v7 }
 0x18a   :  { %v294_v11 = vadd.f32 %v290_v62, %v5126_v9 }
 0x18b   :  { %4796 = vtanh.f32 %v293_v10 }
 0x18c   :  { %4798 = vtanh.f32 %v294_v11 }
 0x195   :  { %v4797_v14 = vpop.eup %4796 }
 0x196   :  { %v297_v15 = vmul.f32 0.5, %v4797_v14  ;;  %v4799_v17 = vpop.eup %4798 }
 0x197   :  { %v299_v24 = vmul.f32 0.5, %v4799_v17 }
 0x198   :  { %v298_v16 = vadd.f32 0.5, %v297_v15 }
 0x199   :  { %v300_v27 = vadd.f32 0.5, %v299_v24 }
 0x19a   :  { %v302_v18 = vmul.f32 %v4799_v17, %v298_v16  ;;  %v301_v21 = vmul.f32 0.0, %v298_v16 }
 0x19c   :  { %304 = vrot.lane.b32.xlu1 %v302_v18, %s5005_s2 }
 0x1a0   :  { %105 = vperm.xlu1 %4724, %v97_v19  }
 0x1a4   :  { %4725 = vset.pattern.permute.xlu1 %v5003_v20 }
 0x1a5   :  { %115 = vperm.xlu1 %4725, %v97_v19  }
 0x20e   :  { %v305_v22 = vpop.permute.xlu1 %304 }
 0x20f   :  { %v307_v23 = vadd.f32 %v305_v22, %v301_v21 }
 0x211   :  { %4800 = vtanh.f32 %v307_v23  ;;  %v401_v49 = vrot.slane %v307_v23, 6 }
 0x21b   :  { %v4801_v28 = vpop.eup %4800 }
 0x21c   :  { %v5135_v29 = vmul.f32 %v4801_v28, %v300_v27 }
 0x21e   :  { %311 = vrot.lane.b32.xlu0 %v5135_v29, %s5005_s2 }
 0x21f   :  { %v106_v30 = vpop.permute.xlu1 %105 }
 0x220   :  { %v109_v31 = vmul.f32 %v106_v30, %v75_v53 }
 0x224   :  { %v116_v32 = vpop.permute.xlu1 %115 }
 0x225   :  { %v119_v33 = vmul.f32 %v116_v32, %v76_v54 }
 0x227   :  { %v121_v34 = vadd.f32 %v119_v33, %v109_v31 }
 0x229   :  { %v123_v35 = vadd.f32 %v121_v34, %v77_v58 }
 0x22b   :  { %3872 = vmatmul.mubr.msk.f32.gmra.mrb[2].mxu0 %vm135_vm0, %v123_v35 }
 0x22c   :  { %379 = vmatprep.mubr.f32.mxu0 %v5004_v48 }
 0x290   :  { %v312_v20 = vpop.permute.xlu0 %311 }
 0x291   :  { %3873 = vmatmul.mubr.msk.f32.vlgmr.msra.gmra.mrb[4].mxu0 %vm135_vm0, %v312_v20 }
 0x292   :  { %4403 = vmatpush1.bf16.msra.mxu0 %v5065_v13  ;;  %585 = vmatprep.mubr.f32.mxu0 %v5004_v48 }
 0x293   :  { %4405 = vmatprep.subr.bf16.mxu0 %v5070_v25 }
 0x296   :  { %4407 = vmatpush1.bf16.msra.mxu0 %v5072_v26 }
 0x297   :  { %4409 = vmatprep.subr.bf16.mxu0 %v5075_v36 }
 0x29a   :  { %4411 = vmatpush1.bf16.msra.mxu0 %v5078_v40 }
 0x29b   :  { %4413 = vmatprep.subr.bf16.mxu0 %v5082_v50 }
 0x29e   :  { %4415 = vmatpush1.bf16.msra.mxu0 %v5086_v51 }
 0x29f   :  { %4433 = vmatprep.subr.bf16.mxu0 %v5063_v12 }
 0x2fe   :  { %v5151_v37 = vpop.f32.mrb[2].mxu0 }
 0x2ff   :  { %v5153_v38 = vpop.f32.mrb[3].mxu0 }
 0x364   :  { %v381_v39 = vpop.f32.mrb[4].mxu0 }
 0x365   :  { %v388_v41 = vrot.slane %v381_v39, 6  ;;  %v383_v42 = vpop.f32.mrb[5].mxu0 }
 0x366   :  { %v389_v43 = vrot.slane %v383_v42, 6 }
 0x367   :  { %v392_v44 = vadd.f32 %v388_v41, %v5123_v7 }
 0x368   :  { %v393_v45 = vadd.f32 %v389_v43, %v5126_v9 }
 0x369   :  { %4802 = vtanh.f32 %v392_v44 }
 0x36a   :  { %4804 = vtanh.f32 %v393_v45 }
 0x373   :  { %v4803_v46 = vpop.eup %4802 }
 0x374   :  { %v396_v47 = vmul.f32 0.5, %v4803_v46  ;;  %v4805_v53 = vpop.eup %4804 }
 0x375   :  { %v398_v58 = vmul.f32 0.5, %v4805_v53 }
 0x376   :  { %v397_v52 = vadd.f32 0.5, %v396_v47 }
 0x377   :  { %v399_v59 = vadd.f32 0.5, %v398_v58 }
 0x378   :  { %v404_v54 = vmul.f32 %v4805_v53, %v397_v52  ;;  %v403_v55 = vmul.f32 %v401_v49, %v397_v52 }
 0x37a   :  { %406 = vrot.lane.b32.xlu1 %v404_v54, %s5005_s2 }
 0x3ec   :  { %v407_v56 = vpop.permute.xlu1 %406 }
 0x3ed   :  { %v409_v57 = vadd.f32 %v407_v56, %v403_v55 }
 0x3ef   :  { %4806 = vtanh.f32 %v409_v57  ;;  %v504_v16 = vrot.slane %v409_v57, 6 }
 0x3f9   :  { %v4807_v60 = vpop.eup %4806 }
 0x3fa   :  { %v411_v61 = vmul.f32 %v4807_v60, %v399_v59  ;;  %v5204_v59 = vadd.f32 %v5151_v37, %v5117_v4 }
 0x3fc   :  { %v413_v62 = vrot.slane %v411_v61, 2  ;;  %v1024_v31 = vsel %vm1023_vm1, %v5135_v29, %v411_v61  ;;  %v5208_v61 = vadd.f32 %v5153_v38, %v5120_v5 }
 0x3fe   :  { %414 = vrot.lane.b32.xlu0 %v413_v62, %s5005_s2 }
 0x470   :  { %v415_v63 = vpop.permute.xlu0 %414 }
 0x471   :  { %3874 = vmatmul.mubr.msk.f32.vlgmr.msra.gmra.mrb[2].mxu1 %vm135_vm0, %v415_v63 }
 0x472   :  { %4419 = vmatpush1.bf16.msra.mxu1 %v5065_v13  ;;  %688 = vmatprep.mubr.f32.mxu1 %v5004_v48 }
 0x473   :  { %4421 = vmatprep.subr.bf16.mxu1 %v5070_v25 }
 0x476   :  { %4423 = vmatpush1.bf16.msra.mxu1 %v5072_v26 }
 0x477   :  { %4425 = vmatprep.subr.bf16.mxu1 %v5075_v36 }
 0x47a   :  { %4427 = vmatpush1.bf16.msra.mxu1 %v5078_v40 }
 0x47b   :  { %4429 = vmatprep.subr.bf16.mxu1 %v5082_v50 }
 0x47e   :  { %4431 = vmatpush1.bf16.msra.mxu1 %v5086_v51 }
 0x47f   :  { %4449 = vmatprep.subr.bf16.mxu1 %v5063_v12 }
 0x544   :  { %v484_v0 = vpop.f32.mrb[2].mxu1 }
 0x545   :  { %v491_v2 = vrot.slane %v484_v0, 4  ;;  %v486_v6 = vpop.f32.mrb[3].mxu1 }
 0x546   :  { %v492_v8 = vrot.slane %v486_v6, 4 }
 0x547   :  { %v495_v10 = vadd.f32 %v491_v2, %v5123_v7 }
 0x548   :  { %v496_v11 = vadd.f32 %v492_v8, %v5126_v9 }
 0x549   :  { %4808 = vtanh.f32 %v495_v10 }
 0x54a   :  { %4810 = vtanh.f32 %v496_v11 }
 0x553   :  { %v4809_v14 = vpop.eup %4808 }
 0x554   :  { %v499_v15 = vmul.f32 0.5, %v4809_v14  ;;  %v4811_v18 = vpop.eup %4810 }
 0x555   :  { %v501_v24 = vmul.f32 0.5, %v4811_v18 }
 0x556   :  { %v500_v17 = vadd.f32 0.5, %v499_v15 }
 0x557   :  { %v502_v27 = vadd.f32 0.5, %v501_v24 }
 0x558   :  { %v507_v19 = vmul.f32 %v4811_v18, %v500_v17  ;;  %v506_v21 = vmul.f32 %v504_v16, %v500_v17 }
 0x55a   :  { %509 = vrot.lane.b32.xlu1 %v507_v19, %s5005_s2 }
 0x5cc   :  { %v510_v22 = vpop.permute.xlu1 %509 }
 0x5cd   :  { %v512_v23 = vadd.f32 %v510_v22, %v506_v21 }
 0x5cf   :  { %4812 = vtanh.f32 %v512_v23  ;;  %v607_v45 = vrot.slane %v512_v23, 6 }
 0x5d9   :  { %v4813_v28 = vpop.eup %4812 }
 0x5da   :  { %v514_v30 = vmul.f32 %v4813_v28, %v502_v27 }
 0x5dc   :  { %v516_v32 = vrot.slane %v514_v30, 4  ;;  %v1026_v33 = vsel %vm1025_vm2, %v1024_v31, %v514_v30 }
 0x5de   :  { %517 = vrot.lane.b32.xlu0 %v516_v32, %s5005_s2 }
 0x650   :  { %v518_v34 = vpop.permute.xlu0 %517 }
 0x651   :  { %3875 = vmatmul.mubr.msk.f32.vlgmr.msra.gmra.mrb[6].mxu0 %vm135_vm0, %v518_v34 }
 0x652   :  { %4435 = vmatpush1.bf16.msra.mxu0 %v5065_v13  ;;  %784 = vmatprep.mubr.f32.mxu0 %v5004_v48 }
 0x653   :  { %4437 = vmatprep.subr.bf16.mxu0 %v5070_v25 }
 0x656   :  { %4439 = vmatpush1.bf16.msra.mxu0 %v5072_v26 }
 0x657   :  { %4441 = vmatprep.subr.bf16.mxu0 %v5075_v36 }
 0x65a   :  { %4443 = vmatpush1.bf16.msra.mxu0 %v5078_v40 }
 0x65b   :  { %4445 = vmatprep.subr.bf16.mxu0 %v5082_v50 }
 0x65e   :  { %4447 = vmatpush1.bf16.msra.mxu0 %v5086_v51 }
 0x65f   :  { %4465 = vmatprep.subr.bf16.mxu0 %v5063_v12 }
 0x724   :  { %v587_v29 = vpop.f32.mrb[6].mxu0 }
 0x725   :  { %v594_v35 = vrot.slane %v587_v29, 2  ;;  %v589_v20 = vpop.f32.mrb[7].mxu0 }
 0x726   :  { %v595_v39 = vrot.slane %v589_v20, 2 }
 0x727   :  { %v598_v41 = vadd.f32 %v594_v35, %v5123_v7 }
 0x728   :  { %v599_v42 = vadd.f32 %v595_v39, %v5126_v9 }
 0x729   :  { %4814 = vtanh.f32 %v598_v41 }
 0x72a   :  { %4816 = vtanh.f32 %v599_v42 }
 0x733   :  { %v4815_v43 = vpop.eup %4814 }
 0x734   :  { %v602_v44 = vmul.f32 0.5, %v4815_v43  ;;  %v4817_v47 = vpop.eup %4816 }
 0x735   :  { %v604_v54 = vmul.f32 0.5, %v4817_v47 }
 0x736   :  { %v603_v46 = vadd.f32 0.5, %v602_v44 }
 0x737   :  { %v605_v55 = vadd.f32 0.5, %v604_v54  ;;  %v1033_v54 = vld [vmem:[#allocation5 + $0x8] sm:$0xff] }
 0x738   :  { %v610_v49 = vmul.f32 %v4817_v47, %v603_v46  ;;  %v609_v52 = vmul.f32 %v607_v45, %v603_v46 }
 0x73a   :  { %612 = vrot.lane.b32.xlu1 %v610_v49, %s5005_s2 }
 0x7ac   :  { %v613_v12 = vpop.permute.xlu1 %612 }
 0x7ad   :  { %v615_v53 = vadd.f32 %v613_v12, %v609_v52 }
 0x7af   :  { %4818 = vtanh.f32 %v615_v53  ;;  %v704_v8 = vrot.slane %v615_v53, 6 }
 0x7b9   :  { %v4819_v56 = vpop.eup %4818 }
 0x7ba   :  { %v617_v7 = vmul.f32 %v4819_v56, %v605_v55  ;;  %v1035_v55 = vld [vmem:[#allocation5 + $0x18] sm:$0xff]  ;;  %v1032_v56 = vld [vmem:[#allocation5] sm:$0xff] }
 0x7bc   :  { %v619_v57 = vrot.slane %v617_v7, 6  ;;  %v5190_v9 = vsel %vm1027_vm3, %v1026_v33, %v617_v7  ;;  %v4480_v7 = vpack.c.bf16 %v1035_v55, %v1033_v54 }
 0x7be   :  { %620 = vrot.lane.b32.xlu0 %v619_v57, %s5005_s2  ;;  %v1034_v57 = vld [vmem:[#allocation5 + $0x10] sm:$0xff] }
 0x830   :  { %v621_v58 = vpop.permute.xlu0 %620 }
 0x831   :  { %3876 = vmatmul.mubr.msk.f32.vlgmr.msra.gmra.mrb[4].mxu1 %vm135_vm0, %v621_v58  ;;  %v1037_v58 = vld [vmem:[#allocation5 + $0x28] sm:$0xff] }
 0x832   :  { %4451 = vmatpush1.bf16.msra.mxu1 %v5065_v13  ;;  %887 = vmatprep.mubr.f32.mxu1 %v5004_v48 }
 0x833   :  { %4453 = vmatprep.subr.bf16.mxu1 %v5070_v25 }
 0x836   :  { %4455 = vmatpush1.bf16.msra.mxu1 %v5072_v26 }
 0x837   :  { %4457 = vmatprep.subr.bf16.mxu1 %v5075_v36 }
 0x83a   :  { %4459 = vmatpush1.bf16.msra.mxu1 %v5078_v40 }
 0x83b   :  { %4461 = vmatprep.subr.bf16.mxu1 %v5082_v50 }
 0x83e   :  { %4463 = vmatpush1.bf16.msra.mxu1 %v5086_v51 }
 0x83f   :  { %4481 = vmatprep.subr.bf16.mxu1 %v4480_v7 }
 0x904   :  { %v690_v60 = vpop.f32.mrb[4].mxu1 }
 0x905   :  { %v695_v62 = vadd.f32 %v690_v60, %v5204_v59  ;;  %v692_v63 = vpop.f32.mrb[5].mxu1  ;;  %v1039_v60 = vld [vmem:[#allocation5 + $0x38] sm:$0xff] }
 0x906   :  { %v696_v0 = vadd.f32 %v692_v63, %v5208_v61  ;;  %v4484_v63 = vpack.c.bf16 %v1039_v60, %v1037_v58 }
 0x907   :  { %4820 = vtanh.f32 %v695_v62  ;;  %v4482_v62 = vpack.c.bf16 %v1034_v57, %v1032_v56 }
 0x908   :  { %4822 = vtanh.f32 %v696_v0  ;;  %v1036_v0 = vld [vmem:[#allocation5 + $0x20] sm:$0xff] }
 0x911   :  { %v4821_v2 = vpop.eup %4820 }
 0x912   :  { %v699_v6 = vmul.f32 0.5, %v4821_v2  ;;  %v4823_v11 = vpop.eup %4822  ;;  %v1038_v2 = vld [vmem:[#allocation5 + $0x30] sm:$0xff] }
 0x913   :  { %v701_v5 = vmul.f32 0.5, %v4823_v11 }
 0x914   :  { %v700_v10 = vadd.f32 0.5, %v699_v6  ;;  %v1041_v6 = vld [vmem:[#allocation5 + $0x48] sm:$0xff] }
 0x915   :  { %v702_v38 = vadd.f32 0.5, %v701_v5 }
 0x916   :  { %v707_v14 = vmul.f32 %v4823_v11, %v700_v10  ;;  %v706_v4 = vmul.f32 %v704_v8, %v700_v10  ;;  %v1043_v8 = vld [vmem:[#allocation5 + $0x58] sm:$0xff]  ;;  %v4486_v10 = vpack.c.bf16 %v1038_v2, %v1036_v0 }
 0x917   :  { %v4488_v11 = vpack.c.bf16 %v1043_v8, %v1041_v6 }
 0x918   :  { %709 = vrot.lane.b32.xlu1 %v707_v14, %s5005_s2  ;;  %v1040_v14 = vld [vmem:[#allocation5 + $0x40] sm:$0xff] }
 0x98a   :  { %v710_v37 = vpop.permute.xlu1 %709 }
 0x98b   :  { %v712_v15 = vadd.f32 %v710_v37, %v706_v4  ;;  %v1042_v4 = vld [vmem:[#allocation5 + $0x50] sm:$0xff] }
 0x98c   :  { %v4490_v37 = vpack.c.bf16 %v1042_v4, %v1040_v14 }
 0x98d   :  { %4824 = vtanh.f32 %v712_v15  ;;  %v806_v27 = vrot.slane %v712_v15, 6 }
 0x997   :  { %v4825_v16 = vpop.eup %4824 }
 0x998   :  { %v5213_v17 = vmul.f32 %v4825_v16, %v702_v38  ;;  %v1045_v38 = vld [vmem:[#allocation5 + $0x68] sm:$0xff]  ;;  %v1047_v16 = vld [vmem:[#allocation5 + $0x78] sm:$0xff] }
 0x99a   :  { %716 = vrot.lane.b32.xlu0 %v5213_v17, %s5005_s2 }
 0xa0c   :  { %v717_v18 = vpop.permute.xlu0 %716 }
 0xa0d   :  { %3877 = vmatmul.mubr.msk.f32.vlgmr.msra.gmra.mrb[8].mxu0 %vm135_vm0, %v717_v18  ;;  %v4492_v18 = vpack.c.bf16 %v1047_v16, %v1045_v38 }
 0xa0e   :  { %4467 = vmatpush1.bf16.msra.mxu0 %v5065_v13  ;;  %990 = vmatprep.mubr.f32.mxu0 %v5004_v48 }
 0xa0f   :  { %4469 = vmatprep.subr.bf16.mxu0 %v5070_v25 }
 0xa12   :  { %4471 = vmatpush1.bf16.msra.mxu0 %v5072_v26 }
 0xa13   :  { %4473 = vmatprep.subr.bf16.mxu0 %v5075_v36 }
 0xa16   :  { %4475 = vmatpush1.bf16.msra.mxu0 %v5078_v40 }
 0xa17   :  { %4477 = vmatprep.subr.bf16.mxu0 %v5082_v50 }
 0xa1a   :  { %4479 = vmatpush1.bf16.msra.mxu0 %v5086_v51 }
 0xae0   :  { %v786_v19 = vpop.f32.mrb[8].mxu0 }
 0xae1   :  { %v793_v21 = vrot.slane %v786_v19, 6  ;;  %v788_v22 = vpop.f32.mrb[9].mxu0  ;;  %v1044_v19 = vld [vmem:[#allocation5 + $0x60] sm:$0xff] }
 0xae2   :  { %v794_v23 = vrot.slane %v788_v22, 6 }
 0xae3   :  { %v797_v13 = vadd.f32 %v793_v21, %v5204_v59  ;;  %v1046_v21 = vld [vmem:[#allocation5 + $0x70] sm:$0xff] }
 0xae4   :  { %v798_v24 = vadd.f32 %v794_v23, %v5208_v61  ;;  %v4494_v22 = vpack.c.bf16 %v1046_v21, %v1044_v19 }
 0xae5   :  { %4826 = vtanh.f32 %v797_v13 }
 0xae6   :  { %4828 = vtanh.f32 %v798_v24 }
 0xaef   :  { %v4827_v25 = vpop.eup %4826 }
 0xaf0   :  { %v801_v26 = vmul.f32 0.5, %v4827_v25  ;;  %v4829_v28 = vpop.eup %4828 }
 0xaf1   :  { %v803_v31 = vmul.f32 0.5, %v4829_v28 }
 0xaf2   :  { %v802_v36 = vadd.f32 0.5, %v801_v26 }
 0xaf3   :  { %v804_v32 = vadd.f32 0.5, %v803_v31 }
 0xaf4   :  { %v809_v40 = vmul.f32 %v4829_v28, %v802_v36  ;;  %v808_v30 = vmul.f32 %v806_v27, %v802_v36 }
 0xaf6   :  { %811 = vrot.lane.b32.xlu1 %v809_v40, %s5005_s2 }
 0xb68   :  { %v812_v50 = vpop.permute.xlu1 %811 }
 0xb69   :  { %v814_v51 = vadd.f32 %v812_v50, %v808_v30  ;;  %v1073_v30 = vld [vmem:[#allocation2 + $0x110] ss:$8 sm:$0x3] }
 0xb6a   :  { %v1085_v31 = vrot.slane %v1073_v30, %v5112_v1 }
 0xb6b   :  { %4830 = vtanh.f32 %v814_v51  ;;  %v909_v47 = vrot.slane %v814_v51, 6 }
 0xb75   :  { %v4831_v33 = vpop.eup %4830 }
 0xb76   :  { %v816_v34 = vmul.f32 %v4831_v33, %v804_v32  ;;  %v1089_v33 = vrot.slane %v1073_v30, %v5114_v3 }
 0xb78   :  { %v818_v29 = vrot.slane %v816_v34, 2  ;;  %v1029_v26 = vsel %vm1023_vm1, %v5213_v17, %v816_v34 }
 0xb7a   :  { %819 = vrot.lane.b32.xlu0 %v818_v29, %s5005_s2 }
 0xbec   :  { %v820_v35 = vpop.permute.xlu0 %819 }
 0xbed   :  { %3878 = vmatmul.mubr.msk.f32.vlgmr.msra.gmra.mrb[6].mxu1 %vm135_vm0, %v820_v35 }
 0xbee   :  { %1166 = vmatprep.mubr.f32.mxu1 %v5004_v48  ;;  %4483 = vmatpush1.bf16.msra.mxu1 %v4482_v62 }
 0xbef   :  { %4485 = vmatprep.subr.bf16.mxu1 %v4484_v63 }
 0xbf2   :  { %4487 = vmatpush1.bf16.msra.mxu1 %v4486_v10 }
 0xbf3   :  { %4489 = vmatprep.subr.bf16.mxu1 %v4488_v11 }
 0xbf6   :  { %4491 = vmatpush1.bf16.msra.mxu1 %v4490_v37 }
 0xbf7   :  { %4493 = vmatprep.subr.bf16.mxu1 %v4492_v18 }
 0xbfa   :  { %4495 = vmatpush1.bf16.msra.mxu1 %v4494_v22 }
 0xcc0   :  { %v889_v20 = vpop.f32.mrb[6].mxu1 }
 0xcc1   :  { %v896_v39 = vrot.slane %v889_v20, 4  ;;  %v891_v41 = vpop.f32.mrb[7].mxu1 }
 0xcc2   :  { %v897_v42 = vrot.slane %v891_v41, 4 }
 0xcc3   :  { %v900_v43 = vadd.f32 %v896_v39, %v5204_v59 }
 0xcc4   :  { %v901_v44 = vadd.f32 %v897_v42, %v5208_v61 }
 0xcc5   :  { %4832 = vtanh.f32 %v900_v43 }
 0xcc6   :  { %4834 = vtanh.f32 %v901_v44 }
 0xccf   :  { %v4833_v45 = vpop.eup %4832 }
 0xcd0   :  { %v904_v46 = vmul.f32 0.5, %v4833_v45  ;;  %v4835_v52 = vpop.eup %4834 }
 0xcd1   :  { %v906_v23 = vmul.f32 0.5, %v4835_v52 }
 0xcd2   :  { %v905_v49 = vadd.f32 0.5, %v904_v46 }
 0xcd3   :  { %v907_v13 = vadd.f32 0.5, %v906_v23 }
 0xcd4   :  { %v912_v12 = vmul.f32 %v4835_v52, %v905_v49  ;;  %v911_v53 = vmul.f32 %v909_v47, %v905_v49 }
 0xcd6   :  { %914 = vrot.lane.b32.xlu1 %v912_v12, %s5005_s2 }
 0xd48   :  { %v915_v15 = vpop.permute.xlu1 %914 }
 0xd49   :  { %v917_v5 = vadd.f32 %v915_v15, %v911_v53 }
 0xd4b   :  { %4836 = vtanh.f32 %v917_v5  ;;  %v1012_v43 = vrot.slane %v917_v5, 6 }
 0xd55   :  { %v4837_v24 = vpop.eup %4836 }
 0xd56   :  { %v919_v25 = vmul.f32 %v4837_v24, %v907_v13 }
 0xd58   :  { %v921_v27 = vrot.slane %v919_v25, 4  ;;  %v1030_v36 = vsel %vm1025_vm2, %v1029_v26, %v919_v25 }
 0xd5a   :  { %922 = vrot.lane.b32.xlu0 %v921_v27, %s5005_s2 }
 0xd5e   :  { %1094 = vrot.lane.b32.xlu0 %v5190_v9, %s5005_s2 }
 0xdcc   :  { %v923_v28 = vpop.permute.xlu0 %922 }
 0xdcd   :  { %3879 = vmatmul.mubr.msk.f32.vlgmr.msra.gmra.mrb[10].mxu0 %vm135_vm0, %v923_v28 }
 0xdd0   :  { %v1095_v40 = vpop.permute.xlu0 %1094 }
 0xdd1   :  { %3880 = vmatmul.mubr.msk.f32.vlgmr.msra.gmra.mrb[8].mxu1 %vm135_vm0, %v1095_v40 }
 0xdd2   :  { %1172 = vmatprep.mubr.f32.mxu1 %v5004_v48 }
 0xea0   :  { %v992_v50 = vpop.f32.mrb[10].mxu0 }
 0xea1   :  { %v999_v51 = vrot.slane %v992_v50, 2  ;;  %v994_v17 = vpop.f32.mrb[11].mxu0  ;;  %v5297_v50 = vld [vmem:[#allocation2 + $0x1c0] sm:$0xff] }
 0xea2   :  { %v1000_v32 = vrot.slane %v994_v17, 2 }
 0xea3   :  { %v1003_v34 = vadd.f32 %v999_v51, %v5204_v59  ;;  %v5299_v51 = vld [vmem:[#allocation2 + $0x1b0] sm:$0xff] }
 0xea4   :  { %v1168_v29 = vpop.f32.mrb[8].mxu1  ;;  %v1004_v35 = vadd.f32 %v1000_v32, %v5208_v61 }
 0xea5   :  { %4838 = vtanh.f32 %v1003_v34  ;;  %v1169_v20 = vadd.f32 %v1168_v29, %v1085_v31  ;;  %v1170_v39 = vpop.f32.mrb[9].mxu1 }
 0xea6   :  { %v1171_v41 = vadd.f32 %v1170_v39, %v1089_v33  ;;  %4840 = vtanh.f32 %v1004_v35 }
 0xea7   :  { %1181 = vrot.lane.b32.xlu0 %v1169_v20, %s5006_s0  ;;  %4084 = vmatprep.mubr.msk.f32.mxu0 %vm1217_vm4, %v1169_v20 }
 0xeab   :  { %1185 = vrot.lane.b32.xlu0 %v1169_v20, %s5007_s14 }
 0xeaf   :  { %v4839_v42 = vpop.eup %4838  ;;  %1189 = vrot.lane.b32.xlu0 %v1169_v20, %s5008_s15 }
 0xeb0   :  { %v1007_v59 = vmul.f32 0.5, %v4839_v42  ;;  %v4841_v61 = vpop.eup %4840 }
 0xeb1   :  { %v1009_v52 = vmul.f32 0.5, %v4841_v61 }
 0xeb2   :  { %v1008_v44 = vadd.f32 0.5, %v1007_v59 }
 0xeb3   :  { %v1010_v12 = vadd.f32 0.5, %v1009_v52 }
 0xeb4   :  { %v1015_v45 = vmul.f32 %v4841_v61, %v1008_v44  ;;  %v1014_v46 = vmul.f32 %v1012_v43, %v1008_v44 }
 0xeb6   :  { %1017 = vrot.lane.b32.xlu1 %v1015_v45, %s5005_s2 }
 0xf19   :  { %v1182_v7 = vpop.permute.xlu0 %1181 }
 0xf1d   :  { %v1186_v6 = vpop.permute.xlu0 %1185 }
 0xf21   :  { %v1190_v8 = vpop.permute.xlu0 %1189 }
 0xf28   :  { %v1018_v47 = vpop.permute.xlu1 %1017 }
 0xf29   :  { %v1020_v49 = vadd.f32 %v1018_v47, %v1014_v46 }
 0xf2b   :  { %4842 = vtanh.f32 %v1020_v49 }
 0xf35   :  { %v4843_v53 = vpop.eup %4842 }
 0xf36   :  { %v1022_v54 = vmul.f32 %v4843_v53, %v1010_v12 }
 0xf38   :  { %v5254_v55 = vsel %vm1027_vm3, %v1030_v36, %v1022_v54 }
 0xf39   :  { %1096 = vrot.lane.b32.xlu1 %v5254_v55, %s5005_s2 }
 0xfab   :  { %v1097_v56 = vpop.permute.xlu1 %1096 }
 0xfac   :  { %3881 = vmatmul.mubr.msk.f32.gmra.mrb[10].mxu1 %vm135_vm0, %v1097_v56 }
 0xfad   :  { %4091 = vmatprep.mubr.msk.f32.mxu1 %vm1217_vm4, %v1182_v7 }
0x107f   :  { %v1174_v57 = vpop.f32.mrb[10].mxu1 }
0x1080   :  { %v1175_v58 = vadd.f32 %v1174_v57, %v1085_v31  ;;  %v1176_v60 = vpop.f32.mrb[11].mxu1 }
0x1081   :  { %v1177_v62 = vadd.f32 %v1176_v60, %v1089_v33 }
0x1082   :  { %1183 = vrot.lane.b32.xlu1 %v1175_v58, %s5006_s0  ;;  %v4726_v63 = vpack.i.bf16 %v1175_v58, %v1169_v20 }
0x1083   :  { %v4520_v0 = vpack.c.bf16 %v1177_v62, %v1171_v41  ;;  %v5261_v2 = vpack.i.bf16 %v1177_v62, %v1171_v41 }
0x1084   :  { %4727 = vrot.lane.b32.xlu0 %v4726_v63, %s5005_s2 }
0x1086   :  { %1187 = vrot.lane.b32.xlu1 %v1175_v58, %s5007_s14 }
0x108a   :  { %1191 = vrot.lane.b32.xlu1 %v1175_v58, %s5008_s15 }
0x10f4   :  { %v1184_v10 = vpop.permute.xlu1 %1183 }
0x10f5   :  { %v4731_v11 = vpack.i.bf16 %v1184_v10, %v1182_v7 }
0x10f6   :  { %v4728_v14 = vpop.permute.xlu0 %4727 }
0x10f7   :  { %v4730_v4 = vunpack.i.h.bf16 %v4728_v14  ;;  %v4729_v37 = vunpack.i.l.bf16 %v4728_v14  ;;  %4732 = vrot.lane.b32.xlu1 %v4731_v11, %s5005_s2 }
0x10f8   :  { %v1188_v15 = vpop.permute.xlu1 %1187 }
0x10f9   :  { %v4496_v38 = vpack.c.bf16 %v4730_v4, %v4729_v37  ;;  %v4736_v16 = vpack.i.bf16 %v1188_v15, %v1186_v6 }
0x10fb   :  { %4737 = vrot.lane.b32.xlu0 %v4736_v16, %s5005_s2  ;;  %4498 = vmatprep.subr.msk.bf16.mxu0 %vm5269_vm5, %v4496_v38 }
0x10fc   :  { %v1192_v18 = vpop.permute.xlu1 %1191  ;;  %4501 = vmatpush3.bf16.xpose.msk.msra.mxu0 %vm5269_vm5, %v4496_v38 }
0x10fd   :  { %v4741_v19 = vpack.i.bf16 %v1192_v18, %v1190_v8 }
0x10ff   :  { %4742 = vrot.lane.b32.xlu1 %v4741_v19, %s5005_s2 }
0x1103   :  { %4085 = vmatmul.mubr.msk.f32.vlgmr.msra.gmra.mrb[12].mxu0 %vm1217_vm4, %v1175_v58 }
0x1104   :  { %4098 = vmatprep.mubr.msk.f32.mxu0 %vm1217_vm4, %v1186_v6 }
0x1169   :  { %v4733_v21 = vpop.permute.xlu1 %4732 }
0x116a   :  { %v4735_v22 = vunpack.i.h.bf16 %v4733_v21  ;;  %v4734_v23 = vunpack.i.l.bf16 %v4733_v21 }
0x116c   :  { %v4502_v13 = vpack.c.bf16 %v4735_v22, %v4734_v23 }
0x116d   :  { %v4738_v24 = vpop.permute.xlu0 %4737 }
0x116e   :  { %v4740_v25 = vunpack.i.h.bf16 %v4738_v24  ;;  %v4739_v26 = vunpack.i.l.bf16 %v4738_v24  ;;  %4504 = vmatprep.subr.msk.bf16.mxu1 %vm5269_vm5, %v4502_v13 }
0x116f   :  { %4507 = vmatpush3.bf16.xpose.msk.msra.mxu1 %vm5269_vm5, %v4502_v13 }
0x1170   :  { %v4508_v27 = vpack.c.bf16 %v4740_v25, %v4739_v26 }
0x1171   :  { %v4743_v36 = vpop.permute.xlu1 %4742 }
0x1172   :  { %v4745_v28 = vunpack.i.h.bf16 %v4743_v36  ;;  %v4744_v40 = vunpack.i.l.bf16 %v4743_v36  ;;  %4510 = vmatprep.subr.msk.bf16.mxu0 %vm5269_vm5, %v4508_v27 }
0x1173   :  { %4513 = vmatpush3.bf16.xpose.msk.msra.mxu0 %vm5269_vm5, %v4508_v27 }
0x1174   :  { %v4514_v30 = vpack.c.bf16 %v4745_v28, %v4744_v40 }
0x1176   :  { %4092 = vmatmul.mubr.msk.f32.vlgmr.msra.gmra.mrb[12].mxu1 %vm1217_vm4, %v1184_v10  ;;  %4516 = vmatprep.subr.msk.bf16.mxu1 %vm5269_vm5, %v4514_v30 }
0x1177   :  { %4519 = vmatpush3.bf16.xpose.msk.msra.mxu1 %vm5269_vm5, %v4514_v30  ;;  %4105 = vmatprep.mubr.msk.f32.mxu1 %vm1217_vm4, %v1190_v8 }
0x1178   :  { %4521 = vmatprep.subr.bf16.mxu1 %v4520_v0 }
0x117a   :  { %4099 = vmatmul.mubr.msk.f32.vlgmr.msra.gmra.mrb[14].mxu0 %vm1217_vm4, %v1188_v15 }
0x117e   :  { %4106 = vmatmul.mubr.msk.f32.vlgmr.msra.gmra.mrb[14].mxu1 %vm1217_vm4, %v1192_v18 }
0x117f   :  { %4523 = vmatpush3.bf16.msra.mxu1 %v4520_v0 }
0x11d6   :  { %v4086_v17 = vpop.f32.mrb[12].mxu0 }
0x11d7   :  { %v1298_v31 = vadd.f32 %v4086_v17, %v5297_v50  ;;  %v1292_v32 = vpop.f32.mrb[13].mxu0 }
0x11d8   :  { %v1293_v33 = vadd.f32 %v1292_v32, %v5299_v51 }
0x11d9   :  { %v1565_v34 = vsel %vm1217_vm4, %v1298_v31, -inf }
0x11da   :  { %1566 = vmax.xlane.f32.xlu1 %v1565_v34  ;;  %v1562_v29 = vsel %vm1217_vm4, %v1293_v33, -inf }
0x11db   :  { %1563 = vmax.xlane.f32.xlu0 %v1562_v29 }
0x1249   :  { %v4093_v35 = vpop.f32.mrb[12].mxu1 }
0x124a   :  { %v1385_v20 = vadd.f32 %v4093_v35, %v5297_v50  ;;  %v1379_v39 = vpop.f32.mrb[13].mxu1 }
0x124b   :  { %v1380_v41 = vadd.f32 %v1379_v39, %v5299_v51 }
0x124c   :  { %v1571_v42 = vsel %vm1217_vm4, %v1385_v20, -inf }
0x124d   :  { %v4100_v59 = vpop.f32.mrb[14].mxu0  ;;  %1572 = vmax.xlane.f32.xlu0 %v1571_v42  ;;  %v1568_v45 = vsel %vm1217_vm4, %v1380_v41, -inf }
0x124e   :  { %v1466_v43 = vpop.f32.mrb[15].mxu0  ;;  %v1472_v61 = vadd.f32 %v4100_v59, %v5297_v50 }
0x124f   :  { %v1467_v44 = vadd.f32 %v1466_v43, %v5299_v51 }
0x1250   :  { %v1577_v53 = vsel %vm1217_vm4, %v1472_v61, -inf }
0x1251   :  { %v4107_v46 = vpop.f32.mrb[14].mxu1  ;;  %1569 = vmax.xlane.f32.xlu0 %v1568_v45  ;;  %v1574_v47 = vsel %vm1217_vm4, %v1467_v44, -inf }
0x1252   :  { %v1553_v49 = vpop.f32.mrb[15].mxu1  ;;  %1575 = vmax.xlane.f32.xlu1 %v1574_v47  ;;  %v1559_v12 = vadd.f32 %v4107_v46, %v5297_v50 }
0x1253   :  { %v1554_v52 = vadd.f32 %v1553_v49, %v5299_v51 }
0x1254   :  { %v1583_v56 = vsel %vm1217_vm4, %v1559_v12, -inf }
0x1255   :  { %1578 = vmax.xlane.f32.xlu0 %v1577_v53  ;;  %v1580_v54 = vsel %vm1217_vm4, %v1554_v52, -inf }
0x1256   :  { %1581 = vmax.xlane.f32.xlu1 %v1580_v54 }
0x1259   :  { %1584 = vmax.xlane.f32.xlu0 %v1583_v56 }
0x1267   :  { %v1567_v7 = vpop.xlane.xlu1 %1566  ;;  %4747 = vrot.lane.b32.xlu1 %v5261_v2, %s5006_s0 }
0x1268   :  { %v1587_v57 = vsub.f32 %v1298_v31, %v1567_v7  ;;  %v1564_v60 = vpop.xlane.xlu0 %1563 }
0x1269   :  { %v1586_v62 = vsub.f32 %v1293_v33, %v1564_v60 }
0x126a   :  { %v1596_v58 = vmul.f32 1.442695, %v1587_v57 }
0x126b   :  { %v1594_v6 = vmul.f32 1.442695, %v1586_v62 }
0x126c   :  { %4844 = vpow2.f32 %v1596_v58 }
0x126d   :  { %4846 = vpow2.f32 %v1594_v6 }
0x1276   :  { %v5319_v63 = vpop.eup %4844 }
0x1277   :  { %v1613_v0 = vsel %vm1217_vm4, %v5319_v63, 0.0  ;;  %v4847_v8 = vpop.eup %4846 }
0x1278   :  { %1614 = vadd.xlane.f32.xlu0 %v1613_v0  ;;  %v1610_v10 = vsel %vm1217_vm4, %v4847_v8, 0.0 }
0x128b   :  { %1611 = vadd.xlane.f32.xlu1 %v1610_v10 }
0x12da   :  { %v1573_v11 = vpop.xlane.xlu0 %1572 }
0x12db   :  { %v1589_v14 = vsub.f32 %v1385_v20, %v1573_v11 }
0x12dd   :  { %v1600_v4 = vmul.f32 1.442695, %v1589_v14 }
0x12de   :  { %v1570_v37 = vpop.xlane.xlu0 %1569 }
0x12df   :  { %4848 = vpow2.f32 %v1600_v4  ;;  %v1588_v15 = vsub.f32 %v1380_v41, %v1570_v37  ;;  %v1576_v38 = vpop.xlane.xlu1 %1575 }
0x12e0   :  { %v1590_v16 = vsub.f32 %v1467_v44, %v1576_v38 }
0x12e1   :  { %v1598_v18 = vmul.f32 1.442695, %v1588_v15 }
0x12e2   :  { %v1602_v19 = vmul.f32 1.442695, %v1590_v16  ;;  %v1579_v21 = vpop.xlane.xlu0 %1578 }
0x12e3   :  { %4850 = vpow2.f32 %v1598_v18  ;;  %v1591_v22 = vsub.f32 %v1472_v61, %v1579_v21  ;;  %v1582_v23 = vpop.xlane.xlu1 %1581 }
0x12e4   :  { %v1592_v13 = vsub.f32 %v1554_v52, %v1582_v23  ;;  %4852 = vpow2.f32 %v1602_v19  ;;  %v1049_v23 = vld [vmem:[#allocation5 + $0x90] sm:$0xff] }
0x12e5   :  { %v1604_v24 = vmul.f32 1.442695, %v1591_v22  ;;  %v1048_v22 = vld [vmem:[#allocation5 + $0x80] sm:$0xff] }
0x12e6   :  { %v1606_v25 = vmul.f32 1.442695, %v1592_v13  ;;  %v1585_v26 = vpop.xlane.xlu0 %1584  ;;  %v4536_v13 = vpack.c.bf16 %v1049_v23, %v1048_v22  ;;  %v1077_v22 = vld [vmem:[#allocation2 + $0x114] ss:$0 sm:$0xff]  ;;  %v1056_v23 = vld [vmem:[#allocation5 + $0x88] sm:$0xff] }
0x12e7   :  { %4854 = vpow2.f32 %v1604_v24  ;;  %v1593_v27 = vsub.f32 %v1559_v12, %v1585_v26  ;;  %v4748_v36 = vpop.permute.xlu1 %4747  ;;  %v1050_v26 = vld [vmem:[#allocation5 + $0xa0] sm:$0xff] }
0x12e8   :  { %v4750_v28 = vunpack.i.h.bf16 %v4748_v36  ;;  %v4749_v40 = vunpack.i.l.bf16 %v4748_v36  ;;  %4856 = vpow2.f32 %v1606_v25 }
0x12e9   :  { %v4849_v30 = vpop.eup %4848  ;;  %v1608_v17 = vmul.f32 1.442695, %v1593_v27  ;;  %v1051_v27 = vld [vmem:[#allocation5 + $0xb0] sm:$0xff] }
0x12ea   :  { %v1619_v31 = vsel %vm1217_vm4, %v4849_v30, 0.0  ;;  %v4524_v32 = vpack.c.bf16 %v4750_v28, %v4749_v40  ;;  %v4540_v36 = vpack.c.bf16 %v1051_v27, %v1050_v26  ;;  %v1052_v28 = vld [vmem:[#allocation5 + $0xc0] sm:$0xff]  ;;  %v1053_v40 = vld [vmem:[#allocation5 + $0xd0] sm:$0xff]  ;;  %v1059_v26 = vld [vmem:[#allocation5 + $0xb8] sm:$0xff] }
0x12eb   :  { %4858 = vpow2.f32 %v1608_v17  ;;  %1620 = vadd.xlane.f32.xlu0 %v1619_v31  ;;  %v1054_v17 = vld [vmem:[#allocation5 + $0xe0] sm:$0xff]  ;;  %v1055_v31 = vld [vmem:[#allocation5 + $0xf0] sm:$0xff] }
0x12ec   :  { %4525 = vmatprep.subr.bf16.mxu1 %v4524_v32 }
0x12ed   :  { %v4851_v33 = vpop.eup %4850 }
0x12ee   :  { %v1616_v34 = vsel %vm1217_vm4, %v4851_v33, 0.0  ;;  %v4853_v29 = vpop.eup %4852 }
0x12ef   :  { %1617 = vadd.xlane.f32.xlu1 %v1616_v34  ;;  %v1622_v20 = vsel %vm1217_vm4, %v4853_v29, 0.0 }
0x12f1   :  { %v4855_v35 = vpop.eup %4854 }
0x12f2   :  { %v1625_v39 = vsel %vm1217_vm4, %v4855_v35, 0.0  ;;  %v4857_v41 = vpop.eup %4856 }
0x12f3   :  { %1623 = vadd.xlane.f32.xlu1 %v1622_v20  ;;  %1626 = vadd.xlane.f32.xlu0 %v1625_v39  ;;  %v1628_v59 = vsel %vm1217_vm4, %v4857_v41, 0.0 }
0x12f5   :  { %v4859_v42 = vpop.eup %4858 }
0x12f6   :  { %v1631_v43 = vsel %vm1217_vm4, %v4859_v42, 0.0 }
0x12f7   :  { %1629 = vadd.xlane.f32.xlu1 %v1628_v59  ;;  %1632 = vadd.xlane.f32.xlu0 %v1631_v43 }
0x1305   :  { %v1615_v44 = vpop.xlane.xlu0 %1614 }
0x1306   :  { %4860 = vrcp.f32 %v1615_v44 }
0x1308   :  { %4757 = vrot.lane.b32.xlu1 %v5261_v2, %s5008_s15 }
0x130d   :  { %4752 = vrot.lane.b32.xlu0 %v5261_v2, %s5007_s14 }
0x1310   :  { %v4861_v45 = vpop.eup %4860 }
0x1311   :  { %v1643_v49 = vmul.f32 %v4861_v45, %v5319_v63 }
0x1318   :  { %v1612_v61 = vpop.xlane.xlu1 %1611 }
0x1319   :  { %4862 = vrcp.f32 %v1612_v61 }
0x1323   :  { %v4863_v46 = vpop.eup %4862 }
0x1324   :  { %v1642_v47 = vmul.f32 %v4863_v46, %v4847_v8 }
0x1326   :  { %4112 = vmatprep.mubr.msk.f32.mxu1 %vm1217_vm4, %v1642_v47 }
0x1327   :  { %4113 = vmatmul.mubr.msk.f32.vlgmr.msra.gmra.mrb[16].mxu1 %vm1217_vm4, %v1643_v49 }
0x1328   :  { %4527 = vmatpush3.bf16.msra.mxu1 %v4524_v32  ;;  %v4548_v32 = vpack.c.bf16 %v1055_v31, %v1054_v17  ;;  %v1063_v17 = vld [vmem:[#allocation5 + $0xf8] sm:$0xff] }
0x1378   :  { %v1621_v52 = vpop.xlane.xlu0 %1620 }
0x1379   :  { %4864 = vrcp.f32 %v1621_v52 }
0x137c   :  { %v1618_v12 = vpop.xlane.xlu1 %1617 }
0x137d   :  { %4866 = vrcp.f32 %v1618_v12 }
0x1380   :  { %v1624_v53 = vpop.xlane.xlu1 %1623  ;;  %v1627_v2 = vpop.xlane.xlu0 %1626 }
0x1381   :  { %4868 = vrcp.f32 %v1624_v53  ;;  %v1074_v53 = vld [vmem:[#allocation2 + $0x111] ss:$0 sm:$0xff] }
0x1382   :  { %4870 = vrcp.f32 %v1627_v2 }
0x1383   :  { %v4865_v7 = vpop.eup %4864 }
0x1384   :  { %v1630_v54 = vpop.xlane.xlu1 %1629  ;;  %v1633_v56 = vpop.xlane.xlu0 %1632  ;;  %v1645_v63 = vmul.f32 %v4865_v7, %v4849_v30  ;;  %v4544_v30 = vpack.c.bf16 %v1053_v40, %v1052_v28  ;;  %v1061_v28 = vld [vmem:[#allocation5 + $0xd8] sm:$0xff] }
0x1385   :  { %4872 = vrcp.f32 %v1630_v54 }
0x1386   :  { %4874 = vrcp.f32 %v1633_v56 }
0x1387   :  { %v4867_v57 = vpop.eup %4866 }
0x1388   :  { %v4758_v58 = vpop.permute.xlu1 %4757  ;;  %v4753_v60 = vpop.permute.xlu0 %4752  ;;  %v1644_v62 = vmul.f32 %v4867_v57, %v4851_v33 }
0x1389   :  { %v4760_v0 = vunpack.i.h.bf16 %v4758_v58  ;;  %v4759_v6 = vunpack.i.l.bf16 %v4758_v58  ;;  %v4755_v8 = vunpack.i.h.bf16 %v4753_v60  ;;  %v4754_v10 = vunpack.i.l.bf16 %v4753_v60 }
0x138a   :  { %4119 = vmatprep.mubr.msk.f32.mxu1 %vm1217_vm4, %v1644_v62 }
0x138b   :  { %v4869_v11 = vpop.eup %4868  ;;  %v4532_v14 = vpack.c.bf16 %v4760_v0, %v4759_v6  ;;  %v4528_v4 = vpack.c.bf16 %v4755_v8, %v4754_v10  ;;  %4120 = vmatmul.mubr.msk.f32.vlgmr.msra.gmra.mrb[18].mxu1 %vm1217_vm4, %v1645_v63 }
0x138c   :  { %v4871_v37 = vpop.eup %4870  ;;  %v1646_v15 = vmul.f32 %v4869_v11, %v4853_v29 }
0x138d   :  { %4529 = vmatprep.subr.bf16.mxu0 %v4528_v4  ;;  %4533 = vmatprep.subr.bf16.mxu1 %v4532_v14  ;;  %v1647_v16 = vmul.f32 %v4871_v37, %v4855_v35 }
0x138e   :  { %4531 = vmatpush3.bf16.msra.mxu0 %v4528_v4  ;;  %4126 = vmatprep.mubr.msk.f32.mxu0 %vm1217_vm4, %v1646_v15 }
0x138f   :  { %v4873_v38 = vpop.eup %4872  ;;  %4535 = vmatpush3.bf16.msra.mxu1 %v4532_v14  ;;  %4537 = vmatprep.subr.bf16.mxu0 %v4536_v13 }
0x1390   :  { %v4875_v18 = vpop.eup %4874  ;;  %v1648_v19 = vmul.f32 %v4873_v38, %v4857_v41 }
0x1391   :  { %v1649_v21 = vmul.f32 %v4875_v18, %v4859_v42  ;;  %4127 = vmatmul.mubr.msk.f32.vlgmr.msra.gmra.mrb[16].mxu0 %vm1217_vm4, %v1647_v16 }
0x1392   :  { %4133 = vmatprep.mubr.msk.f32.mxu1 %vm1217_vm4, %v1648_v19  ;;  %4539 = vmatpush3.bf16.msra.mxu0 %v4536_v13  ;;  %v1057_v13 = vld [vmem:[#allocation5 + $0x98] sm:$0xff] }
0x1393   :  { %4134 = vmatmul.mubr.msk.f32.vlgmr.msra.gmra.mrb[20].mxu1 %vm1217_vm4, %v1649_v21  ;;  %4541 = vmatprep.subr.bf16.mxu0 %v4540_v36  ;;  %v1078_v21 = vld [vmem:[#allocation2 + $0x115] ss:$0 sm:$0xff] }
0x1396   :  { %4543 = vmatpush3.bf16.msra.mxu0 %v4540_v36  ;;  %v1060_v36 = vld [vmem:[#allocation5 + $0xc8] sm:$0xff] }
0x1397   :  { %4545 = vmatprep.subr.bf16.mxu0 %v4544_v30  ;;  %v4560_v40 = vpack.c.bf16 %v1061_v28, %v1060_v36 }
0x139a   :  { %4547 = vmatpush3.bf16.msra.mxu0 %v4544_v30  ;;  %v1062_v30 = vld [vmem:[#allocation5 + $0xe8] sm:$0xff] }
0x139b   :  { %4549 = vmatprep.subr.bf16.mxu0 %v4548_v32  ;;  %v4564_v31 = vpack.c.bf16 %v1063_v17, %v1062_v30 }
0x139e   :  { %4551 = vmatpush3.bf16.msra.mxu0 %v4548_v32 }
0x13fa   :  { %v4114_v24 = vpop.f32.mrb[16].mxu1 }
0x13fb   :  { %v1722_v25 = vpop.f32.mrb[17].mxu1 }
0x145e   :  { %v4121_v33 = vpop.f32.mrb[18].mxu1 }
0x145f   :  { %1978 = vrot.lane.b32.xlu0 %v4121_v33, %s5000_s23  ;;  %v1803_v34 = vpop.f32.mrb[19].mxu1 }
0x1460   :  { %1976 = vrot.lane.b32.xlu1 %v1803_v34, %s5000_s23 }
0x1464   :  { %v4128_v29 = vpop.f32.mrb[16].mxu0 }
0x1465   :  { %1986 = vrot.lane.b32.xlu0 %v4128_v29, %s5009_s16  ;;  %v1884_v35 = vpop.f32.mrb[17].mxu0 }
0x1466   :  { %v4135_v20 = vpop.f32.mrb[20].mxu1  ;;  %1984 = vrot.lane.b32.xlu1 %v1884_v35, %s5009_s16 }
0x1467   :  { %v1965_v39 = vpop.f32.mrb[21].mxu1 }
0x1469   :  { %1994 = vrot.lane.b32.xlu0 %v4135_v20, %s5010_s17 }
0x146a   :  { %1992 = vrot.lane.b32.xlu1 %v1965_v39, %s5010_s17  ;;  %v1064_v39 = vld [vmem:[#allocation5 + $0x100] sm:$0xff] }
0x14d1   :  { %v1979_v41 = vpop.permute.xlu0 %1978 }
0x14d2   :  { %v1977_v42 = vpop.permute.xlu1 %1976  ;;  %v1999_v45 = vsel %vm1217_vm4, %v4114_v24, %v1979_v41  ;;  %v1058_v24 = vld [vmem:[#allocation5 + $0xa8] sm:$0xff]  ;;  %v1065_v41 = vld [vmem:[#allocation5 + $0x110] sm:$0xff] }
0x14d3   :  { %v1998_v44 = vsel %vm1217_vm4, %v1722_v25, %v1977_v42  ;;  %v4552_v25 = vpack.c.bf16 %v1057_v13, %v1056_v23  ;;  %v4556_v27 = vpack.c.bf16 %v1059_v26, %v1058_v24  ;;  %v1066_v42 = vld [vmem:[#allocation5 + $0x120] sm:$0xff] }
0x14d5   :  { %4553 = vmatprep.subr.bf16.mxu1 %v4552_v25 }
0x14d6   :  { %4555 = vmatpush3.bf16.msra.mxu1 %v4552_v25 }
0x14d7   :  { %v1987_v59 = vpop.permute.xlu0 %1986  ;;  %4557 = vmatprep.subr.bf16.mxu1 %v4556_v27 }
0x14d8   :  { %v1985_v43 = vpop.permute.xlu1 %1984  ;;  %v2002_v49 = vsel %vm2000_vm6, %v1999_v45, %v1987_v59  ;;  %v4568_v59 = vpack.c.bf16 %v1065_v41, %v1064_v39  ;;  %v2380_v39 = vld [vmem:[#allocation5 + $0x188] sm:$0xff]  ;;  %v2382_v41 = vld [vmem:[#allocation5 + $0x198] sm:$0xff] }
0x14d9   :  { %v2001_v46 = vsel %vm2000_vm6, %v1998_v44, %v1985_v43  ;;  %v1067_v43 = vld [vmem:[#allocation5 + $0x130] sm:$0xff] }
0x14da   :  { %4559 = vmatpush3.bf16.msra.mxu1 %v4556_v27  ;;  %v4572_v44 = vpack.c.bf16 %v1067_v43, %v1066_v42  ;;  %4569 = vmatprep.subr.bf16.mxu0 %v4568_v59  ;;  %v2379_v42 = vld [vmem:[#allocation5 + $0x180] sm:$0xff]  ;;  %v2381_v43 = vld [vmem:[#allocation5 + $0x190] sm:$0xff] }
0x14db   :  { %v1995_v61 = vpop.permute.xlu0 %1994  ;;  %4561 = vmatprep.subr.bf16.mxu1 %v4560_v40 }
0x14dc   :  { %v1993_v47 = vpop.permute.xlu1 %1992  ;;  %v2005_v12 = vsel %vm2003_vm7, %v2002_v49, %v1995_v61 }
0x14dd   :  { %v2004_v52 = vsel %vm2003_vm7, %v2001_v46, %v1993_v47 }
0x14de   :  { %4152 = vmatprep.mubr.msk.f32.mxu0 %vm135_vm0, %v2004_v52  ;;  %4563 = vmatpush3.bf16.msra.mxu1 %v4560_v40 }
0x14df   :  { %4153 = vmatmul.mubr.msk.f32.vlgmr.msra.gmra.mrb[18].mxu0 %vm135_vm0, %v2005_v12  ;;  %4565 = vmatprep.subr.bf16.mxu1 %v4564_v31  ;;  %v1068_v12 = vld [vmem:[#allocation5 + $0x140] sm:$0xff] }
0x14e0   :  { %4571 = vmatpush3.bf16.xpose.msra.mxu0 %v4568_v59  ;;  %v4584_v59 = vpack.c.bf16 %v2382_v41, %v2380_v39 }
0x14e1   :  { %4573 = vmatprep.subr.bf16.mxu0 %v4572_v44 }
0x14e2   :  { %4567 = vmatpush3.bf16.msra.mxu1 %v4564_v31 }
0x14e3   :  { %4585 = vmatprep.subr.bf16.mxu1 %v4584_v59 }
0x14e8   :  { %4575 = vmatpush3.bf16.xpose.msra.mxu0 %v4572_v44  ;;  %v2384_v44 = vld [vmem:[#allocation5 + $0x1a8] sm:$0xff] }
0x15b2   :  { %v4154_v2 = vpop.f32.mrb[18].mxu0 }
0x15b3   :  { %v2084_v54 = vadd.f32 %v4154_v2, %v1074_v53  ;;  %v2078_v56 = vpop.f32.mrb[19].mxu0 }
0x15b4   :  { %v2079_v7 = vadd.f32 %v2078_v56, %v1074_v53  ;;  %v1069_v53 = vld [vmem:[#allocation5 + $0x150] sm:$0xff] }
0x15b5   :  { %2091 = vrot.lane.b32.xlu0 %v2084_v54, %s5005_s2 }
0x15b6   :  { %2089 = vrot.lane.b32.xlu1 %v2079_v7, %s5005_s2  ;;  %v4576_v7 = vpack.c.bf16 %v1069_v53, %v1068_v12  ;;  %v2390_v12 = vld [vmem:[#allocation5 + $0x1d8] sm:$0xff] }
0x15b8   :  { %4577 = vmatprep.subr.bf16.mxu0 %v4576_v7 }
0x15b9   :  { %4579 = vmatpush3.bf16.xpose.msra.mxu0 %v4576_v7  ;;  %v2392_v7 = vld [vmem:[#allocation5 + $0x1e8] sm:$0xff] }
0x1627   :  { %v2092_v57 = vpop.permute.xlu0 %2091 }
0x1628   :  { %v2096_v58 = vadd.f32 %v2092_v57, %v5254_v55  ;;  %v2090_v60 = vpop.permute.xlu1 %2089 }
0x1629   :  { %v2095_v62 = vadd.f32 %v2090_v60, %v5190_v9  ;;  %v1071_v60 = vld [vmem:[#allocation5 + $0x170] sm:$0xff] }
0x162a   :  { %2101 = vrot.lane.b32.xlu0 %v2096_v58, %s5005_s2 }
0x162b   :  { %2099 = vrot.lane.b32.xlu1 %v2095_v62, %s5005_s2 }
0x169c   :  { %v2102_v63 = vpop.permute.xlu0 %2101 }
0x169d   :  { %v2100_v0 = vpop.permute.xlu1 %2099  ;;  %v2108_v6 = vsel %vm135_vm0, %v2102_v63, 0.0 }
0x169e   :  { %2109 = vadd.xlane.f32.xlu0 %v2108_v6  ;;  %v2105_v8 = vsel %vm135_vm0, %v2100_v0, 0.0  ;;  %v1075_v6 = vld [vmem:[#allocation2 + $0x112] ss:$0 sm:$0xff] }
0x169f   :  { %2106 = vadd.xlane.f32.xlu1 %v2105_v8 }
0x172b   :  { %v2110_v10 = vpop.xlane.xlu0 %2109 }
0x172c   :  { %v2113_v11 = vmul.f32 0.015625, %v2110_v10  ;;  %v2107_v14 = vpop.xlane.xlu1 %2106 }
0x172d   :  { %v2112_v4 = vmul.f32 0.015625, %v2107_v14 }
0x172e   :  { %v2115_v55 = vsub.f32 %v2096_v58, %v2113_v11  ;;  %v1070_v58 = vld [vmem:[#allocation5 + $0x160] sm:$0xff] }
0x172f   :  { %v2114_v37 = vsub.f32 %v2095_v62, %v2112_v4  ;;  %v4580_v62 = vpack.c.bf16 %v1071_v60, %v1070_v58 }
0x1730   :  { %v2117_v15 = vmul.f32 %v2115_v55, %v2115_v55 }
0x1731   :  { %v2116_v9 = vmul.f32 %v2114_v37, %v2114_v37  ;;  %4581 = vmatprep.subr.bf16.mxu0 %v4580_v62 }
0x1732   :  { %2122 = vrot.lane.b32.xlu1 %v2117_v15, %s5005_s2  ;;  %4583 = vmatpush3.bf16.xpose.msra.mxu0 %v4580_v62  ;;  %v2391_v62 = vld [vmem:[#allocation5 + $0x1e0] sm:$0xff] }
0x1733   :  { %2120 = vrot.lane.b32.xlu0 %v2116_v9, %s5005_s2 }
0x17a4   :  { %v2123_v38 = vpop.permute.xlu1 %2122 }
0x17a5   :  { %v2121_v16 = vpop.permute.xlu0 %2120  ;;  %v2129_v18 = vsel %vm135_vm0, %v2123_v38, 0.0 }
0x17a6   :  { %2130 = vadd.xlane.f32.xlu0 %v2129_v18  ;;  %v2126_v19 = vsel %vm135_vm0, %v2121_v16, 0.0 }
0x17a7   :  { %2127 = vadd.xlane.f32.xlu1 %v2126_v19 }
0x17b8   :  { %2147 = vrot.lane.b32.xlu1 %v1078_v21, %s5005_s2 }
0x17bc   :  { %2141 = vrot.lane.b32.xlu0 %v1077_v22, %s5005_s2 }
0x1833   :  { %v2131_v32 = vpop.xlane.xlu0 %2130 }
0x1834   :  { %v2133_v33 = vmul.f32 0.015625, %v2131_v32  ;;  %v2128_v34 = vpop.xlane.xlu1 %2127 }
0x1835   :  { %v2132_v29 = vmul.f32 0.015625, %v2128_v34 }
0x1836   :  { %v2135_v35 = vadd.f32 1e-05, %v2133_v33 }
0x1837   :  { %v2134_v20 = vadd.f32 1e-05, %v2132_v29  ;;  %v2142_v45 = vpop.permute.xlu0 %2141 }
0x1838   :  { %4876 = vrsqrt.f32 %v2135_v35  ;;  %v2148_v52 = vpop.permute.xlu1 %2147  ;;  %v1080_v35 = vld [vmem:[#allocation2 + $0x117] ss:$0 sm:$0xff] }
0x1839   :  { %4878 = vrsqrt.f32 %v2134_v20  ;;  %v1079_v20 = vld [vmem:[#allocation2 + $0x116] ss:$0 sm:$0xff] }
0x1842   :  { %v4877_v61 = vpop.eup %4876 }
0x1843   :  { %v4879_v46 = vpop.eup %4878  ;;  %v2139_v47 = vmul.f32 %v4877_v61, %v2115_v55  ;;  %v2386_v61 = vld [vmem:[#allocation5 + $0x1b8] sm:$0xff] }
0x1844   :  { %v2138_v49 = vmul.f32 %v4879_v46, %v2114_v37  ;;  %v1076_v37 = vld [vmem:[#allocation2 + $0x113] ss:$0 sm:$0xff]  ;;  %v4588_v46 = vpack.c.bf16 %v2386_v61, %v2384_v44 }
0x1845   :  { %v2145_v2 = vmul.f32 %v2142_v45, %v2139_v47  ;;  %v2383_v47 = vld [vmem:[#allocation5 + $0x1a0] sm:$0xff] }
0x1846   :  { %v2144_v54 = vmul.f32 %v2142_v45, %v2138_v49  ;;  %v4586_v45 = vpack.c.bf16 %v2381_v43, %v2379_v42  ;;  %v2385_v49 = vld [vmem:[#allocation5 + $0x1b0] sm:$0xff] }
0x1847   :  { %v2151_v56 = vadd.f32 %v2148_v52, %v2145_v2  ;;  %v4590_v53 = vpack.c.bf16 %v2385_v49, %v2383_v47 }
0x1848   :  { %v2150_v57 = vadd.f32 %v2148_v52, %v2144_v54  ;;  %v2388_v52 = vld [vmem:[#allocation5 + $0x1c8] sm:$0xff]  ;;  %v2387_v54 = vld [vmem:[#allocation5 + $0x1c0] sm:$0xff] }
0x1849   :  { %2156 = vrot.lane.b32.xlu0 %v2151_v56, %s5005_s2  ;;  %v4592_v2 = vpack.c.bf16 %v2390_v12, %v2388_v52 }
0x184a   :  { %2154 = vrot.lane.b32.xlu1 %v2150_v57, %s5005_s2 }
0x18bb   :  { %v2157_v0 = vpop.permute.xlu0 %2156 }
0x18bc   :  { %v2155_v63 = vpop.permute.xlu1 %2154 }
0x18bd   :  { %4171 = vmatprep.mubr.msk.f32.mxu1 %vm135_vm0, %v2155_v63  ;;  %v2393_v63 = vld [vmem:[#allocation5 + $0x1f0] sm:$0xff] }
0x18be   :  { %4172 = vmatmul.mubr.msk.f32.vlgmr.msra.gmra.mrb[22].mxu1 %vm135_vm0, %v2157_v0  ;;  %v4598_v0 = vpack.c.bf16 %v2393_v63, %v2391_v62 }
0x18bf   :  { %2513 = vmatprep.mubr.f32.mxu1 %v5004_v48  ;;  %4587 = vmatpush1.bf16.msra.mxu1 %v4586_v45 }
0x18c0   :  { %4589 = vmatprep.subr.bf16.mxu1 %v4588_v46 }
0x18c3   :  { %4591 = vmatpush1.bf16.msra.mxu1 %v4590_v53 }
0x18c4   :  { %4593 = vmatprep.subr.bf16.mxu1 %v4592_v2 }
0x1991   :  { %v4173_v8 = vpop.f32.mrb[22].mxu1 }
0x1992   :  { %v2234_v10 = vadd.f32 %v4173_v8, %v1075_v6  ;;  %v2228_v11 = vpop.f32.mrb[23].mxu1 }
0x1993   :  { %v2229_v14 = vadd.f32 %v2228_v11, %v1075_v6 }
0x1994   :  { %v2238_v55 = vmax.f32 %v2234_v10, 0.0 }
0x1995   :  { %v2237_v4 = vmax.f32 %v2229_v14, 0.0 }
0x1997   :  { %4190 = vmatprep.mubr.f32.mxu0 %v2237_v4 }
0x1998   :  { %4191 = vmatmul.mubr.f32.vlgmr.msra.gmra.mrb[20].mxu0 %v2238_v55 }
0x1a6b   :  { %v4192_v15 = vpop.f32.mrb[20].mxu0 }
0x1a6c   :  { %v2311_v9 = vadd.f32 %v4192_v15, %v1076_v37  ;;  %v2305_v38 = vpop.f32.mrb[21].mxu0 }
0x1a6d   :  { %v2306_v16 = vadd.f32 %v2305_v38, %v1076_v37 }
0x1a6e   :  { %2318 = vrot.lane.b32.xlu0 %v2311_v9, %s5005_s2 }
0x1a6f   :  { %2316 = vrot.lane.b32.xlu1 %v2306_v16, %s5005_s2 }
0x1ae0   :  { %v2319_v18 = vpop.permute.xlu0 %2318 }
0x1ae1   :  { %v2323_v19 = vadd.f32 %v2319_v18, %v2151_v56  ;;  %v2317_v21 = vpop.permute.xlu1 %2316  ;;  %v2389_v56 = vld [vmem:[#allocation5 + $0x1d0] sm:$0xff] }
0x1ae2   :  { %v2322_v22 = vadd.f32 %v2317_v21, %v2150_v57  ;;  %v2394_v57 = vld [vmem:[#allocation5 + $0x1f8] sm:$0xff]  ;;  %v4594_v58 = vpack.c.bf16 %v2389_v56, %v2387_v54 }
0x1ae3   :  { %2328 = vrot.lane.b32.xlu0 %v2323_v19, %s5005_s2  ;;  %v4596_v60 = vpack.c.bf16 %v2394_v57, %v2392_v7 }
0x1ae4   :  { %2326 = vrot.lane.b32.xlu1 %v2322_v22, %s5005_s2  ;;  %4595 = vmatpush1.bf16.msra.mxu1 %v4594_v58 }
0x1ae5   :  { %4597 = vmatprep.subr.bf16.mxu1 %v4596_v60 }
0x1ae8   :  { %4599 = vmatpush1.bf16.msra.mxu1 %v4598_v0 }
0x1b55   :  { %v2329_v23 = vpop.permute.xlu0 %2328 }
0x1b56   :  { %v2327_v13 = vpop.permute.xlu1 %2326  ;;  %v2335_v24 = vsel %vm135_vm0, %v2329_v23, 0.0 }
0x1b57   :  { %2336 = vadd.xlane.f32.xlu0 %v2335_v24  ;;  %v2332_v25 = vsel %vm135_vm0, %v2327_v13, 0.0  ;;  %v2420_v24 = vld [vmem:[#allocation2 + $0x120] ss:$8 sm:$0x3] }
0x1b58   :  { %2333 = vadd.xlane.f32.xlu1 %v2332_v25  ;;  %v2432_v25 = vrot.slane %v2420_v24, %v5112_v1 }
0x1be4   :  { %v2337_v26 = vpop.xlane.xlu0 %2336 }
0x1be5   :  { %v2339_v27 = vmul.f32 0.015625, %v2337_v26  ;;  %v2334_v36 = vpop.xlane.xlu1 %2333 }
0x1be6   :  { %v2338_v28 = vmul.f32 0.015625, %v2334_v36 }
0x1be7   :  { %v2341_v40 = vsub.f32 %v2323_v19, %v2339_v27 }
0x1be8   :  { %v2340_v30 = vsub.f32 %v2322_v22, %v2338_v28  ;;  %v2436_v28 = vrot.slane %v2420_v24, %v5114_v3 }
0x1be9   :  { %v2343_v17 = vmul.f32 %v2341_v40, %v2341_v40 }
0x1bea   :  { %v2342_v31 = vmul.f32 %v2340_v30, %v2340_v30 }
0x1beb   :  { %2348 = vrot.lane.b32.xlu1 %v2343_v17, %s5005_s2 }
0x1bec   :  { %2346 = vrot.lane.b32.xlu0 %v2342_v31, %s5005_s2 }
0x1c5d   :  { %v2349_v32 = vpop.permute.xlu1 %2348 }
0x1c5e   :  { %v2347_v33 = vpop.permute.xlu0 %2346  ;;  %v2355_v34 = vsel %vm135_vm0, %v2349_v32, 0.0 }
0x1c5f   :  { %2356 = vadd.xlane.f32.xlu0 %v2355_v34  ;;  %v2352_v29 = vsel %vm135_vm0, %v2347_v33, 0.0 }
0x1c60   :  { %2353 = vadd.xlane.f32.xlu1 %v2352_v29 }
0x1c71   :  { %2373 = vrot.lane.b32.xlu1 %v1080_v35, %s5005_s2 }
0x1c75   :  { %2367 = vrot.lane.b32.xlu0 %v1079_v20, %s5005_s2 }
0x1cec   :  { %v2357_v6 = vpop.xlane.xlu0 %2356 }
0x1ced   :  { %v2359_v8 = vmul.f32 0.015625, %v2357_v6  ;;  %v2354_v10 = vpop.xlane.xlu1 %2353 }
0x1cee   :  { %v2358_v11 = vmul.f32 0.015625, %v2354_v10 }
0x1cef   :  { %v2361_v14 = vadd.f32 1e-05, %v2359_v8 }
0x1cf0   :  { %v2360_v4 = vadd.f32 1e-05, %v2358_v11  ;;  %v2368_v37 = vpop.permute.xlu0 %2367 }
0x1cf1   :  { %4880 = vrsqrt.f32 %v2361_v14  ;;  %v2374_v16 = vpop.permute.xlu1 %2373 }
0x1cf2   :  { %4882 = vrsqrt.f32 %v2360_v4 }
0x1cfb   :  { %v4881_v55 = vpop.eup %4880 }
0x1cfc   :  { %v4883_v15 = vpop.eup %4882  ;;  %v2365_v9 = vmul.f32 %v4881_v55, %v2341_v40 }
0x1cfd   :  { %v2364_v38 = vmul.f32 %v4883_v15, %v2340_v30 }
0x1cfe   :  { %v2371_v18 = vmul.f32 %v2368_v37, %v2365_v9 }
0x1cff   :  { %v2370_v19 = vmul.f32 %v2368_v37, %v2364_v38 }
0x1d00   :  { %v5388_v21 = vadd.f32 %v2374_v16, %v2371_v18 }
0x1d01   :  { %v5390_v22 = vadd.f32 %v2374_v16, %v2370_v19 }
0x1d02   :  { %2443 = vrot.lane.b32.xlu0 %v5388_v21, %s5005_s2 }
0x1d03   :  { %2441 = vrot.lane.b32.xlu1 %v5390_v22, %s5005_s2 }
0x1d74   :  { %v2444_v13 = vpop.permute.xlu0 %2443 }
0x1d75   :  { %v2442_v23 = vpop.permute.xlu1 %2441 }
0x1d76   :  { %3910 = vmatmul.mubr.msk.f32.vlgmr.msra.gmra.mrb[24].mxu1 %vm135_vm0, %v2442_v23 }
0x1d77   :  { %2519 = vmatprep.mubr.f32.mxu1 %v5004_v48 }
0x1d7a   :  { %3911 = vmatmul.mubr.msk.f32.gmra.mrb[26].mxu1 %vm135_vm0, %v2444_v13 }
0x1e49   :  { %v2515_v26 = vpop.f32.mrb[24].mxu1 }
0x1e4a   :  { %v2516_v27 = vadd.f32 %v2515_v26, %v2432_v25  ;;  %v2517_v36 = vpop.f32.mrb[25].mxu1 }
0x1e4b   :  { %v2518_v31 = vadd.f32 %v2517_v36, %v2436_v28 }
0x1e4c   :  { %2528 = vrot.lane.b32.xlu1 %v2516_v27, %s5006_s0  ;;  %4197 = vmatprep.mubr.msk.f32.mxu1 %vm1217_vm4, %v2516_v27 }
0x1e4d   :  { %v2521_v40 = vpop.f32.mrb[26].mxu1 }
0x1e4e   :  { %v2522_v30 = vadd.f32 %v2521_v40, %v2432_v25  ;;  %v2523_v17 = vpop.f32.mrb[27].mxu1 }
0x1e4f   :  { %v2524_v32 = vadd.f32 %v2523_v17, %v2436_v28 }
0x1e50   :  { %2530 = vrot.lane.b32.xlu0 %v2522_v30, %s5006_s0  ;;  %2532 = vrot.lane.b32.xlu1 %v2516_v27, %s5007_s14  ;;  %v4761_v3 = vpack.i.bf16 %v2522_v30, %v2516_v27 }
0x1e51   :  { %v4624_v33 = vpack.c.bf16 %v2524_v32, %v2518_v31  ;;  %v5405_v1 = vpack.i.bf16 %v2524_v32, %v2518_v31 }
0x1e54   :  { %2534 = vrot.lane.b32.xlu0 %v2522_v30, %s5007_s14  ;;  %2536 = vrot.lane.b32.xlu1 %v2516_v27, %s5008_s15 }
0x1e58   :  { %2538 = vrot.lane.b32.xlu0 %v2522_v30, %s5008_s15  ;;  %4762 = vrot.lane.b32.xlu1 %v4761_v3, %s5005_s2 }
0x1ebe   :  { %v2529_v34 = vpop.permute.xlu1 %2528 }
0x1ec2   :  { %v2531_v29 = vpop.permute.xlu0 %2530  ;;  %v2533_v35 = vpop.permute.xlu1 %2532 }
0x1ec3   :  { %v4766_v20 = vpack.i.bf16 %v2531_v29, %v2529_v34  ;;  %4211 = vmatprep.mubr.msk.f32.mxu0 %vm1217_vm4, %v2533_v35 }
0x1ec5   :  { %4767 = vrot.lane.b32.xlu0 %v4766_v20, %s5005_s2 }
0x1ec6   :  { %v2535_v39 = vpop.permute.xlu0 %2534  ;;  %v2537_v41 = vpop.permute.xlu1 %2536 }
0x1ec7   :  { %v4771_v42 = vpack.i.bf16 %v2535_v39, %v2533_v35 }
0x1ec9   :  { %4772 = vrot.lane.b32.xlu1 %v4771_v42, %s5005_s2 }
0x1eca   :  { %v2539_v59 = vpop.permute.xlu0 %2538  ;;  %v4763_v43 = vpop.permute.xlu1 %4762 }
0x1ecb   :  { %v4776_v44 = vpack.i.bf16 %v2539_v59, %v2537_v41  ;;  %v4765_v61 = vunpack.i.h.bf16 %v4763_v43  ;;  %v4764_v45 = vunpack.i.l.bf16 %v4763_v43 }
0x1ecd   :  { %v4600_v46 = vpack.c.bf16 %v4765_v61, %v4764_v45  ;;  %4777 = vrot.lane.b32.xlu0 %v4776_v44, %s5005_s2 }
0x1ecf   :  { %4602 = vmatprep.subr.msk.bf16.mxu1 %vm5269_vm5, %v4600_v46 }
0x1ed0   :  { %4605 = vmatpush3.bf16.xpose.msk.msra.mxu1 %vm5269_vm5, %v4600_v46 }
0x1ed7   :  { %4198 = vmatmul.mubr.msk.f32.vlgmr.msra.gmra.mrb[28].mxu1 %vm1217_vm4, %v2522_v30 }
0x1ed8   :  { %4204 = vmatprep.mubr.msk.f32.mxu1 %vm1217_vm4, %v2529_v34 }
0x1f37   :  { %v4768_v47 = vpop.permute.xlu0 %4767 }
0x1f38   :  { %v4770_v49 = vunpack.i.h.bf16 %v4768_v47  ;;  %v4769_v52 = vunpack.i.l.bf16 %v4768_v47 }
0x1f3a   :  { %v4606_v12 = vpack.c.bf16 %v4770_v49, %v4769_v52 }
0x1f3b   :  { %v4773_v53 = vpop.permute.xlu1 %4772 }
0x1f3c   :  { %v4775_v2 = vunpack.i.h.bf16 %v4773_v53  ;;  %v4774_v54 = vunpack.i.l.bf16 %v4773_v53  ;;  %4608 = vmatprep.subr.msk.bf16.mxu1 %vm5269_vm5, %v4606_v12 }
0x1f3d   :  { %4611 = vmatpush3.bf16.xpose.msk.msra.mxu1 %vm5269_vm5, %v4606_v12 }
0x1f3e   :  { %v4612_v56 = vpack.c.bf16 %v4775_v2, %v4774_v54 }
0x1f3f   :  { %v4778_v7 = vpop.permute.xlu0 %4777 }
0x1f40   :  { %v4780_v57 = vunpack.i.h.bf16 %v4778_v7  ;;  %v4779_v58 = vunpack.i.l.bf16 %v4778_v7  ;;  %4614 = vmatprep.subr.msk.bf16.mxu0 %vm5269_vm5, %v4612_v56 }
0x1f41   :  { %4617 = vmatpush3.bf16.xpose.msk.msra.mxu0 %vm5269_vm5, %v4612_v56 }
0x1f42   :  { %v4618_v60 = vpack.c.bf16 %v4780_v57, %v4779_v58  ;;  %4625 = vmatprep.subr.bf16.mxu0 %v4624_v33 }
0x1f44   :  { %4205 = vmatmul.mubr.msk.f32.vlgmr.msra.gmra.mrb[30].mxu1 %vm1217_vm4, %v2531_v29  ;;  %4620 = vmatprep.subr.msk.bf16.mxu1 %vm5269_vm5, %v4618_v60 }
0x1f45   :  { %4623 = vmatpush3.bf16.xpose.msk.msra.mxu1 %vm5269_vm5, %v4618_v60  ;;  %4218 = vmatprep.mubr.msk.f32.mxu1 %vm1217_vm4, %v2537_v41 }
0x1f48   :  { %4212 = vmatmul.mubr.msk.f32.vlgmr.msra.gmra.mrb[22].mxu0 %vm1217_vm4, %v2535_v39 }
0x1f49   :  { %4627 = vmatpush3.bf16.msra.mxu0 %v4624_v33 }
0x1f4c   :  { %4219 = vmatmul.mubr.msk.f32.vlgmr.msra.gmra.mrb[32].mxu1 %vm1217_vm4, %v2539_v59 }
0x1faa   :  { %v4199_v62 = vpop.f32.mrb[28].mxu1 }
0x1fab   :  { %v2644_v63 = vadd.f32 %v4199_v62, %v5297_v50  ;;  %v2638_v0 = vpop.f32.mrb[29].mxu1 }
0x1fac   :  { %v2639_v6 = vadd.f32 %v2638_v0, %v5299_v51 }
0x1fad   :  { %v2911_v8 = vsel %vm1217_vm4, %v2644_v63, -inf }
0x1fae   :  { %2912 = vmax.xlane.f32.xlu0 %v2911_v8  ;;  %v2908_v10 = vsel %vm1217_vm4, %v2639_v6, -inf }
0x1faf   :  { %2909 = vmax.xlane.f32.xlu1 %v2908_v10 }
0x2017   :  { %v4206_v5 = vpop.f32.mrb[30].mxu1 }
0x2018   :  { %v2731_v11 = vadd.f32 %v4206_v5, %v5297_v50  ;;  %v2725_v14 = vpop.f32.mrb[31].mxu1 }
0x2019   :  { %v2726_v4 = vadd.f32 %v2725_v14, %v5299_v51 }
0x201a   :  { %v2917_v55 = vsel %vm1217_vm4, %v2731_v11, -inf }
0x201b   :  { %v4213_v37 = vpop.f32.mrb[22].mxu0  ;;  %2918 = vmax.xlane.f32.xlu1 %v2917_v55  ;;  %v2914_v15 = vsel %vm1217_vm4, %v2726_v4, -inf }
0x201c   :  { %v2818_v9 = vadd.f32 %v4213_v37, %v5297_v50  ;;  %v2812_v38 = vpop.f32.mrb[23].mxu0  ;;  %2915 = vmax.xlane.f32.xlu0 %v2914_v15 }
0x201d   :  { %v2813_v16 = vadd.f32 %v2812_v38, %v5299_v51 }
0x201e   :  { %v2923_v18 = vsel %vm1217_vm4, %v2818_v9, -inf }
0x201f   :  { %v4220_v19 = vpop.f32.mrb[32].mxu1  ;;  %2924 = vmax.xlane.f32.xlu1 %v2923_v18  ;;  %v2920_v23 = vsel %vm1217_vm4, %v2813_v16, -inf }
0x2020   :  { %v2905_v13 = vadd.f32 %v4220_v19, %v5297_v50  ;;  %v2899_v24 = vpop.f32.mrb[33].mxu1  ;;  %2921 = vmax.xlane.f32.xlu0 %v2920_v23 }
0x2021   :  { %v2900_v25 = vadd.f32 %v2899_v24, %v5299_v51 }
0x2022   :  { %v2929_v26 = vsel %vm1217_vm4, %v2905_v13, -inf }
0x2023   :  { %2930 = vmax.xlane.f32.xlu1 %v2929_v26  ;;  %v2926_v27 = vsel %vm1217_vm4, %v2900_v25, -inf }
0x2024   :  { %2927 = vmax.xlane.f32.xlu0 %v2926_v27 }
0x203b   :  { %v2913_v36 = vpop.xlane.xlu0 %2912 }
0x203c   :  { %v2933_v28 = vsub.f32 %v2644_v63, %v2913_v36  ;;  %v2910_v40 = vpop.xlane.xlu1 %2909 }
0x203d   :  { %v2932_v30 = vsub.f32 %v2639_v6, %v2910_v40 }
0x203e   :  { %v2942_v17 = vmul.f32 1.442695, %v2933_v28 }
0x203f   :  { %v2940_v31 = vmul.f32 1.442695, %v2932_v30 }
0x2040   :  { %4884 = vpow2.f32 %v2942_v17 }
0x2041   :  { %4886 = vpow2.f32 %v2940_v31 }
0x204a   :  { %v4885_v32 = vpop.eup %4884 }
0x204b   :  { %v4887_v50 = vpop.eup %4886  ;;  %v2959_v33 = vsel %vm1217_vm4, %v4885_v32, 0.0 }
0x204c   :  { %2960 = vadd.xlane.f32.xlu1 %v2959_v33  ;;  %v2956_v51 = vsel %vm1217_vm4, %v4887_v50, 0.0 }
0x204d   :  { %2957 = vadd.xlane.f32.xlu0 %v2956_v51 }
0x20a8   :  { %v2919_v3 = vpop.xlane.xlu1 %2918 }
0x20a9   :  { %v2935_v34 = vsub.f32 %v2731_v11, %v2919_v3  ;;  %v2916_v29 = vpop.xlane.xlu0 %2915 }
0x20aa   :  { %v2934_v35 = vsub.f32 %v2726_v4, %v2916_v29 }
0x20ab   :  { %v2946_v20 = vmul.f32 1.442695, %v2935_v34 }
0x20ac   :  { %v2944_v39 = vmul.f32 1.442695, %v2934_v35  ;;  %v2925_v41 = vpop.xlane.xlu1 %2924 }
0x20ad   :  { %4888 = vpow2.f32 %v2946_v20  ;;  %v2937_v42 = vsub.f32 %v2818_v9, %v2925_v41  ;;  %v2922_v59 = vpop.xlane.xlu0 %2921  ;;  %v2396_v41 = vld [vmem:[#allocation5 + $0x210] sm:$0xff] }
0x20ae   :  { %4890 = vpow2.f32 %v2944_v39  ;;  %v2936_v43 = vsub.f32 %v2813_v16, %v2922_v59  ;;  %v2395_v39 = vld [vmem:[#allocation5 + $0x200] sm:$0xff] }
0x20af   :  { %v2950_v44 = vmul.f32 1.442695, %v2937_v42  ;;  %v4640_v42 = vpack.c.bf16 %v2396_v41, %v2395_v39  ;;  %v2406_v39 = vld [vmem:[#allocation5 + $0x238] sm:$0xff] }
0x20b0   :  { %v2948_v61 = vmul.f32 1.442695, %v2936_v43  ;;  %v2931_v45 = vpop.xlane.xlu1 %2930 }
0x20b1   :  { %4892 = vpow2.f32 %v2950_v44  ;;  %v2939_v46 = vsub.f32 %v2905_v13, %v2931_v45  ;;  %v2928_v47 = vpop.xlane.xlu0 %2927  ;;  %v2397_v44 = vld [vmem:[#allocation5 + $0x220] sm:$0xff] }
0x20b2   :  { %4894 = vpow2.f32 %v2948_v61  ;;  %v2938_v49 = vsub.f32 %v2900_v25, %v2928_v47  ;;  %v2398_v61 = vld [vmem:[#allocation5 + $0x230] sm:$0xff] }
0x20b3   :  { %v2954_v52 = vmul.f32 1.442695, %v2939_v46  ;;  %v4644_v45 = vpack.c.bf16 %v2398_v61, %v2397_v44  ;;  %v2399_v46 = vld [vmem:[#allocation5 + $0x240] sm:$0xff]  ;;  %v2400_v47 = vld [vmem:[#allocation5 + $0x250] sm:$0xff]  ;;  %v2409_v44 = vld [vmem:[#allocation5 + $0x268] sm:$0xff] }
0x20b4   :  { %v2952_v12 = vmul.f32 1.442695, %v2938_v49  ;;  %v4648_v49 = vpack.c.bf16 %v2400_v47, %v2399_v46  ;;  %v2410_v61 = vld [vmem:[#allocation5 + $0x278] sm:$0xff] }
0x20b5   :  { %4896 = vpow2.f32 %v2954_v52  ;;  %v2401_v52 = vld [vmem:[#allocation5 + $0x260] sm:$0xff] }
0x20b6   :  { %4898 = vpow2.f32 %v2952_v12  ;;  %v2402_v12 = vld [vmem:[#allocation5 + $0x270] sm:$0xff] }
0x20b7   :  { %v5455_v53 = vpop.eup %4888 }
0x20b8   :  { %v4891_v2 = vpop.eup %4890  ;;  %v2965_v54 = vsel %vm1217_vm4, %v5455_v53, 0.0 }
0x20b9   :  { %2966 = vadd.xlane.f32.xlu1 %v2965_v54  ;;  %v2962_v56 = vsel %vm1217_vm4, %v4891_v2, 0.0 }
0x20ba   :  { %2963 = vadd.xlane.f32.xlu0 %v2962_v56 }
0x20bb   :  { %v4893_v7 = vpop.eup %4892 }
0x20bc   :  { %v4895_v57 = vpop.eup %4894  ;;  %v2971_v58 = vsel %vm1217_vm4, %v4893_v7, 0.0 }
0x20bd   :  { %2972 = vadd.xlane.f32.xlu1 %v2971_v58  ;;  %v2968_v60 = vsel %vm1217_vm4, %v4895_v57, 0.0 }
0x20be   :  { %2969 = vadd.xlane.f32.xlu0 %v2968_v60 }
0x20bf   :  { %v5462_v62 = vpop.eup %4896 }
0x20c0   :  { %v4899_v63 = vpop.eup %4898  ;;  %v2977_v0 = vsel %vm1217_vm4, %v5462_v62, 0.0 }
0x20c1   :  { %2978 = vadd.xlane.f32.xlu1 %v2977_v0  ;;  %v2974_v6 = vsel %vm1217_vm4, %v4899_v63, 0.0 }
0x20c2   :  { %2975 = vadd.xlane.f32.xlu0 %v2974_v6 }
0x20d2   :  { %4787 = vrot.lane.b32.xlu1 %v5405_v1, %s5007_s14 }
0x20d6   :  { %4792 = vrot.lane.b32.xlu1 %v5405_v1, %s5008_s15 }
0x20d8   :  { %4782 = vrot.lane.b32.xlu0 %v5405_v1, %s5006_s0 }
0x20d9   :  { %v2961_v8 = vpop.xlane.xlu1 %2960 }
0x20da   :  { %4900 = vrcp.f32 %v2961_v8  ;;  %v2958_v10 = vpop.xlane.xlu0 %2957 }
0x20db   :  { %4902 = vrcp.f32 %v2958_v10 }
0x20e4   :  { %v4901_v5 = vpop.eup %4900 }
0x20e5   :  { %v4903_v11 = vpop.eup %4902  ;;  %v2989_v4 = vmul.f32 %v4901_v5, %v4885_v32 }
0x20e6   :  { %v2988_v14 = vmul.f32 %v4903_v11, %v4887_v50 }
0x20e8   :  { %4225 = vmatprep.mubr.msk.f32.mxu0 %vm1217_vm4, %v2988_v14 }
0x20e9   :  { %4226 = vmatmul.mubr.msk.f32.vlgmr.msra.gmra.mrb[24].mxu0 %vm1217_vm4, %v2989_v4 }
0x2146   :  { %v2967_v55 = vpop.xlane.xlu1 %2966 }
0x2147   :  { %v2964_v37 = vpop.xlane.xlu0 %2963 }
0x2148   :  { %4904 = vrcp.f32 %v2964_v37  ;;  %v2421_v37 = vld [vmem:[#allocation2 + $0x121] ss:$0 sm:$0xff] }
0x214a   :  { %v2973_v15 = vpop.xlane.xlu1 %2972 }
0x214b   :  { %4906 = vrcp.f32 %v2973_v15  ;;  %v2970_v9 = vpop.xlane.xlu0 %2969 }
0x214c   :  { %4908 = vrcp.f32 %v2970_v9 }
0x214d   :  { %4910 = vrcp.f32 %v2967_v55 }
0x214e   :  { %v2979_v1 = vpop.xlane.xlu1 %2978 }
0x214f   :  { %v2976_v38 = vpop.xlane.xlu0 %2975 }
0x2150   :  { %4912 = vrcp.f32 %v2976_v38 }
0x2151   :  { %4914 = vrcp.f32 %v2979_v1 }
0x2152   :  { %v4905_v16 = vpop.eup %4904  ;;  %v4788_v18 = vpop.permute.xlu1 %4787 }
0x2153   :  { %v4790_v19 = vunpack.i.h.bf16 %v4788_v18  ;;  %v4789_v23 = vunpack.i.l.bf16 %v4788_v18  ;;  %v4783_v13 = vpop.permute.xlu0 %4782  ;;  %v2990_v24 = vmul.f32 %v4905_v16, %v4891_v2 }
0x2154   :  { %v4785_v25 = vunpack.i.h.bf16 %v4783_v13  ;;  %v4784_v26 = vunpack.i.l.bf16 %v4783_v13 }
0x2155   :  { %v4907_v27 = vpop.eup %4906  ;;  %v4632_v36 = vpack.c.bf16 %v4790_v19, %v4789_v23  ;;  %4232 = vmatprep.mubr.msk.f32.mxu1 %vm1217_vm4, %v2990_v24 }
0x2156   :  { %v4909_v28 = vpop.eup %4908  ;;  %v4628_v40 = vpack.c.bf16 %v4785_v25, %v4784_v26  ;;  %v4793_v30 = vpop.permute.xlu1 %4792  ;;  %v2993_v33 = vmul.f32 %v4907_v27, %v4893_v7 }
0x2157   :  { %v4911_v17 = vpop.eup %4910  ;;  %v4795_v31 = vunpack.i.h.bf16 %v4793_v30  ;;  %v4794_v32 = vunpack.i.l.bf16 %v4793_v30  ;;  %4633 = vmatprep.subr.bf16.mxu0 %v4632_v36  ;;  %v2992_v50 = vmul.f32 %v4909_v28, %v4895_v57 }
0x2158   :  { %4629 = vmatprep.subr.bf16.mxu1 %v4628_v40  ;;  %4635 = vmatpush3.bf16.msra.mxu0 %v4632_v36  ;;  %v2991_v34 = vmul.f32 %v4911_v17, %v5455_v53  ;;  %v4652_v53 = vpack.c.bf16 %v2402_v12, %v2401_v52 }
0x2159   :  { %v4636_v51 = vpack.c.bf16 %v4795_v31, %v4794_v32  ;;  %4631 = vmatpush3.bf16.msra.mxu1 %v4628_v40  ;;  %4239 = vmatprep.mubr.msk.f32.mxu0 %vm1217_vm4, %v2992_v50 }
0x215a   :  { %v4913_v3 = vpop.eup %4912  ;;  %4641 = vmatprep.subr.bf16.mxu0 %v4640_v42 }
0x215b   :  { %v4915_v29 = vpop.eup %4914  ;;  %4240 = vmatmul.mubr.msk.f32.vlgmr.msra.gmra.mrb[26].mxu0 %vm1217_vm4, %v2993_v33  ;;  %4637 = vmatprep.subr.bf16.mxu1 %v4636_v51  ;;  %v2994_v35 = vmul.f32 %v4913_v3, %v4899_v63  ;;  %v2424_v3 = vld [vmem:[#allocation2 + $0x124] ss:$0 sm:$0xff] }
0x215c   :  { %4233 = vmatmul.mubr.msk.f32.vlgmr.msra.gmra.mrb[34].mxu1 %vm1217_vm4, %v2991_v34  ;;  %v2995_v20 = vmul.f32 %v4915_v29, %v5462_v62  ;;  %4643 = vmatpush3.bf16.msra.mxu0 %v4640_v42  ;;  %v2403_v34 = vld [vmem:[#allocation5 + $0x208] sm:$0xff]  ;;  %v2404_v29 = vld [vmem:[#allocation5 + $0x218] sm:$0xff] }
0x215d   :  { %4639 = vmatpush3.bf16.msra.mxu1 %v4636_v51  ;;  %4246 = vmatprep.mubr.msk.f32.mxu1 %vm1217_vm4, %v2994_v35  ;;  %v2425_v51 = vld [vmem:[#allocation2 + $0x125] ss:$0 sm:$0xff]  ;;  %v2405_v35 = vld [vmem:[#allocation5 + $0x228] sm:$0xff] }
0x215e   :  { %4645 = vmatprep.subr.bf16.mxu0 %v4644_v45  ;;  %v4660_v41 = vpack.c.bf16 %v2406_v39, %v2405_v35  ;;  %v2407_v42 = vld [vmem:[#allocation5 + $0x248] sm:$0xff]  ;;  %v82_v35 = vld [vmem:[#allocation2 + $0x130] sm:$0xff] }
0x215f   :  { %v84_v39 = vld [vmem:[#allocation2 + $0x150] sm:$0xff] }
0x2160   :  { %4247 = vmatmul.mubr.msk.f32.vlgmr.msra.gmra.mrb[36].mxu1 %vm1217_vm4, %v2995_v20  ;;  %4647 = vmatpush3.bf16.msra.mxu0 %v4644_v45  ;;  %v4656_v20 = vpack.c.bf16 %v2404_v29, %v2403_v34  ;;  %v4668_v45 = vpack.c.bf16 %v2410_v61, %v2409_v44  ;;  %v2427_v29 = vld [vmem:[#allocation2 + $0x127] ss:$0 sm:$0xff]  ;;  %v86_v44 = vld [vmem:[#allocation2 + $0x170] sm:$0xff] }
0x2161   :  { %4649 = vmatprep.subr.bf16.mxu0 %v4648_v49  ;;  %v87_v61 = vld [vmem:[#allocation2 + $0x180] sm:$0xff] }
0x2162   :  { %4657 = vmatprep.subr.bf16.mxu1 %v4656_v20 }
0x2163   :  { %4659 = vmatpush3.bf16.msra.mxu1 %v4656_v20  ;;  %v83_v20 = vld [vmem:[#allocation2 + $0x140] sm:$0xff] }
0x2164   :  { %4651 = vmatpush3.bf16.msra.mxu0 %v4648_v49  ;;  %4661 = vmatprep.subr.bf16.mxu1 %v4660_v41 }
0x2165   :  { %4653 = vmatprep.subr.bf16.mxu0 %v4652_v53 }
0x2167   :  { %4663 = vmatpush3.bf16.msra.mxu1 %v4660_v41  ;;  %v5011_v41 = vmov 0.0|0.0  }
0x2168   :  { %4655 = vmatpush3.bf16.msra.mxu0 %v4652_v53 }
0x21bc   :  { %v4227_v59 = vpop.f32.mrb[24].mxu0 }
0x21bd   :  { %v3068_v43 = vpop.f32.mrb[25].mxu0 }
0x222e   :  { %v4241_v2 = vpop.f32.mrb[26].mxu0 }
0x222f   :  { %v4234_v54 = vpop.f32.mrb[34].mxu1  ;;  %v3230_v56 = vpop.f32.mrb[27].mxu0 }
0x2230   :  { %3324 = vrot.lane.b32.xlu1 %v4234_v54, %s5000_s23  ;;  %v3149_v7 = vpop.f32.mrb[35].mxu1  ;;  %v2412_v54 = vld [vmem:[#allocation5 + $0x290] sm:$0xff] }
0x2231   :  { %3322 = vrot.lane.b32.xlu0 %v3149_v7, %s5000_s23 }
0x2233   :  { %v4248_v57 = vpop.f32.mrb[36].mxu1 }
0x2234   :  { %v3311_v58 = vpop.f32.mrb[37].mxu1  ;;  %3332 = vrot.lane.b32.xlu1 %v4241_v2, %s5009_s16  ;;  %v2411_v2 = vld [vmem:[#allocation5 + $0x280] sm:$0xff] }
0x2235   :  { %3330 = vrot.lane.b32.xlu0 %v3230_v56, %s5009_s16  ;;  %v2413_v56 = vld [vmem:[#allocation5 + $0x2a0] sm:$0xff]  ;;  %v4672_v7 = vpack.c.bf16 %v2412_v54, %v2411_v2 }
0x2237   :  { %4673 = vmatprep.subr.bf16.mxu0 %v4672_v7 }
0x2238   :  { %3340 = vrot.lane.b32.xlu1 %v4248_v57, %s5010_s17  ;;  %v2414_v57 = vld [vmem:[#allocation5 + $0x2b0] sm:$0xff] }
0x2239   :  { %3338 = vrot.lane.b32.xlu0 %v3311_v58, %s5010_s17  ;;  %v4676_v58 = vpack.c.bf16 %v2414_v57, %v2413_v56 }
0x22a2   :  { %v3325_v60 = vpop.permute.xlu1 %3324 }
0x22a3   :  { %v3323_v62 = vpop.permute.xlu0 %3322  ;;  %v3345_v10 = vsel %vm1217_vm4, %v4227_v59, %v3325_v60  ;;  %v2408_v59 = vld [vmem:[#allocation5 + $0x258] sm:$0xff] }
0x22a4   :  { %v3344_v6 = vsel %vm1217_vm4, %v3068_v43, %v3323_v62  ;;  %v4664_v43 = vpack.c.bf16 %v2408_v59, %v2407_v42  ;;  %v4689_v42 = vpack.c.bf16 %v83_v20, %v82_v35  ;;  %v85_v59 = vld [vmem:[#allocation2 + $0x160] sm:$0xff] }
0x22a6   :  { %v3333_v63 = vpop.permute.xlu1 %3332  ;;  %4665 = vmatprep.subr.bf16.mxu1 %v4664_v43 }
0x22a7   :  { %v3331_v0 = vpop.permute.xlu0 %3330  ;;  %v3347_v14 = vsel %vm2000_vm6, %v3345_v10, %v3333_v63  ;;  %4667 = vmatpush3.bf16.msra.mxu1 %v4664_v43  ;;  %v2415_v10 = vld [vmem:[#allocation5 + $0x2c0] sm:$0xff]  ;;  %v4692_v43 = vpack.c.bf16 %v85_v59, %v84_v39 }
0x22a8   :  { %v3346_v5 = vsel %vm2000_vm6, %v3344_v6, %v3331_v0  ;;  %4669 = vmatprep.subr.bf16.mxu1 %v4668_v45 }
0x22aa   :  { %v3341_v8 = vpop.permute.xlu1 %3340 }
0x22ab   :  { %v3339_v11 = vpop.permute.xlu0 %3338  ;;  %v3349_v55 = vsel %vm2003_vm7, %v3347_v14, %v3341_v8  ;;  %4671 = vmatpush3.bf16.msra.mxu1 %v4668_v45  ;;  %v4695_v45 = vpack.c.bf16 %v87_v61, %v86_v44 }
0x22ac   :  { %v3348_v4 = vsel %vm2003_vm7, %v3346_v5, %v3339_v11  ;;  %v2416_v5 = vld [vmem:[#allocation5 + $0x2d0] sm:$0xff]  ;;  %4688 = vmatprep.subr.bf16.mxu1 %v5011_v41 }
0x22ad   :  { %4265 = vmatprep.mubr.msk.f32.mxu0 %vm135_vm0, %v3348_v4 }
0x22ae   :  { %4266 = vmatmul.mubr.msk.f32.vlgmr.msra.gmra.mrb[28].mxu0 %vm135_vm0, %v3349_v55  ;;  %v4680_v55 = vpack.c.bf16 %v2416_v5, %v2415_v10  ;;  %v93_v10 = vld [vmem:[#allocation2 + $0x168] sm:$0xff] }
0x22af   :  { %4675 = vmatpush3.bf16.xpose.msra.mxu0 %v4672_v7 }
0x22b0   :  { %4677 = vmatprep.subr.bf16.mxu0 %v4676_v58 }
0x22b7   :  { %4679 = vmatpush3.bf16.xpose.msra.mxu0 %v4676_v58 }
0x22b8   :  { %4681 = vmatprep.subr.bf16.mxu0 %v4680_v55 }
0x22bf   :  { %4683 = vmatpush3.bf16.xpose.msra.mxu0 %v4680_v55 }
0x2381   :  { %v4267_v15 = vpop.f32.mrb[28].mxu0 }
0x2382   :  { %v3428_v9 = vadd.f32 %v4267_v15, %v2421_v37  ;;  %v3422_v1 = vpop.f32.mrb[29].mxu0  ;;  %v2417_v15 = vld [vmem:[#allocation5 + $0x2e0] sm:$0xff] }
0x2383   :  { %v3423_v38 = vadd.f32 %v3422_v1, %v2421_v37 }
0x2384   :  { %3435 = vrot.lane.b32.xlu1 %v3428_v9, %s5005_s2  ;;  %v2418_v9 = vld [vmem:[#allocation5 + $0x2f0] sm:$0xff] }
0x2385   :  { %3433 = vrot.lane.b32.xlu0 %v3423_v38, %s5005_s2  ;;  %v4684_v1 = vpack.c.bf16 %v2418_v9, %v2417_v15  ;;  %v81_v15 = vld [vmem:[#allocation2 + $0x103] ss:$0 sm:$0xff] }
0x2387   :  { %4685 = vmatprep.subr.bf16.mxu0 %v4684_v1 }
0x2388   :  { %4687 = vmatpush3.bf16.xpose.msra.mxu0 %v4684_v1 }
0x23f6   :  { %v3436_v16 = vpop.permute.xlu1 %3435 }
0x23f7   :  { %v3440_v18 = vadd.f32 %v3436_v16, %v5388_v21  ;;  %v3434_v19 = vpop.permute.xlu0 %3433 }
0x23f8   :  { %v3439_v23 = vadd.f32 %v3434_v19, %v5390_v22 }
0x23f9   :  { %3445 = vrot.lane.b32.xlu1 %v3440_v18, %s5005_s2 }
0x23fa   :  { %3443 = vrot.lane.b32.xlu0 %v3439_v23, %s5005_s2 }
0x246b   :  { %v3446_v13 = vpop.permute.xlu1 %3445 }
0x246c   :  { %v3452_v24 = vsel %vm135_vm0, %v3446_v13, 0.0  ;;  %v3444_v25 = vpop.permute.xlu0 %3443 }
0x246d   :  { %v3449_v26 = vsel %vm135_vm0, %v3444_v25, 0.0  ;;  %3453 = vadd.xlane.f32.xlu1 %v3452_v24 }
0x246e   :  { %3450 = vadd.xlane.f32.xlu0 %v3449_v26 }
0x24fa   :  { %v3454_v27 = vpop.xlane.xlu1 %3453 }
0x24fb   :  { %v3456_v36 = vmul.f32 0.015625, %v3454_v27  ;;  %v3451_v28 = vpop.xlane.xlu0 %3450  ;;  %v2423_v27 = vld [vmem:[#allocation2 + $0x123] ss:$0 sm:$0xff] }
0x24fc   :  { %v3455_v40 = vmul.f32 0.015625, %v3451_v28 }
0x24fd   :  { %v3458_v21 = vsub.f32 %v3440_v18, %v3456_v36  ;;  %v2422_v18 = vld [vmem:[#allocation2 + $0x122] ss:$0 sm:$0xff] }
0x24fe   :  { %v3457_v30 = vsub.f32 %v3439_v23, %v3455_v40 }
0x24ff   :  { %v3460_v17 = vmul.f32 %v3458_v21, %v3458_v21 }
0x2500   :  { %v3459_v22 = vmul.f32 %v3457_v30, %v3457_v30 }
0x2501   :  { %3465 = vrot.lane.b32.xlu1 %v3460_v17, %s5005_s2 }
0x2502   :  { %3463 = vrot.lane.b32.xlu0 %v3459_v22, %s5005_s2 }
0x2573   :  { %v3466_v31 = vpop.permute.xlu1 %3465 }
0x2574   :  { %v3472_v32 = vsel %vm135_vm0, %v3466_v31, 0.0  ;;  %v3464_v50 = vpop.permute.xlu0 %3463  ;;  %v2426_v31 = vld [vmem:[#allocation2 + $0x126] ss:$0 sm:$0xff] }
0x2575   :  { %v3469_v33 = vsel %vm135_vm0, %v3464_v50, 0.0  ;;  %3473 = vadd.xlane.f32.xlu1 %v3472_v32 }
0x2576   :  { %3470 = vadd.xlane.f32.xlu0 %v3469_v33 }
0x2586   :  { %3490 = vrot.lane.b32.xlu1 %v2425_v51, %s5005_s2 }
0x258c   :  { %3484 = vrot.lane.b32.xlu0 %v2424_v3, %s5005_s2 }
0x2602   :  { %v3474_v46 = vpop.xlane.xlu1 %3473 }
0x2603   :  { %v3476_v47 = vmul.f32 0.015625, %v3474_v46  ;;  %v3471_v49 = vpop.xlane.xlu0 %3470  ;;  %v88_v46 = vld [vmem:[#allocation2 + $0x190] sm:$0xff] }
0x2604   :  { %v3475_v52 = vmul.f32 0.015625, %v3471_v49 }
0x2605   :  { %v3478_v12 = vadd.f32 1e-05, %v3476_v47  ;;  %v89_v47 = vld [vmem:[#allocation2 + $0x1a0] sm:$0xff] }
0x2606   :  { %v3477_v53 = vadd.f32 1e-05, %v3475_v52  ;;  %v3491_v8 = vpop.permute.xlu1 %3490  ;;  %v4698_v49 = vpack.c.bf16 %v89_v47, %v88_v46 }
0x2607   :  { %4916 = vrsqrt.f32 %v3478_v12  ;;  %v3485_v62 = vpop.permute.xlu0 %3484 }
0x2608   :  { %4918 = vrsqrt.f32 %v3477_v53 }
0x2611   :  { %v4917_v60 = vpop.eup %4916 }
0x2612   :  { %v4919_v63 = vpop.eup %4918  ;;  %v3482_v0 = vmul.f32 %v4917_v60, %v3458_v21 }
0x2613   :  { %v3481_v6 = vmul.f32 %v4919_v63, %v3457_v30  ;;  %v91_v63 = vld [vmem:[#allocation2 + $0x148] sm:$0xff] }
0x2614   :  { %v3488_v11 = vmul.f32 %v3485_v62, %v3482_v0 }
0x2615   :  { %v3487_v14 = vmul.f32 %v3485_v62, %v3481_v6  ;;  %v90_v62 = vld [vmem:[#allocation2 + $0x138] sm:$0xff] }
0x2616   :  { %v3494_v4 = vadd.f32 %v3491_v8, %v3488_v11  ;;  %v4701_v0 = vpack.c.bf16 %v91_v63, %v90_v62  ;;  %v80_v11 = vld [vmem:[#allocation2 + $0x10a] ss:$0 sm:$0xff] }
0x2617   :  { %v3493_v37 = vadd.f32 %v3491_v8, %v3487_v14  ;;  %v92_v8 = vld [vmem:[#allocation2 + $0x158] sm:$0xff] }
0x2618   :  { %3499 = vrot.lane.b32.xlu1 %v3494_v4, %s5005_s2  ;;  %v4704_v5 = vpack.c.bf16 %v93_v10, %v92_v8 }
0x2619   :  { %3497 = vrot.lane.b32.xlu0 %v3493_v37, %s5005_s2 }
0x268a   :  { %v3500_v16 = vpop.permute.xlu1 %3499 }
0x268b   :  { %v3498_v38 = vpop.permute.xlu0 %3497 }
0x268c   :  { %4284 = vmatprep.mubr.msk.f32.mxu1 %vm135_vm0, %v3498_v38 }
0x268d   :  { %4285 = vmatmul.mubr.msk.f32.vlgmr.msra.gmra.mrb[38].mxu1 %vm135_vm0, %v3500_v16 }
0x268e   :  { %4322 = vmatprep.mubr.msk.f32.mxu1 %vm5012_vm8, %v5004_v48  ;;  %4690 = vmatpush3.bf16.msra.mxu1 %v4689_v42 }
0x268f   :  { %4691 = vmatprep.subr.bf16.mxu1 %v5011_v41 }
0x2692   :  { %4693 = vmatpush3.bf16.msra.mxu1 %v4692_v43 }
0x2693   :  { %4694 = vmatprep.subr.bf16.mxu1 %v5011_v41 }
0x2696   :  { %4696 = vmatpush3.bf16.msra.mxu1 %v4695_v45 }
0x2697   :  { %4697 = vmatprep.subr.bf16.mxu1 %v5011_v41 }
0x269a   :  { %4699 = vmatpush3.bf16.msra.mxu1 %v4698_v49 }
0x269b   :  { %4700 = vmatprep.subr.bf16.mxu1 %v5011_v41 }
0x2760   :  { %v4286_v19 = vpop.f32.mrb[38].mxu1 }
0x2761   :  { %v3577_v23 = vadd.f32 %v4286_v19, %v2422_v18  ;;  %v3571_v13 = vpop.f32.mrb[39].mxu1 }
0x2762   :  { %v3572_v24 = vadd.f32 %v3571_v13, %v2422_v18 }
0x2763   :  { %v3581_v26 = vmax.f32 %v3577_v23, 0.0 }
0x2764   :  { %v3580_v25 = vmax.f32 %v3572_v24, 0.0 }
0x2766   :  { %4303 = vmatprep.mubr.f32.mxu0 %v3580_v25 }
0x2767   :  { %4304 = vmatmul.mubr.f32.vlgmr.msra.gmra.mrb[30].mxu0 %v3581_v26 }
0x283a   :  { %v4305_v36 = vpop.f32.mrb[30].mxu0 }
0x283b   :  { %v3653_v28 = vadd.f32 %v4305_v36, %v2423_v27  ;;  %v3648_v40 = vpop.f32.mrb[31].mxu0 }
0x283d   :  { %3657 = vrot.lane.b32.xlu0 %v3653_v28, %s5005_s2 }
0x28af   :  { %v3658_v21 = vpop.permute.xlu0 %3657 }
0x28b0   :  { %v3660_v30 = vadd.f32 %v3658_v21, %v3494_v4 }
0x28b2   :  { %3662 = vrot.lane.b32.xlu1 %v3660_v30, %s5005_s2 }
0x2924   :  { %v3663_v17 = vpop.permute.xlu1 %3662 }
0x2925   :  { %v3665_v22 = vsel %vm135_vm0, %v3663_v17, 0.0 }
0x2926   :  { %3666 = vadd.xlane.f32.xlu0 %v3665_v22 }
0x293c   :  { %3683 = vrot.lane.b32.xlu0 %v2426_v31, %s5005_s2 }
0x29b3   :  { %v3667_v32 = vpop.xlane.xlu0 %3666 }
0x29b4   :  { %v3668_v50 = vmul.f32 0.015625, %v3667_v32 }
0x29b6   :  { %v3669_v33 = vsub.f32 %v3660_v30, %v3668_v50 }
0x29b7   :  { %v3684_v54 = vpop.permute.xlu0 %3683 }
0x29b8   :  { %v3670_v51 = vmul.f32 %v3669_v33, %v3669_v33 }
0x29ba   :  { %3672 = vrot.lane.b32.xlu1 %v3670_v51, %s5005_s2 }
0x2a2c   :  { %v3673_v3 = vpop.permute.xlu1 %3672 }
0x2a2d   :  { %v3675_v34 = vsel %vm135_vm0, %v3673_v3, 0.0 }
0x2a2e   :  { %3676 = vadd.xlane.f32.xlu1 %v3675_v34 }
0x2a3f   :  { %3688 = vrot.lane.b32.xlu1 %v2427_v29, %s5005_s2 }
0x2abb   :  { %v3677_v52 = vpop.xlane.xlu1 %3676 }
0x2abc   :  { %v3678_v12 = vmul.f32 0.015625, %v3677_v52 }
0x2abe   :  { %v3679_v53 = vadd.f32 1e-05, %v3678_v12 }
0x2abf   :  { %v3689_v7 = vpop.permute.xlu1 %3688 }
0x2ac0   :  { %4920 = vrsqrt.f32 %v3679_v53 }
0x2aca   :  { %v4921_v2 = vpop.eup %4920 }
0x2acb   :  { %v3681_v56 = vmul.f32 %v4921_v2, %v3669_v33 }
0x2acd   :  { %v3686_v57 = vmul.f32 %v3684_v54, %v3681_v56 }
0x2acf   :  { %v3691_v58 = vadd.f32 %v3689_v7, %v3686_v57 }
0x2ad1   :  { %v3693_v60 = vrot.slane %v3691_v58, 6 }
0x2ad3   :  { %3694 = vrot.lane.b32.xlu0 %v3693_v60, %s5005_s2 }
0x2b45   :  { %v3695_v6 = vpop.permute.xlu0 %3694 }
0x2b46   :  { %4323 = vmatmul.mubr.msk.f32.vlgmr.msra.gmra.mrb[40].mxu1 %vm135_vm0, %v3695_v6 }
0x2b47   :  { %4702 = vmatpush3.bf16.msra.mxu1 %v4701_v0  ;;  %4333 = vmatprep.mubr.msk.f32.mxu1 %vm5012_vm8, %v5004_v48 }
0x2b48   :  { %4703 = vmatprep.subr.bf16.mxu1 %v5011_v41 }
0x2b4b   :  { %4705 = vmatpush3.bf16.msra.mxu1 %v4704_v5 }
0x2c19   :  { %v3764_v14 = vpop.f32.mrb[40].mxu1 }
0x2c1a   :  { %v3765_v4 = vadd.f32 %v3764_v14, %v80_v11  ;;  %v4324_v55 = vpop.f32.mrb[41].mxu1 }
0x2c1c   :  { %v3768_v37 = vmax.f32 %v3765_v4, 0.0 }
0x2c1e   :  { %4334 = vmatmul.mubr.msk.f32.vlgmr.msra.gmra.mrb[42].mxu1 %vm2000_vm6, %v3768_v37 }
0x2cf1   :  { %v3838_v9 = vpop.f32.mrb[42].mxu1 }
0x2cf2   :  { %v3839_v1 = vadd.f32 %v3838_v9, %v81_v15  ;;  %v4335_v38 = vpop.f32.mrb[43].mxu1 }
0x2cf4   :  { %v3843_v16 = vsel %vm3842_vm9, %v3839_v1, -inf }
0x2cf5   :  { %3844 = vmax.xlane.f32.xlu0 %v3843_v16 }
0x2d82   :  { %v3845_v48 = vpop.xlane.xlu0 %3844 }
0x2d83   :  { %v3846_v18 = vsub.f32 %v3839_v1, %v3845_v48 }
0x2d85   :  { %v3847_v19 = vmul.f32 1.442695, %v3846_v18 }
0x2d87   :  { %4922 = vpow2.f32 %v3847_v19 }
0x2d91   :  { %v4923_v23 = vpop.eup %4922 }
0x2d92   :  { %v3849_v13 = vsel %vm3842_vm9, %v4923_v23, 0.0 }
0x2d93   :  { %3850 = vadd.xlane.f32.xlu1 %v3849_v13 }
0x2e20   :  { %v3851_v24 = vpop.xlane.xlu1 %3850 }
0x2e21   :  { %4924 = vrcp.f32 %v3851_v24 }
0x2e2b   :  { %v4925_v25 = vpop.eup %4924 }
0x2e2c   :  { %v3853_v26 = vmul.f32 %v4925_v25, %v4923_v23 }
0x2e2e   :  { %3854 = vst.msk [vmem:[#allocation7] sm:$0x3] %vm3842_vm9, %v3853_v26 }
0x2e2f   :  { %4981 = shalt.err (!%p4978_p6)
}
0x2e30   :  { %s4982_s23 = scalar_lea.hbm %s5547_s3, 32 }
0x2e31   :  { %p4983_p7 = scmp.ne.s32.totalorder %s5547_s3, %s4982_s23  ;;  %p4986_p8 = scmp.lt.u32.totalorder %s4982_s23, %s5547_s3 }
0x2e33   :  { %p4988_p9 = pnand %p4986_p8, %p4983_p7 }
0x2e35   :  { %4991 = shalt.err (!%p4988_p9)
}
0x2e36   :  { %3864 = dma.vmem_to_hbm [thread:$0]  %s3862_s19, 32, %s5547_s3, [#allocation4]  }
0x2e37   :  { %4996 = dma.done.wait [#allocation4], 32  }
0x2e38   :  { %4997 = vsyncadd [#allocation4], 4294967264 }
0x2e39   :  { %3868 = vsyncpa [#allocation3], 1 }
0x2e3a   :  { %3869 = vsyncpa [#allocation6], 1 }
0x2e3b   :  { %3870 = vsyncpa [#allocation4], 1 }

</bundles_post_ra>
